<compile_context>
chip_gen: v5e
topology: v5e:2x2
jax: 0.10.0
libtpu: 0.0.40
codegen_flags: <defaults>
</compile_context>

<pallas_src>
import jax
import jax.numpy as jnp
from jax import lax
from jax.experimental import pallas as pl
from jax.experimental.pallas import tpu as pltpu

T = 16          # number of time steps (ODE output grid == input rows)
NN_IN = 5       # s_snow, s_water, prcp, tmean, dayl
NN_OUT = 5      # p_snow, p_rain, m, et, q
NPAD = 8        # padded feature width (zero padding, exact semantics kept)
HID = 32        # MLP hidden width


def _sinh(x):
    return 0.5 * (jnp.exp(x) - jnp.exp(-x))


def _step(x):
    # ExpHydroM100.step_function: (tanh(5x) + 1) * 0.5
    return (jnp.tanh(5.0 * x) + 1.0) * 0.5


def ode_fused_kernel(inp_ref, w1_ref, b1_ref, w2_ref, b2_ref, w3_ref, b3_ref,
                     out_ref):
    """Fused fixed-step Euler integration + M100 head for ExpHydro-M100.

    inp_ref : SMEM (6, T) rows = [s_snow, s_water, prcp, tmean, dayl, t]
    w*/b*   : VMEM MLP params (feature dims zero-padded to NPAD)
    out_ref : VMEM (T, NPAD); lane 0 = s_snow(t_k), lane 1 = s_water(t_k),
              lane 4 = raw q head output (last MLP column) at t_k.
    """
    n_t = out_ref.shape[0]

    # one-hot lane masks, hoisted out of the loop (JAX does not CSE
    # broadcast_in_dim, so building these per iteration re-emits them).
    idx = lax.broadcasted_iota(jnp.int32, (1, NPAD), 1)
    e0 = (idx == 0).astype(jnp.float32)
    e1 = (idx == 1).astype(jnp.float32)
    e2 = (idx == 2).astype(jnp.float32)
    e3 = (idx == 3).astype(jnp.float32)
    e4 = (idx == 4).astype(jnp.float32)
    c0 = e0 - e2                     # ds0 = p_snow - m
    c1 = e1 + e2 - e3 - e4           # ds1 = p_rain + m - et - q

    w1 = w1_ref[...]
    b1 = b1_ref[...]
    w2 = w2_ref[...]
    b2 = b2_ref[...]
    w3 = w3_ref[...]
    b3 = b3_ref[...]

    # y lanes: [s_snow, s_water, 0, 0, 0, 0, 0, 0]
    y0 = inp_ref[0, 0] * e0 + inp_ref[1, 0] * e1

    def body(k, y):
        # forcings at t_k (fixed step == grid, so "interp" = column lookup)
        prcp = inp_ref[2, k]
        tmean = inp_ref[3, k]
        dayl = inp_ref[4, k]
        kp1 = jnp.minimum(k + 1, n_t - 1)
        dt = inp_ref[5, kp1] - inp_ref[5, k]          # 0.0 on the last row

        # M100 MLP on [s0, s1, prcp, tmean, dayl, 0, 0, 0]
        x = y + prcp * e2 + tmean * e3 + dayl * e4
        h = jnp.tanh(jnp.dot(x, w1, preferred_element_type=jnp.float32) + b1)
        h = jnp.tanh(jnp.dot(h, w2, preferred_element_type=jnp.float32) + b2)
        o = jnp.dot(h, w3, preferred_element_type=jnp.float32) + b3

        # fused head output: row k = [s0_k, s1_k, 0, 0, q_raw_k, 0, 0, 0]
        out_ref[pl.ds(k, 1), :] = y + o * e4

        # cfg.scale_target_vars=True flux transforms.
        # sinh reuses exp(o): one exp push + one (cheap) reciprocal per step.
        exp_o = jnp.exp(o)
        sinh_o = 0.5 * (exp_o - pl.reciprocal(exp_o, approx=True))

        s0_b = jnp.sum(y * e0, axis=1, keepdims=True)   # (1, 1)
        s1_b = jnp.sum(y * e1, axis=1, keepdims=True)   # (1, 1)
        stepv = _step((-tmean) * e0 + s0_b * e2 + s1_b * (e3 + e4))

        flux = (jnp.maximum(sinh_o * stepv, 0.0) * e0      # p_snow
                + jnp.maximum(sinh_o, 0.0) * e1            # p_rain
                + jnp.maximum(stepv * sinh_o, 0.0) * e2    # m
                + stepv * exp_o * dayl * e3                # et
                + stepv * exp_o * e4)                      # q

        ds0 = jnp.sum(flux * c0, axis=1, keepdims=True)    # (1, 1)
        ds1 = jnp.sum(flux * c1, axis=1, keepdims=True)    # (1, 1)
        return y + dt * (ds0 * e0 + ds1 * e1)

    # T is static -> fully unroll the latency-serialized loop so the LLO
    # scheduler can overlap stores / SMEM loads across iterations.
    lax.fori_loop(0, n_t, body, y0, unroll=True)


def exphydro_m100_forward(inputs, params):
    """Returns (q_output, s_snow_nn, s_water_nn), each of shape (T,)."""
    w1, b1, w2, b2, w3, b3 = params
    n_t = inputs.shape[0]

    vmem = pl.BlockSpec(memory_space=pltpu.MemorySpace.VMEM)
    smem = pl.BlockSpec(memory_space=pltpu.MemorySpace.SMEM)

    # (T, 6) -> (6, T): long axis last keeps the SMEM footprint tiny.
    inp_t = inputs.T

    flops = int(n_t * (2 * (NPAD * HID + HID * HID + HID * NPAD) + 24 * NPAD))
    transc = int(n_t * (2 * HID + 4 * NPAD))
    nbytes = int(4 * (inp_t.size + sum(int(p.size) for p in params)
                      + n_t * NPAD))

    out = pl.pallas_call(
        ode_fused_kernel,
        out_shape=jax.ShapeDtypeStruct((n_t, NPAD), jnp.float32),
        in_specs=[smem] + [vmem] * 6,
        out_specs=vmem,
        cost_estimate=pl.CostEstimate(flops=flops, transcendentals=transc,
                                      bytes_accessed=nbytes),
    )(inp_t, w1, b1, w2, b2, w3, b3)

    s_snow_nn = out[:, 0]
    s_water_nn = out[:, 1]
    q_output = out[:, NN_OUT - 1]   # torch: nnmodel(inputs_nn)[:, -1]
    return q_output, s_snow_nn, s_water_nn


def reference_forward(inputs, params):
    """Pure-JAX reference of the same forward semantics (for validation)."""
    w1, b1, w2, b2, w3, b3 = params
    w1u, w3u, b3u = w1[:NN_IN], w3[:, :NN_OUT], b3[:, :NN_OUT]
    hp = jax.lax.Precision.HIGHEST

    def mlp(x):
        h = jnp.tanh(jnp.dot(x, w1u, precision=hp) + b1)
        h = jnp.tanh(jnp.dot(h, w2, precision=hp) + b2)
        return jnp.dot(h, w3u, precision=hp) + b3u

    n_t = inputs.shape[0]
    t_axis = inputs[:, 5]

    def step(carry, k):
        s0, s1 = carry
        prcp, tmean, dayl = inputs[k, 2], inputs[k, 3], inputs[k, 4]
        dt = t_axis[k + 1] - t_axis[k]
        x = jnp.stack([s0, s1, prcp, tmean, dayl])[None, :]
        o = mlp(x)[0]
        p_snow = jnp.maximum(_sinh(o[0]) * _step(-tmean), 0.0)
        p_rain = jnp.maximum(_sinh(o[1]), 0.0)
        m = jnp.maximum(_step(s0) * _sinh(o[2]), 0.0)
        et = _step(s1) * jnp.exp(o[3]) * dayl
        q = _step(s1) * jnp.exp(o[4])
        new = (s0 + dt * (p_snow - m), s1 + dt * (p_rain + m - et - q))
        return new, jnp.stack(new)

    y0 = (inputs[0, 0], inputs[0, 1])
    _, traj = lax.scan(step, y0, jnp.arange(n_t - 1))
    s_snow = jnp.concatenate([inputs[0:1, 0], traj[:, 0]])
    s_water = jnp.concatenate([inputs[0:1, 1], traj[:, 1]])
    x_head = jnp.stack(
        [s_snow, s_water, inputs[:, 2], inputs[:, 3], inputs[:, 4]], axis=-1)
    return mlp(x_head)[:, -1], s_snow, s_water


if __name__ == "__main__":
    key = jax.random.PRNGKey(0)
    k = jax.random.split(key, 10)

    # deterministic M100 MLP parameters (zero-padded to NPAD lanes)
    w1 = jnp.zeros((NPAD, HID), jnp.float32).at[:NN_IN].set(
        0.2 * jax.random.normal(k[0], (NN_IN, HID), jnp.float32))
    b1 = 0.05 * jax.random.normal(k[1], (1, HID), jnp.float32)
    w2 = 0.1 * jax.random.normal(k[2], (HID, HID), jnp.float32)
    b2 = 0.05 * jax.random.normal(k[3], (1, HID), jnp.float32)
    w3 = jnp.zeros((HID, NPAD), jnp.float32).at[:, :NN_OUT].set(
        0.1 * jax.random.normal(k[4], (HID, NN_OUT), jnp.float32))
    b3 = jnp.zeros((1, NPAD), jnp.float32).at[:, :NN_OUT].set(
        0.05 * jax.random.normal(k[5], (1, NN_OUT), jnp.float32))
    params = (w1, b1, w2, b2, w3, b3)

    # deterministic inputs (T, 6): [s_snow, s_water, prcp, tmean, dayl, t]
    s_snow = jax.random.uniform(k[6], (T,), jnp.float32, 0.0, 2.0)
    s_water = jax.random.uniform(k[7], (T,), jnp.float32, 0.0, 2.0)
    prcp = jax.random.uniform(k[8], (T,), jnp.float32, 0.0, 1.0)
    tmean = jax.random.normal(k[9], (T,), jnp.float32)
    dayl = jnp.linspace(0.3, 0.9, T, dtype=jnp.float32)
    t_axis = jnp.arange(T, dtype=jnp.float32)
    inputs = jnp.stack([s_snow, s_water, prcp, tmean, dayl, t_axis], axis=-1)

    q_out, s_snow_nn, s_water_nn = jax.block_until_ready(
        jax.jit(exphydro_m100_forward)(inputs, params))

    q_ref, s_snow_ref, s_water_ref = reference_forward(inputs, params)
    assert q_out.shape == (T,)
    assert s_snow_nn.shape == (T,) and s_water_nn.shape == (T,)
    assert bool(jnp.all(jnp.isfinite(q_out)))
    assert jnp.allclose(q_out, q_ref, rtol=2e-2, atol=2e-2)
    assert jnp.allclose(s_snow_nn, s_snow_ref, rtol=2e-2, atol=2e-2)
    assert jnp.allclose(s_water_nn, s_water_ref, rtol=2e-2, atol=2e-2)
    print("KERNEL_OK")
</pallas_src>

<mosaic_0001>
module attributes {stable_mosaic.version = 11 : i64} {
  func.func @ode_fused_kernel(%arg0: memref<6x16xf32, #tpu.memory_space<smem>>, %arg1: memref<8x32xf32, #tpu.memory_space<vmem>>, %arg2: memref<1x32xf32, #tpu.memory_space<vmem>>, %arg3: memref<32x32xf32, #tpu.memory_space<vmem>>, %arg4: memref<1x32xf32, #tpu.memory_space<vmem>>, %arg5: memref<32x8xf32, #tpu.memory_space<vmem>>, %arg6: memref<1x8xf32, #tpu.memory_space<vmem>>, %arg7: memref<16x8xf32, #tpu.memory_space<vmem>>) attributes {dimension_semantics = [], scalar_prefetch = 0 : i64, scratch_operands = 0 : i64, tpu.core_type = #tpu.core_type<tc>} {
    %0 = tpu.iota {dimensions = array<i32: 1>} : vector<1x8xi32>
    %c0_i32 = arith.constant 0 : i32
    %1 = vector.broadcast %c0_i32 : i32 to vector<1x8xi32>
    %2 = arith.cmpi eq, %0, %1 : vector<1x8xi32>
    %3 = arith.extui %2 : vector<1x8xi1> to vector<1x8xi32>
    %4 = arith.sitofp %3 : vector<1x8xi32> to vector<1x8xf32>
    %c1_i32 = arith.constant 1 : i32
    %5 = vector.broadcast %c1_i32 : i32 to vector<1x8xi32>
    %6 = arith.cmpi eq, %0, %5 : vector<1x8xi32>
    %7 = arith.extui %6 : vector<1x8xi1> to vector<1x8xi32>
    %8 = arith.sitofp %7 : vector<1x8xi32> to vector<1x8xf32>
    %c2_i32 = arith.constant 2 : i32
    %9 = vector.broadcast %c2_i32 : i32 to vector<1x8xi32>
    %10 = arith.cmpi eq, %0, %9 : vector<1x8xi32>
    %11 = arith.extui %10 : vector<1x8xi1> to vector<1x8xi32>
    %12 = arith.sitofp %11 : vector<1x8xi32> to vector<1x8xf32>
    %c3_i32 = arith.constant 3 : i32
    %13 = vector.broadcast %c3_i32 : i32 to vector<1x8xi32>
    %14 = arith.cmpi eq, %0, %13 : vector<1x8xi32>
    %15 = arith.extui %14 : vector<1x8xi1> to vector<1x8xi32>
    %16 = arith.sitofp %15 : vector<1x8xi32> to vector<1x8xf32>
    %c4_i32 = arith.constant 4 : i32
    %17 = vector.broadcast %c4_i32 : i32 to vector<1x8xi32>
    %18 = arith.cmpi eq, %0, %17 : vector<1x8xi32>
    %19 = arith.extui %18 : vector<1x8xi1> to vector<1x8xi32>
    %20 = arith.sitofp %19 : vector<1x8xi32> to vector<1x8xf32>
    %21 = arith.subf %4, %12 : vector<1x8xf32>
    %22 = arith.addf %8, %12 : vector<1x8xf32>
    %23 = arith.subf %22, %16 : vector<1x8xf32>
    %24 = arith.subf %23, %20 : vector<1x8xf32>
    %c0 = arith.constant 0 : index
    %c0_0 = arith.constant 0 : index
    %25 = vector.load %arg1[%c0, %c0_0] : memref<8x32xf32, #tpu.memory_space<vmem>>, vector<8x32xf32>
    %c0_1 = arith.constant 0 : index
    %c0_2 = arith.constant 0 : index
    %26 = vector.load %arg2[%c0_1, %c0_2] : memref<1x32xf32, #tpu.memory_space<vmem>>, vector<1x32xf32>
    %c0_3 = arith.constant 0 : index
    %c0_4 = arith.constant 0 : index
    %27 = vector.load %arg3[%c0_3, %c0_4] : memref<32x32xf32, #tpu.memory_space<vmem>>, vector<32x32xf32>
    %c0_5 = arith.constant 0 : index
    %c0_6 = arith.constant 0 : index
    %28 = vector.load %arg4[%c0_5, %c0_6] : memref<1x32xf32, #tpu.memory_space<vmem>>, vector<1x32xf32>
    %c0_7 = arith.constant 0 : index
    %c0_8 = arith.constant 0 : index
    %29 = vector.load %arg5[%c0_7, %c0_8] : memref<32x8xf32, #tpu.memory_space<vmem>>, vector<32x8xf32>
    %c0_9 = arith.constant 0 : index
    %c0_10 = arith.constant 0 : index
    %30 = vector.load %arg6[%c0_9, %c0_10] : memref<1x8xf32, #tpu.memory_space<vmem>>, vector<1x8xf32>
    %c0_11 = arith.constant 0 : index
    %c0_12 = arith.constant 0 : index
    %31 = memref.load %arg0[%c0_11, %c0_12] : memref<6x16xf32, #tpu.memory_space<smem>>
    %32 = vector.broadcast %31 : f32 to vector<1x8xf32>
    %33 = arith.mulf %32, %4 : vector<1x8xf32>
    %c1 = arith.constant 1 : index
    %c0_13 = arith.constant 0 : index
    %34 = memref.load %arg0[%c1, %c0_13] : memref<6x16xf32, #tpu.memory_space<smem>>
    %35 = vector.broadcast %34 : f32 to vector<1x8xf32>
    %36 = arith.mulf %35, %8 : vector<1x8xf32>
    %37 = arith.addf %33, %36 : vector<1x8xf32>
    %c0_i32_14 = arith.constant 0 : i32
    %c2 = arith.constant 2 : index
    %38 = arith.index_cast %c0_i32_14 : i32 to index
    %39 = memref.load %arg0[%c2, %38] : memref<6x16xf32, #tpu.memory_space<smem>>
    %c3 = arith.constant 3 : index
    %40 = arith.index_cast %c0_i32_14 : i32 to index
    %41 = memref.load %arg0[%c3, %40] : memref<6x16xf32, #tpu.memory_space<smem>>
    %c4 = arith.constant 4 : index
    %42 = arith.index_cast %c0_i32_14 : i32 to index
    %43 = memref.load %arg0[%c4, %42] : memref<6x16xf32, #tpu.memory_space<smem>>
    %c1_i32_15 = arith.constant 1 : i32
    %44 = arith.addi %c0_i32_14, %c1_i32_15 : i32
    %c15_i32 = arith.constant 15 : i32
    %45 = arith.minsi %44, %c15_i32 : i32
    %c5 = arith.constant 5 : index
    %46 = arith.index_cast %45 : i32 to index
    %47 = memref.load %arg0[%c5, %46] : memref<6x16xf32, #tpu.memory_space<smem>>
    %c5_16 = arith.constant 5 : index
    %48 = arith.index_cast %c0_i32_14 : i32 to index
    %49 = memref.load %arg0[%c5_16, %48] : memref<6x16xf32, #tpu.memory_space<smem>>
    %50 = arith.subf %47, %49 : f32
    %51 = vector.broadcast %39 : f32 to vector<1x8xf32>
    %52 = arith.mulf %51, %12 : vector<1x8xf32>
    %53 = arith.addf %37, %52 : vector<1x8xf32>
    %54 = vector.broadcast %41 : f32 to vector<1x8xf32>
    %55 = arith.mulf %54, %16 : vector<1x8xf32>
    %56 = arith.addf %53, %55 : vector<1x8xf32>
    %57 = vector.broadcast %43 : f32 to vector<1x8xf32>
    %58 = arith.mulf %57, %20 : vector<1x8xf32>
    %59 = arith.addf %56, %58 : vector<1x8xf32>
    %cst = arith.constant dense<0.000000e+00> : vector<1x32xf32>
    %60 = tpu.matmul %59, %25, %cst {dimension_numbers = #tpu.dot_dimension_numbers<[1], [0], [0], [1], [0, 0, 1, 1], [], []>} : vector<1x8xf32>, vector<8x32xf32>, vector<1x32xf32> -> vector<1x32xf32>
    %61 = arith.addf %60, %26 : vector<1x32xf32>
    %62 = math.tanh %61 : vector<1x32xf32>
    %cst_17 = arith.constant dense<0.000000e+00> : vector<1x32xf32>
    %63 = tpu.matmul %62, %27, %cst_17 {dimension_numbers = #tpu.dot_dimension_numbers<[1], [0], [0], [1], [0, 0, 1, 1], [], []>} : vector<1x32xf32>, vector<32x32xf32>, vector<1x32xf32> -> vector<1x32xf32>
    %64 = arith.addf %63, %28 : vector<1x32xf32>
    %65 = math.tanh %64 : vector<1x32xf32>
    %cst_18 = arith.constant dense<0.000000e+00> : vector<1x8xf32>
    %66 = tpu.matmul %65, %29, %cst_18 {dimension_numbers = #tpu.dot_dimension_numbers<[1], [0], [0], [1], [0, 0, 1, 1], [], []>} : vector<1x32xf32>, vector<32x8xf32>, vector<1x8xf32> -> vector<1x8xf32>
    %67 = arith.addf %66, %30 : vector<1x8xf32>
    %68 = arith.mulf %67, %20 : vector<1x8xf32>
    %69 = arith.addf %37, %68 : vector<1x8xf32>
    %70 = arith.index_cast %c0_i32_14 : i32 to index
    %c0_19 = arith.constant 0 : index
    %71 = vector.load %arg7[%70, %c0_19] : memref<16x8xf32, #tpu.memory_space<vmem>>, vector<1x8xf32>
    tpu.vector_store %arg7[%70, %c0_19], %69 {strides = array<i32>} : memref<16x8xf32, #tpu.memory_space<vmem>>, vector<1x8xf32>,
    %72 = math.exp %67 : vector<1x8xf32>
    %73 = tpu.reciprocal %72 {approx = true} : vector<1x8xf32> -> vector<1x8xf32>
    %74 = arith.subf %72, %73 : vector<1x8xf32>
    %cst_20 = arith.constant 5.000000e-01 : f32
    %75 = vector.broadcast %cst_20 : f32 to vector<1x8xf32>
    %76 = arith.mulf %75, %74 : vector<1x8xf32>
    %77 = arith.mulf %37, %4 : vector<1x8xf32>
    %cst_21 = arith.constant dense<0.000000e+00> : vector<1xf32>
    %78 = vector.multi_reduction <add>, %77, %cst_21 [1] : vector<1x8xf32> to vector<1xf32>
    %79 = vector.shape_cast %78 : vector<1xf32> to vector<1x1xf32>
    %80 = arith.mulf %37, %8 : vector<1x8xf32>
    %cst_22 = arith.constant dense<0.000000e+00> : vector<1xf32>
    %81 = vector.multi_reduction <add>, %80, %cst_22 [1] : vector<1x8xf32> to vector<1xf32>
    %82 = vector.shape_cast %81 : vector<1xf32> to vector<1x1xf32>
    %cst_23 = arith.constant 0.000000e+00 : f32
    %83 = arith.subf %cst_23, %41 : f32
    %84 = vector.broadcast %83 : f32 to vector<1x8xf32>
    %85 = arith.mulf %84, %4 : vector<1x8xf32>
    %86 = vector.broadcast %79 : vector<1x1xf32> to vector<1x8xf32>
    %87 = arith.mulf %86, %12 : vector<1x8xf32>
    %88 = arith.addf %85, %87 : vector<1x8xf32>
    %89 = arith.addf %16, %20 : vector<1x8xf32>
    %90 = vector.broadcast %82 : vector<1x1xf32> to vector<1x8xf32>
    %91 = arith.mulf %90, %89 : vector<1x8xf32>
    %92 = arith.addf %88, %91 : vector<1x8xf32>
    %cst_24 = arith.constant 5.000000e+00 : f32
    %93 = vector.broadcast %cst_24 : f32 to vector<1x8xf32>
    %94 = arith.mulf %93, %92 : vector<1x8xf32>
    %95 = math.tanh %94 : vector<1x8xf32>
    %cst_25 = arith.constant 1.000000e+00 : f32
    %96 = vector.broadcast %cst_25 : f32 to vector<1x8xf32>
    %97 = arith.addf %95, %96 : vector<1x8xf32>
    %cst_26 = arith.constant 5.000000e-01 : f32
    %98 = vector.broadcast %cst_26 : f32 to vector<1x8xf32>
    %99 = arith.mulf %97, %98 : vector<1x8xf32>
    %100 = arith.mulf %76, %99 : vector<1x8xf32>
    %cst_27 = arith.constant 0.000000e+00 : f32
    %101 = vector.broadcast %cst_27 : f32 to vector<1x8xf32>
    %102 = arith.maximumf %100, %101 : vector<1x8xf32>
    %103 = arith.mulf %102, %4 : vector<1x8xf32>
    %cst_28 = arith.constant 0.000000e+00 : f32
    %104 = vector.broadcast %cst_28 : f32 to vector<1x8xf32>
    %105 = arith.maximumf %76, %104 : vector<1x8xf32>
    %106 = arith.mulf %105, %8 : vector<1x8xf32>
    %107 = arith.addf %103, %106 : vector<1x8xf32>
    %108 = arith.mulf %99, %76 : vector<1x8xf32>
    %cst_29 = arith.constant 0.000000e+00 : f32
    %109 = vector.broadcast %cst_29 : f32 to vector<1x8xf32>
    %110 = arith.maximumf %108, %109 : vector<1x8xf32>
    %111 = arith.mulf %110, %12 : vector<1x8xf32>
    %112 = arith.addf %107, %111 : vector<1x8xf32>
    %113 = arith.mulf %99, %72 : vector<1x8xf32>
    %114 = vector.broadcast %43 : f32 to vector<1x8xf32>
    %115 = arith.mulf %113, %114 : vector<1x8xf32>
    %116 = arith.mulf %115, %16 : vector<1x8xf32>
    %117 = arith.addf %112, %116 : vector<1x8xf32>
    %118 = arith.mulf %99, %72 : vector<1x8xf32>
    %119 = arith.mulf %118, %20 : vector<1x8xf32>
    %120 = arith.addf %117, %119 : vector<1x8xf32>
    %121 = arith.mulf %120, %21 : vector<1x8xf32>
    %cst_30 = arith.constant dense<0.000000e+00> : vector<1xf32>
    %122 = vector.multi_reduction <add>, %121, %cst_30 [1] : vector<1x8xf32> to vector<1xf32>
    %123 = vector.shape_cast %122 : vector<1xf32> to vector<1x1xf32>
    %124 = arith.mulf %120, %24 : vector<1x8xf32>
    %cst_31 = arith.constant dense<0.000000e+00> : vector<1xf32>
    %125 = vector.multi_reduction <add>, %124, %cst_31 [1] : vector<1x8xf32> to vector<1xf32>
    %126 = vector.shape_cast %125 : vector<1xf32> to vector<1x1xf32>
    %127 = vector.broadcast %123 : vector<1x1xf32> to vector<1x8xf32>
    %128 = arith.mulf %127, %4 : vector<1x8xf32>
    %129 = vector.broadcast %126 : vector<1x1xf32> to vector<1x8xf32>
    %130 = arith.mulf %129, %8 : vector<1x8xf32>
    %131 = arith.addf %128, %130 : vector<1x8xf32>
    %132 = vector.broadcast %50 : f32 to vector<1x8xf32>
    %133 = arith.mulf %132, %131 : vector<1x8xf32>
    %134 = arith.addf %37, %133 : vector<1x8xf32>
    %c1_i32_32 = arith.constant 1 : i32
    %c2_33 = arith.constant 2 : index
    %135 = arith.index_cast %c1_i32_32 : i32 to index
    %136 = memref.load %arg0[%c2_33, %135] : memref<6x16xf32, #tpu.memory_space<smem>>
    %c3_34 = arith.constant 3 : index
    %137 = arith.index_cast %c1_i32_32 : i32 to index
    %138 = memref.load %arg0[%c3_34, %137] : memref<6x16xf32, #tpu.memory_space<smem>>
    %c4_35 = arith.constant 4 : index
    %139 = arith.index_cast %c1_i32_32 : i32 to index
    %140 = memref.load %arg0[%c4_35, %139] : memref<6x16xf32, #tpu.memory_space<smem>>
    %c1_i32_36 = arith.constant 1 : i32
    %141 = arith.addi %c1_i32_32, %c1_i32_36 : i32
    %c15_i32_37 = arith.constant 15 : i32
    %142 = arith.minsi %141, %c15_i32_37 : i32
    %c5_38 = arith.constant 5 : index
    %143 = arith.index_cast %142 : i32 to index
    %144 = memref.load %arg0[%c5_38, %143] : memref<6x16xf32, #tpu.memory_space<smem>>
    %c5_39 = arith.constant 5 : index
    %145 = arith.index_cast %c1_i32_32 : i32 to index
    %146 = memref.load %arg0[%c5_39, %145] : memref<6x16xf32, #tpu.memory_space<smem>>
    %147 = arith.subf %144, %146 : f32
    %148 = vector.broadcast %136 : f32 to vector<1x8xf32>
    %149 = arith.mulf %148, %12 : vector<1x8xf32>
    %150 = arith.addf %134, %149 : vector<1x8xf32>
    %151 = vector.broadcast %138 : f32 to vector<1x8xf32>
    %152 = arith.mulf %151, %16 : vector<1x8xf32>
    %153 = arith.addf %150, %152 : vector<1x8xf32>
    %154 = vector.broadcast %140 : f32 to vector<1x8xf32>
    %155 = arith.mulf %154, %20 : vector<1x8xf32>
    %156 = arith.addf %153, %155 : vector<1x8xf32>
    %cst_40 = arith.constant dense<0.000000e+00> : vector<1x32xf32>
    %157 = tpu.matmul %156, %25, %cst_40 {dimension_numbers = #tpu.dot_dimension_numbers<[1], [0], [0], [1], [0, 0, 1, 1], [], []>} : vector<1x8xf32>, vector<8x32xf32>, vector<1x32xf32> -> vector<1x32xf32>
    %158 = arith.addf %157, %26 : vector<1x32xf32>
    %159 = math.tanh %158 : vector<1x32xf32>
    %cst_41 = arith.constant dense<0.000000e+00> : vector<1x32xf32>
    %160 = tpu.matmul %159, %27, %cst_41 {dimension_numbers = #tpu.dot_dimension_numbers<[1], [0], [0], [1], [0, 0, 1, 1], [], []>} : vector<1x32xf32>, vector<32x32xf32>, vector<1x32xf32> -> vector<1x32xf32>
    %161 = arith.addf %160, %28 : vector<1x32xf32>
    %162 = math.tanh %161 : vector<1x32xf32>
    %cst_42 = arith.constant dense<0.000000e+00> : vector<1x8xf32>
    %163 = tpu.matmul %162, %29, %cst_42 {dimension_numbers = #tpu.dot_dimension_numbers<[1], [0], [0], [1], [0, 0, 1, 1], [], []>} : vector<1x32xf32>, vector<32x8xf32>, vector<1x8xf32> -> vector<1x8xf32>
    %164 = arith.addf %163, %30 : vector<1x8xf32>
    %165 = arith.mulf %164, %20 : vector<1x8xf32>
    %166 = arith.addf %134, %165 : vector<1x8xf32>
    %167 = arith.index_cast %c1_i32_32 : i32 to index
    %c0_43 = arith.constant 0 : index
    %168 = vector.load %arg7[%167, %c0_43] : memref<16x8xf32, #tpu.memory_space<vmem>>, vector<1x8xf32>
    tpu.vector_store %arg7[%167, %c0_43], %166 {strides = array<i32>} : memref<16x8xf32, #tpu.memory_space<vmem>>, vector<1x8xf32>,
    %169 = math.exp %164 : vector<1x8xf32>
    %170 = tpu.reciprocal %169 {approx = true} : vector<1x8xf32> -> vector<1x8xf32>
    %171 = arith.subf %169, %170 : vector<1x8xf32>
    %cst_44 = arith.constant 5.000000e-01 : f32
    %172 = vector.broadcast %cst_44 : f32 to vector<1x8xf32>
    %173 = arith.mulf %172, %171 : vector<1x8xf32>
    %174 = arith.mulf %134, %4 : vector<1x8xf32>
    %cst_45 = arith.constant dense<0.000000e+00> : vector<1xf32>
    %175 = vector.multi_reduction <add>, %174, %cst_45 [1] : vector<1x8xf32> to vector<1xf32>
    %176 = vector.shape_cast %175 : vector<1xf32> to vector<1x1xf32>
    %177 = arith.mulf %134, %8 : vector<1x8xf32>
    %cst_46 = arith.constant dense<0.000000e+00> : vector<1xf32>
    %178 = vector.multi_reduction <add>, %177, %cst_46 [1] : vector<1x8xf32> to vector<1xf32>
    %179 = vector.shape_cast %178 : vector<1xf32> to vector<1x1xf32>
    %cst_47 = arith.constant 0.000000e+00 : f32
    %180 = arith.subf %cst_47, %138 : f32
    %181 = vector.broadcast %180 : f32 to vector<1x8xf32>
    %182 = arith.mulf %181, %4 : vector<1x8xf32>
    %183 = vector.broadcast %176 : vector<1x1xf32> to vector<1x8xf32>
    %184 = arith.mulf %183, %12 : vector<1x8xf32>
    %185 = arith.addf %182, %184 : vector<1x8xf32>
    %186 = arith.addf %16, %20 : vector<1x8xf32>
    %187 = vector.broadcast %179 : vector<1x1xf32> to vector<1x8xf32>
    %188 = arith.mulf %187, %186 : vector<1x8xf32>
    %189 = arith.addf %185, %188 : vector<1x8xf32>
    %cst_48 = arith.constant 5.000000e+00 : f32
    %190 = vector.broadcast %cst_48 : f32 to vector<1x8xf32>
    %191 = arith.mulf %190, %189 : vector<1x8xf32>
    %192 = math.tanh %191 : vector<1x8xf32>
    %cst_49 = arith.constant 1.000000e+00 : f32
    %193 = vector.broadcast %cst_49 : f32 to vector<1x8xf32>
    %194 = arith.addf %192, %193 : vector<1x8xf32>
    %cst_50 = arith.constant 5.000000e-01 : f32
    %195 = vector.broadcast %cst_50 : f32 to vector<1x8xf32>
    %196 = arith.mulf %194, %195 : vector<1x8xf32>
    %197 = arith.mulf %173, %196 : vector<1x8xf32>
    %cst_51 = arith.constant 0.000000e+00 : f32
    %198 = vector.broadcast %cst_51 : f32 to vector<1x8xf32>
    %199 = arith.maximumf %197, %198 : vector<1x8xf32>
    %200 = arith.mulf %199, %4 : vector<1x8xf32>
    %cst_52 = arith.constant 0.000000e+00 : f32
    %201 = vector.broadcast %cst_52 : f32 to vector<1x8xf32>
    %202 = arith.maximumf %173, %201 : vector<1x8xf32>
    %203 = arith.mulf %202, %8 : vector<1x8xf32>
    %204 = arith.addf %200, %203 : vector<1x8xf32>
    %205 = arith.mulf %196, %173 : vector<1x8xf32>
    %cst_53 = arith.constant 0.000000e+00 : f32
    %206 = vector.broadcast %cst_53 : f32 to vector<1x8xf32>
    %207 = arith.maximumf %205, %206 : vector<1x8xf32>
    %208 = arith.mulf %207, %12 : vector<1x8xf32>
    %209 = arith.addf %204, %208 : vector<1x8xf32>
    %210 = arith.mulf %196, %169 : vector<1x8xf32>
    %211 = vector.broadcast %140 : f32 to vector<1x8xf32>
    %212 = arith.mulf %210, %211 : vector<1x8xf32>
    %213 = arith.mulf %212, %16 : vector<1x8xf32>
    %214 = arith.addf %209, %213 : vector<1x8xf32>
    %215 = arith.mulf %196, %169 : vector<1x8xf32>
    %216 = arith.mulf %215, %20 : vector<1x8xf32>
    %217 = arith.addf %214, %216 : vector<1x8xf32>
    %218 = arith.mulf %217, %21 : vector<1x8xf32>
    %cst_54 = arith.constant dense<0.000000e+00> : vector<1xf32>
    %219 = vector.multi_reduction <add>, %218, %cst_54 [1] : vector<1x8xf32> to vector<1xf32>
    %220 = vector.shape_cast %219 : vector<1xf32> to vector<1x1xf32>
    %221 = arith.mulf %217, %24 : vector<1x8xf32>
    %cst_55 = arith.constant dense<0.000000e+00> : vector<1xf32>
    %222 = vector.multi_reduction <add>, %221, %cst_55 [1] : vector<1x8xf32> to vector<1xf32>
    %223 = vector.shape_cast %222 : vector<1xf32> to vector<1x1xf32>
    %224 = vector.broadcast %220 : vector<1x1xf32> to vector<1x8xf32>
    %225 = arith.mulf %224, %4 : vector<1x8xf32>
    %226 = vector.broadcast %223 : vector<1x1xf32> to vector<1x8xf32>
    %227 = arith.mulf %226, %8 : vector<1x8xf32>
    %228 = arith.addf %225, %227 : vector<1x8xf32>
    %229 = vector.broadcast %147 : f32 to vector<1x8xf32>
    %230 = arith.mulf %229, %228 : vector<1x8xf32>
    %231 = arith.addf %134, %230 : vector<1x8xf32>
    %c2_i32_56 = arith.constant 2 : i32
    %c2_57 = arith.constant 2 : index
    %232 = arith.index_cast %c2_i32_56 : i32 to index
    %233 = memref.load %arg0[%c2_57, %232] : memref<6x16xf32, #tpu.memory_space<smem>>
    %c3_58 = arith.constant 3 : index
    %234 = arith.index_cast %c2_i32_56 : i32 to index
    %235 = memref.load %arg0[%c3_58, %234] : memref<6x16xf32, #tpu.memory_space<smem>>
    %c4_59 = arith.constant 4 : index
    %236 = arith.index_cast %c2_i32_56 : i32 to index
    %237 = memref.load %arg0[%c4_59, %236] : memref<6x16xf32, #tpu.memory_space<smem>>
    %c1_i32_60 = arith.constant 1 : i32
    %238 = arith.addi %c2_i32_56, %c1_i32_60 : i32
    %c15_i32_61 = arith.constant 15 : i32
    %239 = arith.minsi %238, %c15_i32_61 : i32
    %c5_62 = arith.constant 5 : index
    %240 = arith.index_cast %239 : i32 to index
    %241 = memref.load %arg0[%c5_62, %240] : memref<6x16xf32, #tpu.memory_space<smem>>
    %c5_63 = arith.constant 5 : index
    %242 = arith.index_cast %c2_i32_56 : i32 to index
    %243 = memref.load %arg0[%c5_63, %242] : memref<6x16xf32, #tpu.memory_space<smem>>
    %244 = arith.subf %241, %243 : f32
    %245 = vector.broadcast %233 : f32 to vector<1x8xf32>
    %246 = arith.mulf %245, %12 : vector<1x8xf32>
    %247 = arith.addf %231, %246 : vector<1x8xf32>
    %248 = vector.broadcast %235 : f32 to vector<1x8xf32>
    %249 = arith.mulf %248, %16 : vector<1x8xf32>
    %250 = arith.addf %247, %249 : vector<1x8xf32>
    %251 = vector.broadcast %237 : f32 to vector<1x8xf32>
    %252 = arith.mulf %251, %20 : vector<1x8xf32>
    %253 = arith.addf %250, %252 : vector<1x8xf32>
    %cst_64 = arith.constant dense<0.000000e+00> : vector<1x32xf32>
    %254 = tpu.matmul %253, %25, %cst_64 {dimension_numbers = #tpu.dot_dimension_numbers<[1], [0], [0], [1], [0, 0, 1, 1], [], []>} : vector<1x8xf32>, vector<8x32xf32>, vector<1x32xf32> -> vector<1x32xf32>
    %255 = arith.addf %254, %26 : vector<1x32xf32>
    %256 = math.tanh %255 : vector<1x32xf32>
    %cst_65 = arith.constant dense<0.000000e+00> : vector<1x32xf32>
    %257 = tpu.matmul %256, %27, %cst_65 {dimension_numbers = #tpu.dot_dimension_numbers<[1], [0], [0], [1], [0, 0, 1, 1], [], []>} : vector<1x32xf32>, vector<32x32xf32>, vector<1x32xf32> -> vector<1x32xf32>
    %258 = arith.addf %257, %28 : vector<1x32xf32>
    %259 = math.tanh %258 : vector<1x32xf32>
    %cst_66 = arith.constant dense<0.000000e+00> : vector<1x8xf32>
    %260 = tpu.matmul %259, %29, %cst_66 {dimension_numbers = #tpu.dot_dimension_numbers<[1], [0], [0], [1], [0, 0, 1, 1], [], []>} : vector<1x32xf32>, vector<32x8xf32>, vector<1x8xf32> -> vector<1x8xf32>
    %261 = arith.addf %260, %30 : vector<1x8xf32>
    %262 = arith.mulf %261, %20 : vector<1x8xf32>
    %263 = arith.addf %231, %262 : vector<1x8xf32>
    %264 = arith.index_cast %c2_i32_56 : i32 to index
    %c0_67 = arith.constant 0 : index
    %265 = vector.load %arg7[%264, %c0_67] : memref<16x8xf32, #tpu.memory_space<vmem>>, vector<1x8xf32>
    tpu.vector_store %arg7[%264, %c0_67], %263 {strides = array<i32>} : memref<16x8xf32, #tpu.memory_space<vmem>>, vector<1x8xf32>,
    %266 = math.exp %261 : vector<1x8xf32>
    %267 = tpu.reciprocal %266 {approx = true} : vector<1x8xf32> -> vector<1x8xf32>
    %268 = arith.subf %266, %267 : vector<1x8xf32>
    %cst_68 = arith.constant 5.000000e-01 : f32
    %269 = vector.broadcast %cst_68 : f32 to vector<1x8xf32>
    %270 = arith.mulf %269, %268 : vector<1x8xf32>
    %271 = arith.mulf %231, %4 : vector<1x8xf32>
    %cst_69 = arith.constant dense<0.000000e+00> : vector<1xf32>
    %272 = vector.multi_reduction <add>, %271, %cst_69 [1] : vector<1x8xf32> to vector<1xf32>
    %273 = vector.shape_cast %272 : vector<1xf32> to vector<1x1xf32>
    %274 = arith.mulf %231, %8 : vector<1x8xf32>
    %cst_70 = arith.constant dense<0.000000e+00> : vector<1xf32>
    %275 = vector.multi_reduction <add>, %274, %cst_70 [1] : vector<1x8xf32> to vector<1xf32>
    %276 = vector.shape_cast %275 : vector<1xf32> to vector<1x1xf32>
    %cst_71 = arith.constant 0.000000e+00 : f32
    %277 = arith.subf %cst_71, %235 : f32
    %278 = vector.broadcast %277 : f32 to vector<1x8xf32>
    %279 = arith.mulf %278, %4 : vector<1x8xf32>
    %280 = vector.broadcast %273 : vector<1x1xf32> to vector<1x8xf32>
    %281 = arith.mulf %280, %12 : vector<1x8xf32>
    %282 = arith.addf %279, %281 : vector<1x8xf32>
    %283 = arith.addf %16, %20 : vector<1x8xf32>
    %284 = vector.broadcast %276 : vector<1x1xf32> to vector<1x8xf32>
    %285 = arith.mulf %284, %283 : vector<1x8xf32>
    %286 = arith.addf %282, %285 : vector<1x8xf32>
    %cst_72 = arith.constant 5.000000e+00 : f32
    %287 = vector.broadcast %cst_72 : f32 to vector<1x8xf32>
    %288 = arith.mulf %287, %286 : vector<1x8xf32>
    %289 = math.tanh %288 : vector<1x8xf32>
    %cst_73 = arith.constant 1.000000e+00 : f32
    %290 = vector.broadcast %cst_73 : f32 to vector<1x8xf32>
    %291 = arith.addf %289, %290 : vector<1x8xf32>
    %cst_74 = arith.constant 5.000000e-01 : f32
    %292 = vector.broadcast %cst_74 : f32 to vector<1x8xf32>
    %293 = arith.mulf %291, %292 : vector<1x8xf32>
    %294 = arith.mulf %270, %293 : vector<1x8xf32>
    %cst_75 = arith.constant 0.000000e+00 : f32
    %295 = vector.broadcast %cst_75 : f32 to vector<1x8xf32>
    %296 = arith.maximumf %294, %295 : vector<1x8xf32>
    %297 = arith.mulf %296, %4 : vector<1x8xf32>
    %cst_76 = arith.constant 0.000000e+00 : f32
    %298 = vector.broadcast %cst_76 : f32 to vector<1x8xf32>
    %299 = arith.maximumf %270, %298 : vector<1x8xf32>
    %300 = arith.mulf %299, %8 : vector<1x8xf32>
    %301 = arith.addf %297, %300 : vector<1x8xf32>
    %302 = arith.mulf %293, %270 : vector<1x8xf32>
    %cst_77 = arith.constant 0.000000e+00 : f32
    %303 = vector.broadcast %cst_77 : f32 to vector<1x8xf32>
    %304 = arith.maximumf %302, %303 : vector<1x8xf32>
    %305 = arith.mulf %304, %12 : vector<1x8xf32>
    %306 = arith.addf %301, %305 : vector<1x8xf32>
    %307 = arith.mulf %293, %266 : vector<1x8xf32>
    %308 = vector.broadcast %237 : f32 to vector<1x8xf32>
    %309 = arith.mulf %307, %308 : vector<1x8xf32>
    %310 = arith.mulf %309, %16 : vector<1x8xf32>
    %311 = arith.addf %306, %310 : vector<1x8xf32>
    %312 = arith.mulf %293, %266 : vector<1x8xf32>
    %313 = arith.mulf %312, %20 : vector<1x8xf32>
    %314 = arith.addf %311, %313 : vector<1x8xf32>
    %315 = arith.mulf %314, %21 : vector<1x8xf32>
    %cst_78 = arith.constant dense<0.000000e+00> : vector<1xf32>
    %316 = vector.multi_reduction <add>, %315, %cst_78 [1] : vector<1x8xf32> to vector<1xf32>
    %317 = vector.shape_cast %316 : vector<1xf32> to vector<1x1xf32>
    %318 = arith.mulf %314, %24 : vector<1x8xf32>
    %cst_79 = arith.constant dense<0.000000e+00> : vector<1xf32>
    %319 = vector.multi_reduction <add>, %318, %cst_79 [1] : vector<1x8xf32> to vector<1xf32>
    %320 = vector.shape_cast %319 : vector<1xf32> to vector<1x1xf32>
    %321 = vector.broadcast %317 : vector<1x1xf32> to vector<1x8xf32>
    %322 = arith.mulf %321, %4 : vector<1x8xf32>
    %323 = vector.broadcast %320 : vector<1x1xf32> to vector<1x8xf32>
    %324 = arith.mulf %323, %8 : vector<1x8xf32>
    %325 = arith.addf %322, %324 : vector<1x8xf32>
    %326 = vector.broadcast %244 : f32 to vector<1x8xf32>
    %327 = arith.mulf %326, %325 : vector<1x8xf32>
    %328 = arith.addf %231, %327 : vector<1x8xf32>
    %c3_i32_80 = arith.constant 3 : i32
    %c2_81 = arith.constant 2 : index
    %329 = arith.index_cast %c3_i32_80 : i32 to index
    %330 = memref.load %arg0[%c2_81, %329] : memref<6x16xf32, #tpu.memory_space<smem>>
    %c3_82 = arith.constant 3 : index
    %331 = arith.index_cast %c3_i32_80 : i32 to index
    %332 = memref.load %arg0[%c3_82, %331] : memref<6x16xf32, #tpu.memory_space<smem>>
    %c4_83 = arith.constant 4 : index
    %333 = arith.index_cast %c3_i32_80 : i32 to index
    %334 = memref.load %arg0[%c4_83, %333] : memref<6x16xf32, #tpu.memory_space<smem>>
    %c1_i32_84 = arith.constant 1 : i32
    %335 = arith.addi %c3_i32_80, %c1_i32_84 : i32
    %c15_i32_85 = arith.constant 15 : i32
    %336 = arith.minsi %335, %c15_i32_85 : i32
    %c5_86 = arith.constant 5 : index
    %337 = arith.index_cast %336 : i32 to index
    %338 = memref.load %arg0[%c5_86, %337] : memref<6x16xf32, #tpu.memory_space<smem>>
    %c5_87 = arith.constant 5 : index
    %339 = arith.index_cast %c3_i32_80 : i32 to index
    %340 = memref.load %arg0[%c5_87, %339] : memref<6x16xf32, #tpu.memory_space<smem>>
    %341 = arith.subf %338, %340 : f32
    %342 = vector.broadcast %330 : f32 to vector<1x8xf32>
    %343 = arith.mulf %342, %12 : vector<1x8xf32>
    %344 = arith.addf %328, %343 : vector<1x8xf32>
    %345 = vector.broadcast %332 : f32 to vector<1x8xf32>
    %346 = arith.mulf %345, %16 : vector<1x8xf32>
    %347 = arith.addf %344, %346 : vector<1x8xf32>
    %348 = vector.broadcast %334 : f32 to vector<1x8xf32>
    %349 = arith.mulf %348, %20 : vector<1x8xf32>
    %350 = arith.addf %347, %349 : vector<1x8xf32>
    %cst_88 = arith.constant dense<0.000000e+00> : vector<1x32xf32>
    %351 = tpu.matmul %350, %25, %cst_88 {dimension_numbers = #tpu.dot_dimension_numbers<[1], [0], [0], [1], [0, 0, 1, 1], [], []>} : vector<1x8xf32>, vector<8x32xf32>, vector<1x32xf32> -> vector<1x32xf32>
    %352 = arith.addf %351, %26 : vector<1x32xf32>
    %353 = math.tanh %352 : vector<1x32xf32>
    %cst_89 = arith.constant dense<0.000000e+00> : vector<1x32xf32>
    %354 = tpu.matmul %353, %27, %cst_89 {dimension_numbers = #tpu.dot_dimension_numbers<[1], [0], [0], [1], [0, 0, 1, 1], [], []>} : vector<1x32xf32>, vector<32x32xf32>, vector<1x32xf32> -> vector<1x32xf32>
    %355 = arith.addf %354, %28 : vector<1x32xf32>
    %356 = math.tanh %355 : vector<1x32xf32>
    %cst_90 = arith.constant dense<0.000000e+00> : vector<1x8xf32>
    %357 = tpu.matmul %356, %29, %cst_90 {dimension_numbers = #tpu.dot_dimension_numbers<[1], [0], [0], [1], [0, 0, 1, 1], [], []>} : vector<1x32xf32>, vector<32x8xf32>, vector<1x8xf32> -> vector<1x8xf32>
    %358 = arith.addf %357, %30 : vector<1x8xf32>
    %359 = arith.mulf %358, %20 : vector<1x8xf32>
    %360 = arith.addf %328, %359 : vector<1x8xf32>
    %361 = arith.index_cast %c3_i32_80 : i32 to index
    %c0_91 = arith.constant 0 : index
    %362 = vector.load %arg7[%361, %c0_91] : memref<16x8xf32, #tpu.memory_space<vmem>>, vector<1x8xf32>
    tpu.vector_store %arg7[%361, %c0_91], %360 {strides = array<i32>} : memref<16x8xf32, #tpu.memory_space<vmem>>, vector<1x8xf32>,
    %363 = math.exp %358 : vector<1x8xf32>
    %364 = tpu.reciprocal %363 {approx = true} : vector<1x8xf32> -> vector<1x8xf32>
    %365 = arith.subf %363, %364 : vector<1x8xf32>
    %cst_92 = arith.constant 5.000000e-01 : f32
    %366 = vector.broadcast %cst_92 : f32 to vector<1x8xf32>
    %367 = arith.mulf %366, %365 : vector<1x8xf32>
    %368 = arith.mulf %328, %4 : vector<1x8xf32>
    %cst_93 = arith.constant dense<0.000000e+00> : vector<1xf32>
    %369 = vector.multi_reduction <add>, %368, %cst_93 [1] : vector<1x8xf32> to vector<1xf32>
    %370 = vector.shape_cast %369 : vector<1xf32> to vector<1x1xf32>
    %371 = arith.mulf %328, %8 : vector<1x8xf32>
    %cst_94 = arith.constant dense<0.000000e+00> : vector<1xf32>
    %372 = vector.multi_reduction <add>, %371, %cst_94 [1] : vector<1x8xf32> to vector<1xf32>
    %373 = vector.shape_cast %372 : vector<1xf32> to vector<1x1xf32>
    %cst_95 = arith.constant 0.000000e+00 : f32
    %374 = arith.subf %cst_95, %332 : f32
    %375 = vector.broadcast %374 : f32 to vector<1x8xf32>
    %376 = arith.mulf %375, %4 : vector<1x8xf32>
    %377 = vector.broadcast %370 : vector<1x1xf32> to vector<1x8xf32>
    %378 = arith.mulf %377, %12 : vector<1x8xf32>
    %379 = arith.addf %376, %378 : vector<1x8xf32>
    %380 = arith.addf %16, %20 : vector<1x8xf32>
    %381 = vector.broadcast %373 : vector<1x1xf32> to vector<1x8xf32>
    %382 = arith.mulf %381, %380 : vector<1x8xf32>
    %383 = arith.addf %379, %382 : vector<1x8xf32>
    %cst_96 = arith.constant 5.000000e+00 : f32
    %384 = vector.broadcast %cst_96 : f32 to vector<1x8xf32>
    %385 = arith.mulf %384, %383 : vector<1x8xf32>
    %386 = math.tanh %385 : vector<1x8xf32>
    %cst_97 = arith.constant 1.000000e+00 : f32
    %387 = vector.broadcast %cst_97 : f32 to vector<1x8xf32>
    %388 = arith.addf %386, %387 : vector<1x8xf32>
    %cst_98 = arith.constant 5.000000e-01 : f32
    %389 = vector.broadcast %cst_98 : f32 to vector<1x8xf32>
    %390 = arith.mulf %388, %389 : vector<1x8xf32>
    %391 = arith.mulf %367, %390 : vector<1x8xf32>
    %cst_99 = arith.constant 0.000000e+00 : f32
    %392 = vector.broadcast %cst_99 : f32 to vector<1x8xf32>
    %393 = arith.maximumf %391, %392 : vector<1x8xf32>
    %394 = arith.mulf %393, %4 : vector<1x8xf32>
    %cst_100 = arith.constant 0.000000e+00 : f32
    %395 = vector.broadcast %cst_100 : f32 to vector<1x8xf32>
    %396 = arith.maximumf %367, %395 : vector<1x8xf32>
    %397 = arith.mulf %396, %8 : vector<1x8xf32>
    %398 = arith.addf %394, %397 : vector<1x8xf32>
    %399 = arith.mulf %390, %367 : vector<1x8xf32>
    %cst_101 = arith.constant 0.000000e+00 : f32
    %400 = vector.broadcast %cst_101 : f32 to vector<1x8xf32>
    %401 = arith.maximumf %399, %400 : vector<1x8xf32>
    %402 = arith.mulf %401, %12 : vector<1x8xf32>
    %403 = arith.addf %398, %402 : vector<1x8xf32>
    %404 = arith.mulf %390, %363 : vector<1x8xf32>
    %405 = vector.broadcast %334 : f32 to vector<1x8xf32>
    %406 = arith.mulf %404, %405 : vector<1x8xf32>
    %407 = arith.mulf %406, %16 : vector<1x8xf32>
    %408 = arith.addf %403, %407 : vector<1x8xf32>
    %409 = arith.mulf %390, %363 : vector<1x8xf32>
    %410 = arith.mulf %409, %20 : vector<1x8xf32>
    %411 = arith.addf %408, %410 : vector<1x8xf32>
    %412 = arith.mulf %411, %21 : vector<1x8xf32>
    %cst_102 = arith.constant dense<0.000000e+00> : vector<1xf32>
    %413 = vector.multi_reduction <add>, %412, %cst_102 [1] : vector<1x8xf32> to vector<1xf32>
    %414 = vector.shape_cast %413 : vector<1xf32> to vector<1x1xf32>
    %415 = arith.mulf %411, %24 : vector<1x8xf32>
    %cst_103 = arith.constant dense<0.000000e+00> : vector<1xf32>
    %416 = vector.multi_reduction <add>, %415, %cst_103 [1] : vector<1x8xf32> to vector<1xf32>
    %417 = vector.shape_cast %416 : vector<1xf32> to vector<1x1xf32>
    %418 = vector.broadcast %414 : vector<1x1xf32> to vector<1x8xf32>
    %419 = arith.mulf %418, %4 : vector<1x8xf32>
    %420 = vector.broadcast %417 : vector<1x1xf32> to vector<1x8xf32>
    %421 = arith.mulf %420, %8 : vector<1x8xf32>
    %422 = arith.addf %419, %421 : vector<1x8xf32>
    %423 = vector.broadcast %341 : f32 to vector<1x8xf32>
    %424 = arith.mulf %423, %422 : vector<1x8xf32>
    %425 = arith.addf %328, %424 : vector<1x8xf32>
    %c4_i32_104 = arith.constant 4 : i32
    %c2_105 = arith.constant 2 : index
    %426 = arith.index_cast %c4_i32_104 : i32 to index
    %427 = memref.load %arg0[%c2_105, %426] : memref<6x16xf32, #tpu.memory_space<smem>>
    %c3_106 = arith.constant 3 : index
    %428 = arith.index_cast %c4_i32_104 : i32 to index
    %429 = memref.load %arg0[%c3_106, %428] : memref<6x16xf32, #tpu.memory_space<smem>>
    %c4_107 = arith.constant 4 : index
    %430 = arith.index_cast %c4_i32_104 : i32 to index
    %431 = memref.load %arg0[%c4_107, %430] : memref<6x16xf32, #tpu.memory_space<smem>>
    %c1_i32_108 = arith.constant 1 : i32
    %432 = arith.addi %c4_i32_104, %c1_i32_108 : i32
    %c15_i32_109 = arith.constant 15 : i32
    %433 = arith.minsi %432, %c15_i32_109 : i32
    %c5_110 = arith.constant 5 : index
    %434 = arith.index_cast %433 : i32 to index
    %435 = memref.load %arg0[%c5_110, %434] : memref<6x16xf32, #tpu.memory_space<smem>>
    %c5_111 = arith.constant 5 : index
    %436 = arith.index_cast %c4_i32_104 : i32 to index
    %437 = memref.load %arg0[%c5_111, %436] : memref<6x16xf32, #tpu.memory_space<smem>>
    %438 = arith.subf %435, %437 : f32
    %439 = vector.broadcast %427 : f32 to vector<1x8xf32>
    %440 = arith.mulf %439, %12 : vector<1x8xf32>
    %441 = arith.addf %425, %440 : vector<1x8xf32>
    %442 = vector.broadcast %429 : f32 to vector<1x8xf32>
    %443 = arith.mulf %442, %16 : vector<1x8xf32>
    %444 = arith.addf %441, %443 : vector<1x8xf32>
    %445 = vector.broadcast %431 : f32 to vector<1x8xf32>
    %446 = arith.mulf %445, %20 : vector<1x8xf32>
    %447 = arith.addf %444, %446 : vector<1x8xf32>
    %cst_112 = arith.constant dense<0.000000e+00> : vector<1x32xf32>
    %448 = tpu.matmul %447, %25, %cst_112 {dimension_numbers = #tpu.dot_dimension_numbers<[1], [0], [0], [1], [0, 0, 1, 1], [], []>} : vector<1x8xf32>, vector<8x32xf32>, vector<1x32xf32> -> vector<1x32xf32>
    %449 = arith.addf %448, %26 : vector<1x32xf32>
    %450 = math.tanh %449 : vector<1x32xf32>
    %cst_113 = arith.constant dense<0.000000e+00> : vector<1x32xf32>
    %451 = tpu.matmul %450, %27, %cst_113 {dimension_numbers = #tpu.dot_dimension_numbers<[1], [0], [0], [1], [0, 0, 1, 1], [], []>} : vector<1x32xf32>, vector<32x32xf32>, vector<1x32xf32> -> vector<1x32xf32>
    %452 = arith.addf %451, %28 : vector<1x32xf32>
    %453 = math.tanh %452 : vector<1x32xf32>
    %cst_114 = arith.constant dense<0.000000e+00> : vector<1x8xf32>
    %454 = tpu.matmul %453, %29, %cst_114 {dimension_numbers = #tpu.dot_dimension_numbers<[1], [0], [0], [1], [0, 0, 1, 1], [], []>} : vector<1x32xf32>, vector<32x8xf32>, vector<1x8xf32> -> vector<1x8xf32>
    %455 = arith.addf %454, %30 : vector<1x8xf32>
    %456 = arith.mulf %455, %20 : vector<1x8xf32>
    %457 = arith.addf %425, %456 : vector<1x8xf32>
    %458 = arith.index_cast %c4_i32_104 : i32 to index
    %c0_115 = arith.constant 0 : index
    %459 = vector.load %arg7[%458, %c0_115] : memref<16x8xf32, #tpu.memory_space<vmem>>, vector<1x8xf32>
    tpu.vector_store %arg7[%458, %c0_115], %457 {strides = array<i32>} : memref<16x8xf32, #tpu.memory_space<vmem>>, vector<1x8xf32>,
    %460 = math.exp %455 : vector<1x8xf32>
    %461 = tpu.reciprocal %460 {approx = true} : vector<1x8xf32> -> vector<1x8xf32>
    %462 = arith.subf %460, %461 : vector<1x8xf32>
    %cst_116 = arith.constant 5.000000e-01 : f32
    %463 = vector.broadcast %cst_116 : f32 to vector<1x8xf32>
    %464 = arith.mulf %463, %462 : vector<1x8xf32>
    %465 = arith.mulf %425, %4 : vector<1x8xf32>
    %cst_117 = arith.constant dense<0.000000e+00> : vector<1xf32>
    %466 = vector.multi_reduction <add>, %465, %cst_117 [1] : vector<1x8xf32> to vector<1xf32>
    %467 = vector.shape_cast %466 : vector<1xf32> to vector<1x1xf32>
    %468 = arith.mulf %425, %8 : vector<1x8xf32>
    %cst_118 = arith.constant dense<0.000000e+00> : vector<1xf32>
    %469 = vector.multi_reduction <add>, %468, %cst_118 [1] : vector<1x8xf32> to vector<1xf32>
    %470 = vector.shape_cast %469 : vector<1xf32> to vector<1x1xf32>
    %cst_119 = arith.constant 0.000000e+00 : f32
    %471 = arith.subf %cst_119, %429 : f32
    %472 = vector.broadcast %471 : f32 to vector<1x8xf32>
    %473 = arith.mulf %472, %4 : vector<1x8xf32>
    %474 = vector.broadcast %467 : vector<1x1xf32> to vector<1x8xf32>
    %475 = arith.mulf %474, %12 : vector<1x8xf32>
    %476 = arith.addf %473, %475 : vector<1x8xf32>
    %477 = arith.addf %16, %20 : vector<1x8xf32>
    %478 = vector.broadcast %470 : vector<1x1xf32> to vector<1x8xf32>
    %479 = arith.mulf %478, %477 : vector<1x8xf32>
    %480 = arith.addf %476, %479 : vector<1x8xf32>
    %cst_120 = arith.constant 5.000000e+00 : f32
    %481 = vector.broadcast %cst_120 : f32 to vector<1x8xf32>
    %482 = arith.mulf %481, %480 : vector<1x8xf32>
    %483 = math.tanh %482 : vector<1x8xf32>
    %cst_121 = arith.constant 1.000000e+00 : f32
    %484 = vector.broadcast %cst_121 : f32 to vector<1x8xf32>
    %485 = arith.addf %483, %484 : vector<1x8xf32>
    %cst_122 = arith.constant 5.000000e-01 : f32
    %486 = vector.broadcast %cst_122 : f32 to vector<1x8xf32>
    %487 = arith.mulf %485, %486 : vector<1x8xf32>
    %488 = arith.mulf %464, %487 : vector<1x8xf32>
    %cst_123 = arith.constant 0.000000e+00 : f32
    %489 = vector.broadcast %cst_123 : f32 to vector<1x8xf32>
    %490 = arith.maximumf %488, %489 : vector<1x8xf32>
    %491 = arith.mulf %490, %4 : vector<1x8xf32>
    %cst_124 = arith.constant 0.000000e+00 : f32
    %492 = vector.broadcast %cst_124 : f32 to vector<1x8xf32>
    %493 = arith.maximumf %464, %492 : vector<1x8xf32>
    %494 = arith.mulf %493, %8 : vector<1x8xf32>
    %495 = arith.addf %491, %494 : vector<1x8xf32>
    %496 = arith.mulf %487, %464 : vector<1x8xf32>
    %cst_125 = arith.constant 0.000000e+00 : f32
    %497 = vector.broadcast %cst_125 : f32 to vector<1x8xf32>
    %498 = arith.maximumf %496, %497 : vector<1x8xf32>
    %499 = arith.mulf %498, %12 : vector<1x8xf32>
    %500 = arith.addf %495, %499 : vector<1x8xf32>
    %501 = arith.mulf %487, %460 : vector<1x8xf32>
    %502 = vector.broadcast %431 : f32 to vector<1x8xf32>
    %503 = arith.mulf %501, %502 : vector<1x8xf32>
    %504 = arith.mulf %503, %16 : vector<1x8xf32>
    %505 = arith.addf %500, %504 : vector<1x8xf32>
    %506 = arith.mulf %487, %460 : vector<1x8xf32>
    %507 = arith.mulf %506, %20 : vector<1x8xf32>
    %508 = arith.addf %505, %507 : vector<1x8xf32>
    %509 = arith.mulf %508, %21 : vector<1x8xf32>
    %cst_126 = arith.constant dense<0.000000e+00> : vector<1xf32>
    %510 = vector.multi_reduction <add>, %509, %cst_126 [1] : vector<1x8xf32> to vector<1xf32>
    %511 = vector.shape_cast %510 : vector<1xf32> to vector<1x1xf32>
    %512 = arith.mulf %508, %24 : vector<1x8xf32>
    %cst_127 = arith.constant dense<0.000000e+00> : vector<1xf32>
    %513 = vector.multi_reduction <add>, %512, %cst_127 [1] : vector<1x8xf32> to vector<1xf32>
    %514 = vector.shape_cast %513 : vector<1xf32> to vector<1x1xf32>
    %515 = vector.broadcast %511 : vector<1x1xf32> to vector<1x8xf32>
    %516 = arith.mulf %515, %4 : vector<1x8xf32>
    %517 = vector.broadcast %514 : vector<1x1xf32> to vector<1x8xf32>
    %518 = arith.mulf %517, %8 : vector<1x8xf32>
    %519 = arith.addf %516, %518 : vector<1x8xf32>
    %520 = vector.broadcast %438 : f32 to vector<1x8xf32>
    %521 = arith.mulf %520, %519 : vector<1x8xf32>
    %522 = arith.addf %425, %521 : vector<1x8xf32>
    %c5_i32 = arith.constant 5 : i32
    %c2_128 = arith.constant 2 : index
    %523 = arith.index_cast %c5_i32 : i32 to index
    %524 = memref.load %arg0[%c2_128, %523] : memref<6x16xf32, #tpu.memory_space<smem>>
    %c3_129 = arith.constant 3 : index
    %525 = arith.index_cast %c5_i32 : i32 to index
    %526 = memref.load %arg0[%c3_129, %525] : memref<6x16xf32, #tpu.memory_space<smem>>
    %c4_130 = arith.constant 4 : index
    %527 = arith.index_cast %c5_i32 : i32 to index
    %528 = memref.load %arg0[%c4_130, %527] : memref<6x16xf32, #tpu.memory_space<smem>>
    %c1_i32_131 = arith.constant 1 : i32
    %529 = arith.addi %c5_i32, %c1_i32_131 : i32
    %c15_i32_132 = arith.constant 15 : i32
    %530 = arith.minsi %529, %c15_i32_132 : i32
    %c5_133 = arith.constant 5 : index
    %531 = arith.index_cast %530 : i32 to index
    %532 = memref.load %arg0[%c5_133, %531] : memref<6x16xf32, #tpu.memory_space<smem>>
    %c5_134 = arith.constant 5 : index
    %533 = arith.index_cast %c5_i32 : i32 to index
    %534 = memref.load %arg0[%c5_134, %533] : memref<6x16xf32, #tpu.memory_space<smem>>
    %535 = arith.subf %532, %534 : f32
    %536 = vector.broadcast %524 : f32 to vector<1x8xf32>
    %537 = arith.mulf %536, %12 : vector<1x8xf32>
    %538 = arith.addf %522, %537 : vector<1x8xf32>
    %539 = vector.broadcast %526 : f32 to vector<1x8xf32>
    %540 = arith.mulf %539, %16 : vector<1x8xf32>
    %541 = arith.addf %538, %540 : vector<1x8xf32>
    %542 = vector.broadcast %528 : f32 to vector<1x8xf32>
    %543 = arith.mulf %542, %20 : vector<1x8xf32>
    %544 = arith.addf %541, %543 : vector<1x8xf32>
    %cst_135 = arith.constant dense<0.000000e+00> : vector<1x32xf32>
    %545 = tpu.matmul %544, %25, %cst_135 {dimension_numbers = #tpu.dot_dimension_numbers<[1], [0], [0], [1], [0, 0, 1, 1], [], []>} : vector<1x8xf32>, vector<8x32xf32>, vector<1x32xf32> -> vector<1x32xf32>
    %546 = arith.addf %545, %26 : vector<1x32xf32>
    %547 = math.tanh %546 : vector<1x32xf32>
    %cst_136 = arith.constant dense<0.000000e+00> : vector<1x32xf32>
    %548 = tpu.matmul %547, %27, %cst_136 {dimension_numbers = #tpu.dot_dimension_numbers<[1], [0], [0], [1], [0, 0, 1, 1], [], []>} : vector<1x32xf32>, vector<32x32xf32>, vector<1x32xf32> -> vector<1x32xf32>
    %549 = arith.addf %548, %28 : vector<1x32xf32>
    %550 = math.tanh %549 : vector<1x32xf32>
    %cst_137 = arith.constant dense<0.000000e+00> : vector<1x8xf32>
    %551 = tpu.matmul %550, %29, %cst_137 {dimension_numbers = #tpu.dot_dimension_numbers<[1], [0], [0], [1], [0, 0, 1, 1], [], []>} : vector<1x32xf32>, vector<32x8xf32>, vector<1x8xf32> -> vector<1x8xf32>
    %552 = arith.addf %551, %30 : vector<1x8xf32>
    %553 = arith.mulf %552, %20 : vector<1x8xf32>
    %554 = arith.addf %522, %553 : vector<1x8xf32>
    %555 = arith.index_cast %c5_i32 : i32 to index
    %c0_138 = arith.constant 0 : index
    %556 = vector.load %arg7[%555, %c0_138] : memref<16x8xf32, #tpu.memory_space<vmem>>, vector<1x8xf32>
    tpu.vector_store %arg7[%555, %c0_138], %554 {strides = array<i32>} : memref<16x8xf32, #tpu.memory_space<vmem>>, vector<1x8xf32>,
    %557 = math.exp %552 : vector<1x8xf32>
    %558 = tpu.reciprocal %557 {approx = true} : vector<1x8xf32> -> vector<1x8xf32>
    %559 = arith.subf %557, %558 : vector<1x8xf32>
    %cst_139 = arith.constant 5.000000e-01 : f32
    %560 = vector.broadcast %cst_139 : f32 to vector<1x8xf32>
    %561 = arith.mulf %560, %559 : vector<1x8xf32>
    %562 = arith.mulf %522, %4 : vector<1x8xf32>
    %cst_140 = arith.constant dense<0.000000e+00> : vector<1xf32>
    %563 = vector.multi_reduction <add>, %562, %cst_140 [1] : vector<1x8xf32> to vector<1xf32>
    %564 = vector.shape_cast %563 : vector<1xf32> to vector<1x1xf32>
    %565 = arith.mulf %522, %8 : vector<1x8xf32>
    %cst_141 = arith.constant dense<0.000000e+00> : vector<1xf32>
    %566 = vector.multi_reduction <add>, %565, %cst_141 [1] : vector<1x8xf32> to vector<1xf32>
    %567 = vector.shape_cast %566 : vector<1xf32> to vector<1x1xf32>
    %cst_142 = arith.constant 0.000000e+00 : f32
    %568 = arith.subf %cst_142, %526 : f32
    %569 = vector.broadcast %568 : f32 to vector<1x8xf32>
    %570 = arith.mulf %569, %4 : vector<1x8xf32>
    %571 = vector.broadcast %564 : vector<1x1xf32> to vector<1x8xf32>
    %572 = arith.mulf %571, %12 : vector<1x8xf32>
    %573 = arith.addf %570, %572 : vector<1x8xf32>
    %574 = arith.addf %16, %20 : vector<1x8xf32>
    %575 = vector.broadcast %567 : vector<1x1xf32> to vector<1x8xf32>
    %576 = arith.mulf %575, %574 : vector<1x8xf32>
    %577 = arith.addf %573, %576 : vector<1x8xf32>
    %cst_143 = arith.constant 5.000000e+00 : f32
    %578 = vector.broadcast %cst_143 : f32 to vector<1x8xf32>
    %579 = arith.mulf %578, %577 : vector<1x8xf32>
    %580 = math.tanh %579 : vector<1x8xf32>
    %cst_144 = arith.constant 1.000000e+00 : f32
    %581 = vector.broadcast %cst_144 : f32 to vector<1x8xf32>
    %582 = arith.addf %580, %581 : vector<1x8xf32>
    %cst_145 = arith.constant 5.000000e-01 : f32
    %583 = vector.broadcast %cst_145 : f32 to vector<1x8xf32>
    %584 = arith.mulf %582, %583 : vector<1x8xf32>
    %585 = arith.mulf %561, %584 : vector<1x8xf32>
    %cst_146 = arith.constant 0.000000e+00 : f32
    %586 = vector.broadcast %cst_146 : f32 to vector<1x8xf32>
    %587 = arith.maximumf %585, %586 : vector<1x8xf32>
    %588 = arith.mulf %587, %4 : vector<1x8xf32>
    %cst_147 = arith.constant 0.000000e+00 : f32
    %589 = vector.broadcast %cst_147 : f32 to vector<1x8xf32>
    %590 = arith.maximumf %561, %589 : vector<1x8xf32>
    %591 = arith.mulf %590, %8 : vector<1x8xf32>
    %592 = arith.addf %588, %591 : vector<1x8xf32>
    %593 = arith.mulf %584, %561 : vector<1x8xf32>
    %cst_148 = arith.constant 0.000000e+00 : f32
    %594 = vector.broadcast %cst_148 : f32 to vector<1x8xf32>
    %595 = arith.maximumf %593, %594 : vector<1x8xf32>
    %596 = arith.mulf %595, %12 : vector<1x8xf32>
    %597 = arith.addf %592, %596 : vector<1x8xf32>
    %598 = arith.mulf %584, %557 : vector<1x8xf32>
    %599 = vector.broadcast %528 : f32 to vector<1x8xf32>
    %600 = arith.mulf %598, %599 : vector<1x8xf32>
    %601 = arith.mulf %600, %16 : vector<1x8xf32>
    %602 = arith.addf %597, %601 : vector<1x8xf32>
    %603 = arith.mulf %584, %557 : vector<1x8xf32>
    %604 = arith.mulf %603, %20 : vector<1x8xf32>
    %605 = arith.addf %602, %604 : vector<1x8xf32>
    %606 = arith.mulf %605, %21 : vector<1x8xf32>
    %cst_149 = arith.constant dense<0.000000e+00> : vector<1xf32>
    %607 = vector.multi_reduction <add>, %606, %cst_149 [1] : vector<1x8xf32> to vector<1xf32>
    %608 = vector.shape_cast %607 : vector<1xf32> to vector<1x1xf32>
    %609 = arith.mulf %605, %24 : vector<1x8xf32>
    %cst_150 = arith.constant dense<0.000000e+00> : vector<1xf32>
    %610 = vector.multi_reduction <add>, %609, %cst_150 [1] : vector<1x8xf32> to vector<1xf32>
    %611 = vector.shape_cast %610 : vector<1xf32> to vector<1x1xf32>
    %612 = vector.broadcast %608 : vector<1x1xf32> to vector<1x8xf32>
    %613 = arith.mulf %612, %4 : vector<1x8xf32>
    %614 = vector.broadcast %611 : vector<1x1xf32> to vector<1x8xf32>
    %615 = arith.mulf %614, %8 : vector<1x8xf32>
    %616 = arith.addf %613, %615 : vector<1x8xf32>
    %617 = vector.broadcast %535 : f32 to vector<1x8xf32>
    %618 = arith.mulf %617, %616 : vector<1x8xf32>
    %619 = arith.addf %522, %618 : vector<1x8xf32>
    %c6_i32 = arith.constant 6 : i32
    %c2_151 = arith.constant 2 : index
    %620 = arith.index_cast %c6_i32 : i32 to index
    %621 = memref.load %arg0[%c2_151, %620] : memref<6x16xf32, #tpu.memory_space<smem>>
    %c3_152 = arith.constant 3 : index
    %622 = arith.index_cast %c6_i32 : i32 to index
    %623 = memref.load %arg0[%c3_152, %622] : memref<6x16xf32, #tpu.memory_space<smem>>
    %c4_153 = arith.constant 4 : index
    %624 = arith.index_cast %c6_i32 : i32 to index
    %625 = memref.load %arg0[%c4_153, %624] : memref<6x16xf32, #tpu.memory_space<smem>>
    %c1_i32_154 = arith.constant 1 : i32
    %626 = arith.addi %c6_i32, %c1_i32_154 : i32
    %c15_i32_155 = arith.constant 15 : i32
    %627 = arith.minsi %626, %c15_i32_155 : i32
    %c5_156 = arith.constant 5 : index
    %628 = arith.index_cast %627 : i32 to index
    %629 = memref.load %arg0[%c5_156, %628] : memref<6x16xf32, #tpu.memory_space<smem>>
    %c5_157 = arith.constant 5 : index
    %630 = arith.index_cast %c6_i32 : i32 to index
    %631 = memref.load %arg0[%c5_157, %630] : memref<6x16xf32, #tpu.memory_space<smem>>
    %632 = arith.subf %629, %631 : f32
    %633 = vector.broadcast %621 : f32 to vector<1x8xf32>
    %634 = arith.mulf %633, %12 : vector<1x8xf32>
    %635 = arith.addf %619, %634 : vector<1x8xf32>
    %636 = vector.broadcast %623 : f32 to vector<1x8xf32>
    %637 = arith.mulf %636, %16 : vector<1x8xf32>
    %638 = arith.addf %635, %637 : vector<1x8xf32>
    %639 = vector.broadcast %625 : f32 to vector<1x8xf32>
    %640 = arith.mulf %639, %20 : vector<1x8xf32>
    %641 = arith.addf %638, %640 : vector<1x8xf32>
    %cst_158 = arith.constant dense<0.000000e+00> : vector<1x32xf32>
    %642 = tpu.matmul %641, %25, %cst_158 {dimension_numbers = #tpu.dot_dimension_numbers<[1], [0], [0], [1], [0, 0, 1, 1], [], []>} : vector<1x8xf32>, vector<8x32xf32>, vector<1x32xf32> -> vector<1x32xf32>
    %643 = arith.addf %642, %26 : vector<1x32xf32>
    %644 = math.tanh %643 : vector<1x32xf32>
    %cst_159 = arith.constant dense<0.000000e+00> : vector<1x32xf32>
    %645 = tpu.matmul %644, %27, %cst_159 {dimension_numbers = #tpu.dot_dimension_numbers<[1], [0], [0], [1], [0, 0, 1, 1], [], []>} : vector<1x32xf32>, vector<32x32xf32>, vector<1x32xf32> -> vector<1x32xf32>
    %646 = arith.addf %645, %28 : vector<1x32xf32>
    %647 = math.tanh %646 : vector<1x32xf32>
    %cst_160 = arith.constant dense<0.000000e+00> : vector<1x8xf32>
    %648 = tpu.matmul %647, %29, %cst_160 {dimension_numbers = #tpu.dot_dimension_numbers<[1], [0], [0], [1], [0, 0, 1, 1], [], []>} : vector<1x32xf32>, vector<32x8xf32>, vector<1x8xf32> -> vector<1x8xf32>
    %649 = arith.addf %648, %30 : vector<1x8xf32>
    %650 = arith.mulf %649, %20 : vector<1x8xf32>
    %651 = arith.addf %619, %650 : vector<1x8xf32>
    %652 = arith.index_cast %c6_i32 : i32 to index
    %c0_161 = arith.constant 0 : index
    %653 = vector.load %arg7[%652, %c0_161] : memref<16x8xf32, #tpu.memory_space<vmem>>, vector<1x8xf32>
    tpu.vector_store %arg7[%652, %c0_161], %651 {strides = array<i32>} : memref<16x8xf32, #tpu.memory_space<vmem>>, vector<1x8xf32>,
    %654 = math.exp %649 : vector<1x8xf32>
    %655 = tpu.reciprocal %654 {approx = true} : vector<1x8xf32> -> vector<1x8xf32>
    %656 = arith.subf %654, %655 : vector<1x8xf32>
    %cst_162 = arith.constant 5.000000e-01 : f32
    %657 = vector.broadcast %cst_162 : f32 to vector<1x8xf32>
    %658 = arith.mulf %657, %656 : vector<1x8xf32>
    %659 = arith.mulf %619, %4 : vector<1x8xf32>
    %cst_163 = arith.constant dense<0.000000e+00> : vector<1xf32>
    %660 = vector.multi_reduction <add>, %659, %cst_163 [1] : vector<1x8xf32> to vector<1xf32>
    %661 = vector.shape_cast %660 : vector<1xf32> to vector<1x1xf32>
    %662 = arith.mulf %619, %8 : vector<1x8xf32>
    %cst_164 = arith.constant dense<0.000000e+00> : vector<1xf32>
    %663 = vector.multi_reduction <add>, %662, %cst_164 [1] : vector<1x8xf32> to vector<1xf32>
    %664 = vector.shape_cast %663 : vector<1xf32> to vector<1x1xf32>
    %cst_165 = arith.constant 0.000000e+00 : f32
    %665 = arith.subf %cst_165, %623 : f32
    %666 = vector.broadcast %665 : f32 to vector<1x8xf32>
    %667 = arith.mulf %666, %4 : vector<1x8xf32>
    %668 = vector.broadcast %661 : vector<1x1xf32> to vector<1x8xf32>
    %669 = arith.mulf %668, %12 : vector<1x8xf32>
    %670 = arith.addf %667, %669 : vector<1x8xf32>
    %671 = arith.addf %16, %20 : vector<1x8xf32>
    %672 = vector.broadcast %664 : vector<1x1xf32> to vector<1x8xf32>
    %673 = arith.mulf %672, %671 : vector<1x8xf32>
    %674 = arith.addf %670, %673 : vector<1x8xf32>
    %cst_166 = arith.constant 5.000000e+00 : f32
    %675 = vector.broadcast %cst_166 : f32 to vector<1x8xf32>
    %676 = arith.mulf %675, %674 : vector<1x8xf32>
    %677 = math.tanh %676 : vector<1x8xf32>
    %cst_167 = arith.constant 1.000000e+00 : f32
    %678 = vector.broadcast %cst_167 : f32 to vector<1x8xf32>
    %679 = arith.addf %677, %678 : vector<1x8xf32>
    %cst_168 = arith.constant 5.000000e-01 : f32
    %680 = vector.broadcast %cst_168 : f32 to vector<1x8xf32>
    %681 = arith.mulf %679, %680 : vector<1x8xf32>
    %682 = arith.mulf %658, %681 : vector<1x8xf32>
    %cst_169 = arith.constant 0.000000e+00 : f32
    %683 = vector.broadcast %cst_169 : f32 to vector<1x8xf32>
    %684 = arith.maximumf %682, %683 : vector<1x8xf32>
    %685 = arith.mulf %684, %4 : vector<1x8xf32>
    %cst_170 = arith.constant 0.000000e+00 : f32
    %686 = vector.broadcast %cst_170 : f32 to vector<1x8xf32>
    %687 = arith.maximumf %658, %686 : vector<1x8xf32>
    %688 = arith.mulf %687, %8 : vector<1x8xf32>
    %689 = arith.addf %685, %688 : vector<1x8xf32>
    %690 = arith.mulf %681, %658 : vector<1x8xf32>
    %cst_171 = arith.constant 0.000000e+00 : f32
    %691 = vector.broadcast %cst_171 : f32 to vector<1x8xf32>
    %692 = arith.maximumf %690, %691 : vector<1x8xf32>
    %693 = arith.mulf %692, %12 : vector<1x8xf32>
    %694 = arith.addf %689, %693 : vector<1x8xf32>
    %695 = arith.mulf %681, %654 : vector<1x8xf32>
    %696 = vector.broadcast %625 : f32 to vector<1x8xf32>
    %697 = arith.mulf %695, %696 : vector<1x8xf32>
    %698 = arith.mulf %697, %16 : vector<1x8xf32>
    %699 = arith.addf %694, %698 : vector<1x8xf32>
    %700 = arith.mulf %681, %654 : vector<1x8xf32>
    %701 = arith.mulf %700, %20 : vector<1x8xf32>
    %702 = arith.addf %699, %701 : vector<1x8xf32>
    %703 = arith.mulf %702, %21 : vector<1x8xf32>
    %cst_172 = arith.constant dense<0.000000e+00> : vector<1xf32>
    %704 = vector.multi_reduction <add>, %703, %cst_172 [1] : vector<1x8xf32> to vector<1xf32>
    %705 = vector.shape_cast %704 : vector<1xf32> to vector<1x1xf32>
    %706 = arith.mulf %702, %24 : vector<1x8xf32>
    %cst_173 = arith.constant dense<0.000000e+00> : vector<1xf32>
    %707 = vector.multi_reduction <add>, %706, %cst_173 [1] : vector<1x8xf32> to vector<1xf32>
    %708 = vector.shape_cast %707 : vector<1xf32> to vector<1x1xf32>
    %709 = vector.broadcast %705 : vector<1x1xf32> to vector<1x8xf32>
    %710 = arith.mulf %709, %4 : vector<1x8xf32>
    %711 = vector.broadcast %708 : vector<1x1xf32> to vector<1x8xf32>
    %712 = arith.mulf %711, %8 : vector<1x8xf32>
    %713 = arith.addf %710, %712 : vector<1x8xf32>
    %714 = vector.broadcast %632 : f32 to vector<1x8xf32>
    %715 = arith.mulf %714, %713 : vector<1x8xf32>
    %716 = arith.addf %619, %715 : vector<1x8xf32>
    %c7_i32 = arith.constant 7 : i32
    %c2_174 = arith.constant 2 : index
    %717 = arith.index_cast %c7_i32 : i32 to index
    %718 = memref.load %arg0[%c2_174, %717] : memref<6x16xf32, #tpu.memory_space<smem>>
    %c3_175 = arith.constant 3 : index
    %719 = arith.index_cast %c7_i32 : i32 to index
    %720 = memref.load %arg0[%c3_175, %719] : memref<6x16xf32, #tpu.memory_space<smem>>
    %c4_176 = arith.constant 4 : index
    %721 = arith.index_cast %c7_i32 : i32 to index
    %722 = memref.load %arg0[%c4_176, %721] : memref<6x16xf32, #tpu.memory_space<smem>>
    %c1_i32_177 = arith.constant 1 : i32
    %723 = arith.addi %c7_i32, %c1_i32_177 : i32
    %c15_i32_178 = arith.constant 15 : i32
    %724 = arith.minsi %723, %c15_i32_178 : i32
    %c5_179 = arith.constant 5 : index
    %725 = arith.index_cast %724 : i32 to index
    %726 = memref.load %arg0[%c5_179, %725] : memref<6x16xf32, #tpu.memory_space<smem>>
    %c5_180 = arith.constant 5 : index
    %727 = arith.index_cast %c7_i32 : i32 to index
    %728 = memref.load %arg0[%c5_180, %727] : memref<6x16xf32, #tpu.memory_space<smem>>
    %729 = arith.subf %726, %728 : f32
    %730 = vector.broadcast %718 : f32 to vector<1x8xf32>
    %731 = arith.mulf %730, %12 : vector<1x8xf32>
    %732 = arith.addf %716, %731 : vector<1x8xf32>
    %733 = vector.broadcast %720 : f32 to vector<1x8xf32>
    %734 = arith.mulf %733, %16 : vector<1x8xf32>
    %735 = arith.addf %732, %734 : vector<1x8xf32>
    %736 = vector.broadcast %722 : f32 to vector<1x8xf32>
    %737 = arith.mulf %736, %20 : vector<1x8xf32>
    %738 = arith.addf %735, %737 : vector<1x8xf32>
    %cst_181 = arith.constant dense<0.000000e+00> : vector<1x32xf32>
    %739 = tpu.matmul %738, %25, %cst_181 {dimension_numbers = #tpu.dot_dimension_numbers<[1], [0], [0], [1], [0, 0, 1, 1], [], []>} : vector<1x8xf32>, vector<8x32xf32>, vector<1x32xf32> -> vector<1x32xf32>
    %740 = arith.addf %739, %26 : vector<1x32xf32>
    %741 = math.tanh %740 : vector<1x32xf32>
    %cst_182 = arith.constant dense<0.000000e+00> : vector<1x32xf32>
    %742 = tpu.matmul %741, %27, %cst_182 {dimension_numbers = #tpu.dot_dimension_numbers<[1], [0], [0], [1], [0, 0, 1, 1], [], []>} : vector<1x32xf32>, vector<32x32xf32>, vector<1x32xf32> -> vector<1x32xf32>
    %743 = arith.addf %742, %28 : vector<1x32xf32>
    %744 = math.tanh %743 : vector<1x32xf32>
    %cst_183 = arith.constant dense<0.000000e+00> : vector<1x8xf32>
    %745 = tpu.matmul %744, %29, %cst_183 {dimension_numbers = #tpu.dot_dimension_numbers<[1], [0], [0], [1], [0, 0, 1, 1], [], []>} : vector<1x32xf32>, vector<32x8xf32>, vector<1x8xf32> -> vector<1x8xf32>
    %746 = arith.addf %745, %30 : vector<1x8xf32>
    %747 = arith.mulf %746, %20 : vector<1x8xf32>
    %748 = arith.addf %716, %747 : vector<1x8xf32>
    %749 = arith.index_cast %c7_i32 : i32 to index
    %c0_184 = arith.constant 0 : index
    %750 = vector.load %arg7[%749, %c0_184] : memref<16x8xf32, #tpu.memory_space<vmem>>, vector<1x8xf32>
    tpu.vector_store %arg7[%749, %c0_184], %748 {strides = array<i32>} : memref<16x8xf32, #tpu.memory_space<vmem>>, vector<1x8xf32>,
    %751 = math.exp %746 : vector<1x8xf32>
    %752 = tpu.reciprocal %751 {approx = true} : vector<1x8xf32> -> vector<1x8xf32>
    %753 = arith.subf %751, %752 : vector<1x8xf32>
    %cst_185 = arith.constant 5.000000e-01 : f32
    %754 = vector.broadcast %cst_185 : f32 to vector<1x8xf32>
    %755 = arith.mulf %754, %753 : vector<1x8xf32>
    %756 = arith.mulf %716, %4 : vector<1x8xf32>
    %cst_186 = arith.constant dense<0.000000e+00> : vector<1xf32>
    %757 = vector.multi_reduction <add>, %756, %cst_186 [1] : vector<1x8xf32> to vector<1xf32>
    %758 = vector.shape_cast %757 : vector<1xf32> to vector<1x1xf32>
    %759 = arith.mulf %716, %8 : vector<1x8xf32>
    %cst_187 = arith.constant dense<0.000000e+00> : vector<1xf32>
    %760 = vector.multi_reduction <add>, %759, %cst_187 [1] : vector<1x8xf32> to vector<1xf32>
    %761 = vector.shape_cast %760 : vector<1xf32> to vector<1x1xf32>
    %cst_188 = arith.constant 0.000000e+00 : f32
    %762 = arith.subf %cst_188, %720 : f32
    %763 = vector.broadcast %762 : f32 to vector<1x8xf32>
    %764 = arith.mulf %763, %4 : vector<1x8xf32>
    %765 = vector.broadcast %758 : vector<1x1xf32> to vector<1x8xf32>
    %766 = arith.mulf %765, %12 : vector<1x8xf32>
    %767 = arith.addf %764, %766 : vector<1x8xf32>
    %768 = arith.addf %16, %20 : vector<1x8xf32>
    %769 = vector.broadcast %761 : vector<1x1xf32> to vector<1x8xf32>
    %770 = arith.mulf %769, %768 : vector<1x8xf32>
    %771 = arith.addf %767, %770 : vector<1x8xf32>
    %cst_189 = arith.constant 5.000000e+00 : f32
    %772 = vector.broadcast %cst_189 : f32 to vector<1x8xf32>
    %773 = arith.mulf %772, %771 : vector<1x8xf32>
    %774 = math.tanh %773 : vector<1x8xf32>
    %cst_190 = arith.constant 1.000000e+00 : f32
    %775 = vector.broadcast %cst_190 : f32 to vector<1x8xf32>
    %776 = arith.addf %774, %775 : vector<1x8xf32>
    %cst_191 = arith.constant 5.000000e-01 : f32
    %777 = vector.broadcast %cst_191 : f32 to vector<1x8xf32>
    %778 = arith.mulf %776, %777 : vector<1x8xf32>
    %779 = arith.mulf %755, %778 : vector<1x8xf32>
    %cst_192 = arith.constant 0.000000e+00 : f32
    %780 = vector.broadcast %cst_192 : f32 to vector<1x8xf32>
    %781 = arith.maximumf %779, %780 : vector<1x8xf32>
    %782 = arith.mulf %781, %4 : vector<1x8xf32>
    %cst_193 = arith.constant 0.000000e+00 : f32
    %783 = vector.broadcast %cst_193 : f32 to vector<1x8xf32>
    %784 = arith.maximumf %755, %783 : vector<1x8xf32>
    %785 = arith.mulf %784, %8 : vector<1x8xf32>
    %786 = arith.addf %782, %785 : vector<1x8xf32>
    %787 = arith.mulf %778, %755 : vector<1x8xf32>
    %cst_194 = arith.constant 0.000000e+00 : f32
    %788 = vector.broadcast %cst_194 : f32 to vector<1x8xf32>
    %789 = arith.maximumf %787, %788 : vector<1x8xf32>
    %790 = arith.mulf %789, %12 : vector<1x8xf32>
    %791 = arith.addf %786, %790 : vector<1x8xf32>
    %792 = arith.mulf %778, %751 : vector<1x8xf32>
    %793 = vector.broadcast %722 : f32 to vector<1x8xf32>
    %794 = arith.mulf %792, %793 : vector<1x8xf32>
    %795 = arith.mulf %794, %16 : vector<1x8xf32>
    %796 = arith.addf %791, %795 : vector<1x8xf32>
    %797 = arith.mulf %778, %751 : vector<1x8xf32>
    %798 = arith.mulf %797, %20 : vector<1x8xf32>
    %799 = arith.addf %796, %798 : vector<1x8xf32>
    %800 = arith.mulf %799, %21 : vector<1x8xf32>
    %cst_195 = arith.constant dense<0.000000e+00> : vector<1xf32>
    %801 = vector.multi_reduction <add>, %800, %cst_195 [1] : vector<1x8xf32> to vector<1xf32>
    %802 = vector.shape_cast %801 : vector<1xf32> to vector<1x1xf32>
    %803 = arith.mulf %799, %24 : vector<1x8xf32>
    %cst_196 = arith.constant dense<0.000000e+00> : vector<1xf32>
    %804 = vector.multi_reduction <add>, %803, %cst_196 [1] : vector<1x8xf32> to vector<1xf32>
    %805 = vector.shape_cast %804 : vector<1xf32> to vector<1x1xf32>
    %806 = vector.broadcast %802 : vector<1x1xf32> to vector<1x8xf32>
    %807 = arith.mulf %806, %4 : vector<1x8xf32>
    %808 = vector.broadcast %805 : vector<1x1xf32> to vector<1x8xf32>
    %809 = arith.mulf %808, %8 : vector<1x8xf32>
    %810 = arith.addf %807, %809 : vector<1x8xf32>
    %811 = vector.broadcast %729 : f32 to vector<1x8xf32>
    %812 = arith.mulf %811, %810 : vector<1x8xf32>
    %813 = arith.addf %716, %812 : vector<1x8xf32>
    %c8_i32 = arith.constant 8 : i32
    %c2_197 = arith.constant 2 : index
    %814 = arith.index_cast %c8_i32 : i32 to index
    %815 = memref.load %arg0[%c2_197, %814] : memref<6x16xf32, #tpu.memory_space<smem>>
    %c3_198 = arith.constant 3 : index
    %816 = arith.index_cast %c8_i32 : i32 to index
    %817 = memref.load %arg0[%c3_198, %816] : memref<6x16xf32, #tpu.memory_space<smem>>
    %c4_199 = arith.constant 4 : index
    %818 = arith.index_cast %c8_i32 : i32 to index
    %819 = memref.load %arg0[%c4_199, %818] : memref<6x16xf32, #tpu.memory_space<smem>>
    %c1_i32_200 = arith.constant 1 : i32
    %820 = arith.addi %c8_i32, %c1_i32_200 : i32
    %c15_i32_201 = arith.constant 15 : i32
    %821 = arith.minsi %820, %c15_i32_201 : i32
    %c5_202 = arith.constant 5 : index
    %822 = arith.index_cast %821 : i32 to index
    %823 = memref.load %arg0[%c5_202, %822] : memref<6x16xf32, #tpu.memory_space<smem>>
    %c5_203 = arith.constant 5 : index
    %824 = arith.index_cast %c8_i32 : i32 to index
    %825 = memref.load %arg0[%c5_203, %824] : memref<6x16xf32, #tpu.memory_space<smem>>
    %826 = arith.subf %823, %825 : f32
    %827 = vector.broadcast %815 : f32 to vector<1x8xf32>
    %828 = arith.mulf %827, %12 : vector<1x8xf32>
    %829 = arith.addf %813, %828 : vector<1x8xf32>
    %830 = vector.broadcast %817 : f32 to vector<1x8xf32>
    %831 = arith.mulf %830, %16 : vector<1x8xf32>
    %832 = arith.addf %829, %831 : vector<1x8xf32>
    %833 = vector.broadcast %819 : f32 to vector<1x8xf32>
    %834 = arith.mulf %833, %20 : vector<1x8xf32>
    %835 = arith.addf %832, %834 : vector<1x8xf32>
    %cst_204 = arith.constant dense<0.000000e+00> : vector<1x32xf32>
    %836 = tpu.matmul %835, %25, %cst_204 {dimension_numbers = #tpu.dot_dimension_numbers<[1], [0], [0], [1], [0, 0, 1, 1], [], []>} : vector<1x8xf32>, vector<8x32xf32>, vector<1x32xf32> -> vector<1x32xf32>
    %837 = arith.addf %836, %26 : vector<1x32xf32>
    %838 = math.tanh %837 : vector<1x32xf32>
    %cst_205 = arith.constant dense<0.000000e+00> : vector<1x32xf32>
    %839 = tpu.matmul %838, %27, %cst_205 {dimension_numbers = #tpu.dot_dimension_numbers<[1], [0], [0], [1], [0, 0, 1, 1], [], []>} : vector<1x32xf32>, vector<32x32xf32>, vector<1x32xf32> -> vector<1x32xf32>
    %840 = arith.addf %839, %28 : vector<1x32xf32>
    %841 = math.tanh %840 : vector<1x32xf32>
    %cst_206 = arith.constant dense<0.000000e+00> : vector<1x8xf32>
    %842 = tpu.matmul %841, %29, %cst_206 {dimension_numbers = #tpu.dot_dimension_numbers<[1], [0], [0], [1], [0, 0, 1, 1], [], []>} : vector<1x32xf32>, vector<32x8xf32>, vector<1x8xf32> -> vector<1x8xf32>
    %843 = arith.addf %842, %30 : vector<1x8xf32>
    %844 = arith.mulf %843, %20 : vector<1x8xf32>
    %845 = arith.addf %813, %844 : vector<1x8xf32>
    %846 = arith.index_cast %c8_i32 : i32 to index
    %c0_207 = arith.constant 0 : index
    %847 = vector.load %arg7[%846, %c0_207] : memref<16x8xf32, #tpu.memory_space<vmem>>, vector<1x8xf32>
    tpu.vector_store %arg7[%846, %c0_207], %845 {strides = array<i32>} : memref<16x8xf32, #tpu.memory_space<vmem>>, vector<1x8xf32>,
    %848 = math.exp %843 : vector<1x8xf32>
    %849 = tpu.reciprocal %848 {approx = true} : vector<1x8xf32> -> vector<1x8xf32>
    %850 = arith.subf %848, %849 : vector<1x8xf32>
    %cst_208 = arith.constant 5.000000e-01 : f32
    %851 = vector.broadcast %cst_208 : f32 to vector<1x8xf32>
    %852 = arith.mulf %851, %850 : vector<1x8xf32>
    %853 = arith.mulf %813, %4 : vector<1x8xf32>
    %cst_209 = arith.constant dense<0.000000e+00> : vector<1xf32>
    %854 = vector.multi_reduction <add>, %853, %cst_209 [1] : vector<1x8xf32> to vector<1xf32>
    %855 = vector.shape_cast %854 : vector<1xf32> to vector<1x1xf32>
    %856 = arith.mulf %813, %8 : vector<1x8xf32>
    %cst_210 = arith.constant dense<0.000000e+00> : vector<1xf32>
    %857 = vector.multi_reduction <add>, %856, %cst_210 [1] : vector<1x8xf32> to vector<1xf32>
    %858 = vector.shape_cast %857 : vector<1xf32> to vector<1x1xf32>
    %cst_211 = arith.constant 0.000000e+00 : f32
    %859 = arith.subf %cst_211, %817 : f32
    %860 = vector.broadcast %859 : f32 to vector<1x8xf32>
    %861 = arith.mulf %860, %4 : vector<1x8xf32>
    %862 = vector.broadcast %855 : vector<1x1xf32> to vector<1x8xf32>
    %863 = arith.mulf %862, %12 : vector<1x8xf32>
    %864 = arith.addf %861, %863 : vector<1x8xf32>
    %865 = arith.addf %16, %20 : vector<1x8xf32>
    %866 = vector.broadcast %858 : vector<1x1xf32> to vector<1x8xf32>
    %867 = arith.mulf %866, %865 : vector<1x8xf32>
    %868 = arith.addf %864, %867 : vector<1x8xf32>
    %cst_212 = arith.constant 5.000000e+00 : f32
    %869 = vector.broadcast %cst_212 : f32 to vector<1x8xf32>
    %870 = arith.mulf %869, %868 : vector<1x8xf32>
    %871 = math.tanh %870 : vector<1x8xf32>
    %cst_213 = arith.constant 1.000000e+00 : f32
    %872 = vector.broadcast %cst_213 : f32 to vector<1x8xf32>
    %873 = arith.addf %871, %872 : vector<1x8xf32>
    %cst_214 = arith.constant 5.000000e-01 : f32
    %874 = vector.broadcast %cst_214 : f32 to vector<1x8xf32>
    %875 = arith.mulf %873, %874 : vector<1x8xf32>
    %876 = arith.mulf %852, %875 : vector<1x8xf32>
    %cst_215 = arith.constant 0.000000e+00 : f32
    %877 = vector.broadcast %cst_215 : f32 to vector<1x8xf32>
    %878 = arith.maximumf %876, %877 : vector<1x8xf32>
    %879 = arith.mulf %878, %4 : vector<1x8xf32>
    %cst_216 = arith.constant 0.000000e+00 : f32
    %880 = vector.broadcast %cst_216 : f32 to vector<1x8xf32>
    %881 = arith.maximumf %852, %880 : vector<1x8xf32>
    %882 = arith.mulf %881, %8 : vector<1x8xf32>
    %883 = arith.addf %879, %882 : vector<1x8xf32>
    %884 = arith.mulf %875, %852 : vector<1x8xf32>
    %cst_217 = arith.constant 0.000000e+00 : f32
    %885 = vector.broadcast %cst_217 : f32 to vector<1x8xf32>
    %886 = arith.maximumf %884, %885 : vector<1x8xf32>
    %887 = arith.mulf %886, %12 : vector<1x8xf32>
    %888 = arith.addf %883, %887 : vector<1x8xf32>
    %889 = arith.mulf %875, %848 : vector<1x8xf32>
    %890 = vector.broadcast %819 : f32 to vector<1x8xf32>
    %891 = arith.mulf %889, %890 : vector<1x8xf32>
    %892 = arith.mulf %891, %16 : vector<1x8xf32>
    %893 = arith.addf %888, %892 : vector<1x8xf32>
    %894 = arith.mulf %875, %848 : vector<1x8xf32>
    %895 = arith.mulf %894, %20 : vector<1x8xf32>
    %896 = arith.addf %893, %895 : vector<1x8xf32>
    %897 = arith.mulf %896, %21 : vector<1x8xf32>
    %cst_218 = arith.constant dense<0.000000e+00> : vector<1xf32>
    %898 = vector.multi_reduction <add>, %897, %cst_218 [1] : vector<1x8xf32> to vector<1xf32>
    %899 = vector.shape_cast %898 : vector<1xf32> to vector<1x1xf32>
    %900 = arith.mulf %896, %24 : vector<1x8xf32>
    %cst_219 = arith.constant dense<0.000000e+00> : vector<1xf32>
    %901 = vector.multi_reduction <add>, %900, %cst_219 [1] : vector<1x8xf32> to vector<1xf32>
    %902 = vector.shape_cast %901 : vector<1xf32> to vector<1x1xf32>
    %903 = vector.broadcast %899 : vector<1x1xf32> to vector<1x8xf32>
    %904 = arith.mulf %903, %4 : vector<1x8xf32>
    %905 = vector.broadcast %902 : vector<1x1xf32> to vector<1x8xf32>
    %906 = arith.mulf %905, %8 : vector<1x8xf32>
    %907 = arith.addf %904, %906 : vector<1x8xf32>
    %908 = vector.broadcast %826 : f32 to vector<1x8xf32>
    %909 = arith.mulf %908, %907 : vector<1x8xf32>
    %910 = arith.addf %813, %909 : vector<1x8xf32>
    %c9_i32 = arith.constant 9 : i32
    %c2_220 = arith.constant 2 : index
    %911 = arith.index_cast %c9_i32 : i32 to index
    %912 = memref.load %arg0[%c2_220, %911] : memref<6x16xf32, #tpu.memory_space<smem>>
    %c3_221 = arith.constant 3 : index
    %913 = arith.index_cast %c9_i32 : i32 to index
    %914 = memref.load %arg0[%c3_221, %913] : memref<6x16xf32, #tpu.memory_space<smem>>
    %c4_222 = arith.constant 4 : index
    %915 = arith.index_cast %c9_i32 : i32 to index
    %916 = memref.load %arg0[%c4_222, %915] : memref<6x16xf32, #tpu.memory_space<smem>>
    %c1_i32_223 = arith.constant 1 : i32
    %917 = arith.addi %c9_i32, %c1_i32_223 : i32
    %c15_i32_224 = arith.constant 15 : i32
    %918 = arith.minsi %917, %c15_i32_224 : i32
    %c5_225 = arith.constant 5 : index
    %919 = arith.index_cast %918 : i32 to index
    %920 = memref.load %arg0[%c5_225, %919] : memref<6x16xf32, #tpu.memory_space<smem>>
    %c5_226 = arith.constant 5 : index
    %921 = arith.index_cast %c9_i32 : i32 to index
    %922 = memref.load %arg0[%c5_226, %921] : memref<6x16xf32, #tpu.memory_space<smem>>
    %923 = arith.subf %920, %922 : f32
    %924 = vector.broadcast %912 : f32 to vector<1x8xf32>
    %925 = arith.mulf %924, %12 : vector<1x8xf32>
    %926 = arith.addf %910, %925 : vector<1x8xf32>
    %927 = vector.broadcast %914 : f32 to vector<1x8xf32>
    %928 = arith.mulf %927, %16 : vector<1x8xf32>
    %929 = arith.addf %926, %928 : vector<1x8xf32>
    %930 = vector.broadcast %916 : f32 to vector<1x8xf32>
    %931 = arith.mulf %930, %20 : vector<1x8xf32>
    %932 = arith.addf %929, %931 : vector<1x8xf32>
    %cst_227 = arith.constant dense<0.000000e+00> : vector<1x32xf32>
    %933 = tpu.matmul %932, %25, %cst_227 {dimension_numbers = #tpu.dot_dimension_numbers<[1], [0], [0], [1], [0, 0, 1, 1], [], []>} : vector<1x8xf32>, vector<8x32xf32>, vector<1x32xf32> -> vector<1x32xf32>
    %934 = arith.addf %933, %26 : vector<1x32xf32>
    %935 = math.tanh %934 : vector<1x32xf32>
    %cst_228 = arith.constant dense<0.000000e+00> : vector<1x32xf32>
    %936 = tpu.matmul %935, %27, %cst_228 {dimension_numbers = #tpu.dot_dimension_numbers<[1], [0], [0], [1], [0, 0, 1, 1], [], []>} : vector<1x32xf32>, vector<32x32xf32>, vector<1x32xf32> -> vector<1x32xf32>
    %937 = arith.addf %936, %28 : vector<1x32xf32>
    %938 = math.tanh %937 : vector<1x32xf32>
    %cst_229 = arith.constant dense<0.000000e+00> : vector<1x8xf32>
    %939 = tpu.matmul %938, %29, %cst_229 {dimension_numbers = #tpu.dot_dimension_numbers<[1], [0], [0], [1], [0, 0, 1, 1], [], []>} : vector<1x32xf32>, vector<32x8xf32>, vector<1x8xf32> -> vector<1x8xf32>
    %940 = arith.addf %939, %30 : vector<1x8xf32>
    %941 = arith.mulf %940, %20 : vector<1x8xf32>
    %942 = arith.addf %910, %941 : vector<1x8xf32>
    %943 = arith.index_cast %c9_i32 : i32 to index
    %c0_230 = arith.constant 0 : index
    %944 = vector.load %arg7[%943, %c0_230] : memref<16x8xf32, #tpu.memory_space<vmem>>, vector<1x8xf32>
    tpu.vector_store %arg7[%943, %c0_230], %942 {strides = array<i32>} : memref<16x8xf32, #tpu.memory_space<vmem>>, vector<1x8xf32>,
    %945 = math.exp %940 : vector<1x8xf32>
    %946 = tpu.reciprocal %945 {approx = true} : vector<1x8xf32> -> vector<1x8xf32>
    %947 = arith.subf %945, %946 : vector<1x8xf32>
    %cst_231 = arith.constant 5.000000e-01 : f32
    %948 = vector.broadcast %cst_231 : f32 to vector<1x8xf32>
    %949 = arith.mulf %948, %947 : vector<1x8xf32>
    %950 = arith.mulf %910, %4 : vector<1x8xf32>
    %cst_232 = arith.constant dense<0.000000e+00> : vector<1xf32>
    %951 = vector.multi_reduction <add>, %950, %cst_232 [1] : vector<1x8xf32> to vector<1xf32>
    %952 = vector.shape_cast %951 : vector<1xf32> to vector<1x1xf32>
    %953 = arith.mulf %910, %8 : vector<1x8xf32>
    %cst_233 = arith.constant dense<0.000000e+00> : vector<1xf32>
    %954 = vector.multi_reduction <add>, %953, %cst_233 [1] : vector<1x8xf32> to vector<1xf32>
    %955 = vector.shape_cast %954 : vector<1xf32> to vector<1x1xf32>
    %cst_234 = arith.constant 0.000000e+00 : f32
    %956 = arith.subf %cst_234, %914 : f32
    %957 = vector.broadcast %956 : f32 to vector<1x8xf32>
    %958 = arith.mulf %957, %4 : vector<1x8xf32>
    %959 = vector.broadcast %952 : vector<1x1xf32> to vector<1x8xf32>
    %960 = arith.mulf %959, %12 : vector<1x8xf32>
    %961 = arith.addf %958, %960 : vector<1x8xf32>
    %962 = arith.addf %16, %20 : vector<1x8xf32>
    %963 = vector.broadcast %955 : vector<1x1xf32> to vector<1x8xf32>
    %964 = arith.mulf %963, %962 : vector<1x8xf32>
    %965 = arith.addf %961, %964 : vector<1x8xf32>
    %cst_235 = arith.constant 5.000000e+00 : f32
    %966 = vector.broadcast %cst_235 : f32 to vector<1x8xf32>
    %967 = arith.mulf %966, %965 : vector<1x8xf32>
    %968 = math.tanh %967 : vector<1x8xf32>
    %cst_236 = arith.constant 1.000000e+00 : f32
    %969 = vector.broadcast %cst_236 : f32 to vector<1x8xf32>
    %970 = arith.addf %968, %969 : vector<1x8xf32>
    %cst_237 = arith.constant 5.000000e-01 : f32
    %971 = vector.broadcast %cst_237 : f32 to vector<1x8xf32>
    %972 = arith.mulf %970, %971 : vector<1x8xf32>
    %973 = arith.mulf %949, %972 : vector<1x8xf32>
    %cst_238 = arith.constant 0.000000e+00 : f32
    %974 = vector.broadcast %cst_238 : f32 to vector<1x8xf32>
    %975 = arith.maximumf %973, %974 : vector<1x8xf32>
    %976 = arith.mulf %975, %4 : vector<1x8xf32>
    %cst_239 = arith.constant 0.000000e+00 : f32
    %977 = vector.broadcast %cst_239 : f32 to vector<1x8xf32>
    %978 = arith.maximumf %949, %977 : vector<1x8xf32>
    %979 = arith.mulf %978, %8 : vector<1x8xf32>
    %980 = arith.addf %976, %979 : vector<1x8xf32>
    %981 = arith.mulf %972, %949 : vector<1x8xf32>
    %cst_240 = arith.constant 0.000000e+00 : f32
    %982 = vector.broadcast %cst_240 : f32 to vector<1x8xf32>
    %983 = arith.maximumf %981, %982 : vector<1x8xf32>
    %984 = arith.mulf %983, %12 : vector<1x8xf32>
    %985 = arith.addf %980, %984 : vector<1x8xf32>
    %986 = arith.mulf %972, %945 : vector<1x8xf32>
    %987 = vector.broadcast %916 : f32 to vector<1x8xf32>
    %988 = arith.mulf %986, %987 : vector<1x8xf32>
    %989 = arith.mulf %988, %16 : vector<1x8xf32>
    %990 = arith.addf %985, %989 : vector<1x8xf32>
    %991 = arith.mulf %972, %945 : vector<1x8xf32>
    %992 = arith.mulf %991, %20 : vector<1x8xf32>
    %993 = arith.addf %990, %992 : vector<1x8xf32>
    %994 = arith.mulf %993, %21 : vector<1x8xf32>
    %cst_241 = arith.constant dense<0.000000e+00> : vector<1xf32>
    %995 = vector.multi_reduction <add>, %994, %cst_241 [1] : vector<1x8xf32> to vector<1xf32>
    %996 = vector.shape_cast %995 : vector<1xf32> to vector<1x1xf32>
    %997 = arith.mulf %993, %24 : vector<1x8xf32>
    %cst_242 = arith.constant dense<0.000000e+00> : vector<1xf32>
    %998 = vector.multi_reduction <add>, %997, %cst_242 [1] : vector<1x8xf32> to vector<1xf32>
    %999 = vector.shape_cast %998 : vector<1xf32> to vector<1x1xf32>
    %1000 = vector.broadcast %996 : vector<1x1xf32> to vector<1x8xf32>
    %1001 = arith.mulf %1000, %4 : vector<1x8xf32>
    %1002 = vector.broadcast %999 : vector<1x1xf32> to vector<1x8xf32>
    %1003 = arith.mulf %1002, %8 : vector<1x8xf32>
    %1004 = arith.addf %1001, %1003 : vector<1x8xf32>
    %1005 = vector.broadcast %923 : f32 to vector<1x8xf32>
    %1006 = arith.mulf %1005, %1004 : vector<1x8xf32>
    %1007 = arith.addf %910, %1006 : vector<1x8xf32>
    %c10_i32 = arith.constant 10 : i32
    %c2_243 = arith.constant 2 : index
    %1008 = arith.index_cast %c10_i32 : i32 to index
    %1009 = memref.load %arg0[%c2_243, %1008] : memref<6x16xf32, #tpu.memory_space<smem>>
    %c3_244 = arith.constant 3 : index
    %1010 = arith.index_cast %c10_i32 : i32 to index
    %1011 = memref.load %arg0[%c3_244, %1010] : memref<6x16xf32, #tpu.memory_space<smem>>
    %c4_245 = arith.constant 4 : index
    %1012 = arith.index_cast %c10_i32 : i32 to index
    %1013 = memref.load %arg0[%c4_245, %1012] : memref<6x16xf32, #tpu.memory_space<smem>>
    %c1_i32_246 = arith.constant 1 : i32
    %1014 = arith.addi %c10_i32, %c1_i32_246 : i32
    %c15_i32_247 = arith.constant 15 : i32
    %1015 = arith.minsi %1014, %c15_i32_247 : i32
    %c5_248 = arith.constant 5 : index
    %1016 = arith.index_cast %1015 : i32 to index
    %1017 = memref.load %arg0[%c5_248, %1016] : memref<6x16xf32, #tpu.memory_space<smem>>
    %c5_249 = arith.constant 5 : index
    %1018 = arith.index_cast %c10_i32 : i32 to index
    %1019 = memref.load %arg0[%c5_249, %1018] : memref<6x16xf32, #tpu.memory_space<smem>>
    %1020 = arith.subf %1017, %1019 : f32
    %1021 = vector.broadcast %1009 : f32 to vector<1x8xf32>
    %1022 = arith.mulf %1021, %12 : vector<1x8xf32>
    %1023 = arith.addf %1007, %1022 : vector<1x8xf32>
    %1024 = vector.broadcast %1011 : f32 to vector<1x8xf32>
    %1025 = arith.mulf %1024, %16 : vector<1x8xf32>
    %1026 = arith.addf %1023, %1025 : vector<1x8xf32>
    %1027 = vector.broadcast %1013 : f32 to vector<1x8xf32>
    %1028 = arith.mulf %1027, %20 : vector<1x8xf32>
    %1029 = arith.addf %1026, %1028 : vector<1x8xf32>
    %cst_250 = arith.constant dense<0.000000e+00> : vector<1x32xf32>
    %1030 = tpu.matmul %1029, %25, %cst_250 {dimension_numbers = #tpu.dot_dimension_numbers<[1], [0], [0], [1], [0, 0, 1, 1], [], []>} : vector<1x8xf32>, vector<8x32xf32>, vector<1x32xf32> -> vector<1x32xf32>
    %1031 = arith.addf %1030, %26 : vector<1x32xf32>
    %1032 = math.tanh %1031 : vector<1x32xf32>
    %cst_251 = arith.constant dense<0.000000e+00> : vector<1x32xf32>
    %1033 = tpu.matmul %1032, %27, %cst_251 {dimension_numbers = #tpu.dot_dimension_numbers<[1], [0], [0], [1], [0, 0, 1, 1], [], []>} : vector<1x32xf32>, vector<32x32xf32>, vector<1x32xf32> -> vector<1x32xf32>
    %1034 = arith.addf %1033, %28 : vector<1x32xf32>
    %1035 = math.tanh %1034 : vector<1x32xf32>
    %cst_252 = arith.constant dense<0.000000e+00> : vector<1x8xf32>
    %1036 = tpu.matmul %1035, %29, %cst_252 {dimension_numbers = #tpu.dot_dimension_numbers<[1], [0], [0], [1], [0, 0, 1, 1], [], []>} : vector<1x32xf32>, vector<32x8xf32>, vector<1x8xf32> -> vector<1x8xf32>
    %1037 = arith.addf %1036, %30 : vector<1x8xf32>
    %1038 = arith.mulf %1037, %20 : vector<1x8xf32>
    %1039 = arith.addf %1007, %1038 : vector<1x8xf32>
    %1040 = arith.index_cast %c10_i32 : i32 to index
    %c0_253 = arith.constant 0 : index
    %1041 = vector.load %arg7[%1040, %c0_253] : memref<16x8xf32, #tpu.memory_space<vmem>>, vector<1x8xf32>
    tpu.vector_store %arg7[%1040, %c0_253], %1039 {strides = array<i32>} : memref<16x8xf32, #tpu.memory_space<vmem>>, vector<1x8xf32>,
    %1042 = math.exp %1037 : vector<1x8xf32>
    %1043 = tpu.reciprocal %1042 {approx = true} : vector<1x8xf32> -> vector<1x8xf32>
    %1044 = arith.subf %1042, %1043 : vector<1x8xf32>
    %cst_254 = arith.constant 5.000000e-01 : f32
    %1045 = vector.broadcast %cst_254 : f32 to vector<1x8xf32>
    %1046 = arith.mulf %1045, %1044 : vector<1x8xf32>
    %1047 = arith.mulf %1007, %4 : vector<1x8xf32>
    %cst_255 = arith.constant dense<0.000000e+00> : vector<1xf32>
    %1048 = vector.multi_reduction <add>, %1047, %cst_255 [1] : vector<1x8xf32> to vector<1xf32>
    %1049 = vector.shape_cast %1048 : vector<1xf32> to vector<1x1xf32>
    %1050 = arith.mulf %1007, %8 : vector<1x8xf32>
    %cst_256 = arith.constant dense<0.000000e+00> : vector<1xf32>
    %1051 = vector.multi_reduction <add>, %1050, %cst_256 [1] : vector<1x8xf32> to vector<1xf32>
    %1052 = vector.shape_cast %1051 : vector<1xf32> to vector<1x1xf32>
    %cst_257 = arith.constant 0.000000e+00 : f32
    %1053 = arith.subf %cst_257, %1011 : f32
    %1054 = vector.broadcast %1053 : f32 to vector<1x8xf32>
    %1055 = arith.mulf %1054, %4 : vector<1x8xf32>
    %1056 = vector.broadcast %1049 : vector<1x1xf32> to vector<1x8xf32>
    %1057 = arith.mulf %1056, %12 : vector<1x8xf32>
    %1058 = arith.addf %1055, %1057 : vector<1x8xf32>
    %1059 = arith.addf %16, %20 : vector<1x8xf32>
    %1060 = vector.broadcast %1052 : vector<1x1xf32> to vector<1x8xf32>
    %1061 = arith.mulf %1060, %1059 : vector<1x8xf32>
    %1062 = arith.addf %1058, %1061 : vector<1x8xf32>
    %cst_258 = arith.constant 5.000000e+00 : f32
    %1063 = vector.broadcast %cst_258 : f32 to vector<1x8xf32>
    %1064 = arith.mulf %1063, %1062 : vector<1x8xf32>
    %1065 = math.tanh %1064 : vector<1x8xf32>
    %cst_259 = arith.constant 1.000000e+00 : f32
    %1066 = vector.broadcast %cst_259 : f32 to vector<1x8xf32>
    %1067 = arith.addf %1065, %1066 : vector<1x8xf32>
    %cst_260 = arith.constant 5.000000e-01 : f32
    %1068 = vector.broadcast %cst_260 : f32 to vector<1x8xf32>
    %1069 = arith.mulf %1067, %1068 : vector<1x8xf32>
    %1070 = arith.mulf %1046, %1069 : vector<1x8xf32>
    %cst_261 = arith.constant 0.000000e+00 : f32
    %1071 = vector.broadcast %cst_261 : f32 to vector<1x8xf32>
    %1072 = arith.maximumf %1070, %1071 : vector<1x8xf32>
    %1073 = arith.mulf %1072, %4 : vector<1x8xf32>
    %cst_262 = arith.constant 0.000000e+00 : f32
    %1074 = vector.broadcast %cst_262 : f32 to vector<1x8xf32>
    %1075 = arith.maximumf %1046, %1074 : vector<1x8xf32>
    %1076 = arith.mulf %1075, %8 : vector<1x8xf32>
    %1077 = arith.addf %1073, %1076 : vector<1x8xf32>
    %1078 = arith.mulf %1069, %1046 : vector<1x8xf32>
    %cst_263 = arith.constant 0.000000e+00 : f32
    %1079 = vector.broadcast %cst_263 : f32 to vector<1x8xf32>
    %1080 = arith.maximumf %1078, %1079 : vector<1x8xf32>
    %1081 = arith.mulf %1080, %12 : vector<1x8xf32>
    %1082 = arith.addf %1077, %1081 : vector<1x8xf32>
    %1083 = arith.mulf %1069, %1042 : vector<1x8xf32>
    %1084 = vector.broadcast %1013 : f32 to vector<1x8xf32>
    %1085 = arith.mulf %1083, %1084 : vector<1x8xf32>
    %1086 = arith.mulf %1085, %16 : vector<1x8xf32>
    %1087 = arith.addf %1082, %1086 : vector<1x8xf32>
    %1088 = arith.mulf %1069, %1042 : vector<1x8xf32>
    %1089 = arith.mulf %1088, %20 : vector<1x8xf32>
    %1090 = arith.addf %1087, %1089 : vector<1x8xf32>
    %1091 = arith.mulf %1090, %21 : vector<1x8xf32>
    %cst_264 = arith.constant dense<0.000000e+00> : vector<1xf32>
    %1092 = vector.multi_reduction <add>, %1091, %cst_264 [1] : vector<1x8xf32> to vector<1xf32>
    %1093 = vector.shape_cast %1092 : vector<1xf32> to vector<1x1xf32>
    %1094 = arith.mulf %1090, %24 : vector<1x8xf32>
    %cst_265 = arith.constant dense<0.000000e+00> : vector<1xf32>
    %1095 = vector.multi_reduction <add>, %1094, %cst_265 [1] : vector<1x8xf32> to vector<1xf32>
    %1096 = vector.shape_cast %1095 : vector<1xf32> to vector<1x1xf32>
    %1097 = vector.broadcast %1093 : vector<1x1xf32> to vector<1x8xf32>
    %1098 = arith.mulf %1097, %4 : vector<1x8xf32>
    %1099 = vector.broadcast %1096 : vector<1x1xf32> to vector<1x8xf32>
    %1100 = arith.mulf %1099, %8 : vector<1x8xf32>
    %1101 = arith.addf %1098, %1100 : vector<1x8xf32>
    %1102 = vector.broadcast %1020 : f32 to vector<1x8xf32>
    %1103 = arith.mulf %1102, %1101 : vector<1x8xf32>
    %1104 = arith.addf %1007, %1103 : vector<1x8xf32>
    %c11_i32 = arith.constant 11 : i32
    %c2_266 = arith.constant 2 : index
    %1105 = arith.index_cast %c11_i32 : i32 to index
    %1106 = memref.load %arg0[%c2_266, %1105] : memref<6x16xf32, #tpu.memory_space<smem>>
    %c3_267 = arith.constant 3 : index
    %1107 = arith.index_cast %c11_i32 : i32 to index
    %1108 = memref.load %arg0[%c3_267, %1107] : memref<6x16xf32, #tpu.memory_space<smem>>
    %c4_268 = arith.constant 4 : index
    %1109 = arith.index_cast %c11_i32 : i32 to index
    %1110 = memref.load %arg0[%c4_268, %1109] : memref<6x16xf32, #tpu.memory_space<smem>>
    %c1_i32_269 = arith.constant 1 : i32
    %1111 = arith.addi %c11_i32, %c1_i32_269 : i32
    %c15_i32_270 = arith.constant 15 : i32
    %1112 = arith.minsi %1111, %c15_i32_270 : i32
    %c5_271 = arith.constant 5 : index
    %1113 = arith.index_cast %1112 : i32 to index
    %1114 = memref.load %arg0[%c5_271, %1113] : memref<6x16xf32, #tpu.memory_space<smem>>
    %c5_272 = arith.constant 5 : index
    %1115 = arith.index_cast %c11_i32 : i32 to index
    %1116 = memref.load %arg0[%c5_272, %1115] : memref<6x16xf32, #tpu.memory_space<smem>>
    %1117 = arith.subf %1114, %1116 : f32
    %1118 = vector.broadcast %1106 : f32 to vector<1x8xf32>
    %1119 = arith.mulf %1118, %12 : vector<1x8xf32>
    %1120 = arith.addf %1104, %1119 : vector<1x8xf32>
    %1121 = vector.broadcast %1108 : f32 to vector<1x8xf32>
    %1122 = arith.mulf %1121, %16 : vector<1x8xf32>
    %1123 = arith.addf %1120, %1122 : vector<1x8xf32>
    %1124 = vector.broadcast %1110 : f32 to vector<1x8xf32>
    %1125 = arith.mulf %1124, %20 : vector<1x8xf32>
    %1126 = arith.addf %1123, %1125 : vector<1x8xf32>
    %cst_273 = arith.constant dense<0.000000e+00> : vector<1x32xf32>
    %1127 = tpu.matmul %1126, %25, %cst_273 {dimension_numbers = #tpu.dot_dimension_numbers<[1], [0], [0], [1], [0, 0, 1, 1], [], []>} : vector<1x8xf32>, vector<8x32xf32>, vector<1x32xf32> -> vector<1x32xf32>
    %1128 = arith.addf %1127, %26 : vector<1x32xf32>
    %1129 = math.tanh %1128 : vector<1x32xf32>
    %cst_274 = arith.constant dense<0.000000e+00> : vector<1x32xf32>
    %1130 = tpu.matmul %1129, %27, %cst_274 {dimension_numbers = #tpu.dot_dimension_numbers<[1], [0], [0], [1], [0, 0, 1, 1], [], []>} : vector<1x32xf32>, vector<32x32xf32>, vector<1x32xf32> -> vector<1x32xf32>
    %1131 = arith.addf %1130, %28 : vector<1x32xf32>
    %1132 = math.tanh %1131 : vector<1x32xf32>
    %cst_275 = arith.constant dense<0.000000e+00> : vector<1x8xf32>
    %1133 = tpu.matmul %1132, %29, %cst_275 {dimension_numbers = #tpu.dot_dimension_numbers<[1], [0], [0], [1], [0, 0, 1, 1], [], []>} : vector<1x32xf32>, vector<32x8xf32>, vector<1x8xf32> -> vector<1x8xf32>
    %1134 = arith.addf %1133, %30 : vector<1x8xf32>
    %1135 = arith.mulf %1134, %20 : vector<1x8xf32>
    %1136 = arith.addf %1104, %1135 : vector<1x8xf32>
    %1137 = arith.index_cast %c11_i32 : i32 to index
    %c0_276 = arith.constant 0 : index
    %1138 = vector.load %arg7[%1137, %c0_276] : memref<16x8xf32, #tpu.memory_space<vmem>>, vector<1x8xf32>
    tpu.vector_store %arg7[%1137, %c0_276], %1136 {strides = array<i32>} : memref<16x8xf32, #tpu.memory_space<vmem>>, vector<1x8xf32>,
    %1139 = math.exp %1134 : vector<1x8xf32>
    %1140 = tpu.reciprocal %1139 {approx = true} : vector<1x8xf32> -> vector<1x8xf32>
    %1141 = arith.subf %1139, %1140 : vector<1x8xf32>
    %cst_277 = arith.constant 5.000000e-01 : f32
    %1142 = vector.broadcast %cst_277 : f32 to vector<1x8xf32>
    %1143 = arith.mulf %1142, %1141 : vector<1x8xf32>
    %1144 = arith.mulf %1104, %4 : vector<1x8xf32>
    %cst_278 = arith.constant dense<0.000000e+00> : vector<1xf32>
    %1145 = vector.multi_reduction <add>, %1144, %cst_278 [1] : vector<1x8xf32> to vector<1xf32>
    %1146 = vector.shape_cast %1145 : vector<1xf32> to vector<1x1xf32>
    %1147 = arith.mulf %1104, %8 : vector<1x8xf32>
    %cst_279 = arith.constant dense<0.000000e+00> : vector<1xf32>
    %1148 = vector.multi_reduction <add>, %1147, %cst_279 [1] : vector<1x8xf32> to vector<1xf32>
    %1149 = vector.shape_cast %1148 : vector<1xf32> to vector<1x1xf32>
    %cst_280 = arith.constant 0.000000e+00 : f32
    %1150 = arith.subf %cst_280, %1108 : f32
    %1151 = vector.broadcast %1150 : f32 to vector<1x8xf32>
    %1152 = arith.mulf %1151, %4 : vector<1x8xf32>
    %1153 = vector.broadcast %1146 : vector<1x1xf32> to vector<1x8xf32>
    %1154 = arith.mulf %1153, %12 : vector<1x8xf32>
    %1155 = arith.addf %1152, %1154 : vector<1x8xf32>
    %1156 = arith.addf %16, %20 : vector<1x8xf32>
    %1157 = vector.broadcast %1149 : vector<1x1xf32> to vector<1x8xf32>
    %1158 = arith.mulf %1157, %1156 : vector<1x8xf32>
    %1159 = arith.addf %1155, %1158 : vector<1x8xf32>
    %cst_281 = arith.constant 5.000000e+00 : f32
    %1160 = vector.broadcast %cst_281 : f32 to vector<1x8xf32>
    %1161 = arith.mulf %1160, %1159 : vector<1x8xf32>
    %1162 = math.tanh %1161 : vector<1x8xf32>
    %cst_282 = arith.constant 1.000000e+00 : f32
    %1163 = vector.broadcast %cst_282 : f32 to vector<1x8xf32>
    %1164 = arith.addf %1162, %1163 : vector<1x8xf32>
    %cst_283 = arith.constant 5.000000e-01 : f32
    %1165 = vector.broadcast %cst_283 : f32 to vector<1x8xf32>
    %1166 = arith.mulf %1164, %1165 : vector<1x8xf32>
    %1167 = arith.mulf %1143, %1166 : vector<1x8xf32>
    %cst_284 = arith.constant 0.000000e+00 : f32
    %1168 = vector.broadcast %cst_284 : f32 to vector<1x8xf32>
    %1169 = arith.maximumf %1167, %1168 : vector<1x8xf32>
    %1170 = arith.mulf %1169, %4 : vector<1x8xf32>
    %cst_285 = arith.constant 0.000000e+00 : f32
    %1171 = vector.broadcast %cst_285 : f32 to vector<1x8xf32>
    %1172 = arith.maximumf %1143, %1171 : vector<1x8xf32>
    %1173 = arith.mulf %1172, %8 : vector<1x8xf32>
    %1174 = arith.addf %1170, %1173 : vector<1x8xf32>
    %1175 = arith.mulf %1166, %1143 : vector<1x8xf32>
    %cst_286 = arith.constant 0.000000e+00 : f32
    %1176 = vector.broadcast %cst_286 : f32 to vector<1x8xf32>
    %1177 = arith.maximumf %1175, %1176 : vector<1x8xf32>
    %1178 = arith.mulf %1177, %12 : vector<1x8xf32>
    %1179 = arith.addf %1174, %1178 : vector<1x8xf32>
    %1180 = arith.mulf %1166, %1139 : vector<1x8xf32>
    %1181 = vector.broadcast %1110 : f32 to vector<1x8xf32>
    %1182 = arith.mulf %1180, %1181 : vector<1x8xf32>
    %1183 = arith.mulf %1182, %16 : vector<1x8xf32>
    %1184 = arith.addf %1179, %1183 : vector<1x8xf32>
    %1185 = arith.mulf %1166, %1139 : vector<1x8xf32>
    %1186 = arith.mulf %1185, %20 : vector<1x8xf32>
    %1187 = arith.addf %1184, %1186 : vector<1x8xf32>
    %1188 = arith.mulf %1187, %21 : vector<1x8xf32>
    %cst_287 = arith.constant dense<0.000000e+00> : vector<1xf32>
    %1189 = vector.multi_reduction <add>, %1188, %cst_287 [1] : vector<1x8xf32> to vector<1xf32>
    %1190 = vector.shape_cast %1189 : vector<1xf32> to vector<1x1xf32>
    %1191 = arith.mulf %1187, %24 : vector<1x8xf32>
    %cst_288 = arith.constant dense<0.000000e+00> : vector<1xf32>
    %1192 = vector.multi_reduction <add>, %1191, %cst_288 [1] : vector<1x8xf32> to vector<1xf32>
    %1193 = vector.shape_cast %1192 : vector<1xf32> to vector<1x1xf32>
    %1194 = vector.broadcast %1190 : vector<1x1xf32> to vector<1x8xf32>
    %1195 = arith.mulf %1194, %4 : vector<1x8xf32>
    %1196 = vector.broadcast %1193 : vector<1x1xf32> to vector<1x8xf32>
    %1197 = arith.mulf %1196, %8 : vector<1x8xf32>
    %1198 = arith.addf %1195, %1197 : vector<1x8xf32>
    %1199 = vector.broadcast %1117 : f32 to vector<1x8xf32>
    %1200 = arith.mulf %1199, %1198 : vector<1x8xf32>
    %1201 = arith.addf %1104, %1200 : vector<1x8xf32>
    %c12_i32 = arith.constant 12 : i32
    %c2_289 = arith.constant 2 : index
    %1202 = arith.index_cast %c12_i32 : i32 to index
    %1203 = memref.load %arg0[%c2_289, %1202] : memref<6x16xf32, #tpu.memory_space<smem>>
    %c3_290 = arith.constant 3 : index
    %1204 = arith.index_cast %c12_i32 : i32 to index
    %1205 = memref.load %arg0[%c3_290, %1204] : memref<6x16xf32, #tpu.memory_space<smem>>
    %c4_291 = arith.constant 4 : index
    %1206 = arith.index_cast %c12_i32 : i32 to index
    %1207 = memref.load %arg0[%c4_291, %1206] : memref<6x16xf32, #tpu.memory_space<smem>>
    %c1_i32_292 = arith.constant 1 : i32
    %1208 = arith.addi %c12_i32, %c1_i32_292 : i32
    %c15_i32_293 = arith.constant 15 : i32
    %1209 = arith.minsi %1208, %c15_i32_293 : i32
    %c5_294 = arith.constant 5 : index
    %1210 = arith.index_cast %1209 : i32 to index
    %1211 = memref.load %arg0[%c5_294, %1210] : memref<6x16xf32, #tpu.memory_space<smem>>
    %c5_295 = arith.constant 5 : index
    %1212 = arith.index_cast %c12_i32 : i32 to index
    %1213 = memref.load %arg0[%c5_295, %1212] : memref<6x16xf32, #tpu.memory_space<smem>>
    %1214 = arith.subf %1211, %1213 : f32
    %1215 = vector.broadcast %1203 : f32 to vector<1x8xf32>
    %1216 = arith.mulf %1215, %12 : vector<1x8xf32>
    %1217 = arith.addf %1201, %1216 : vector<1x8xf32>
    %1218 = vector.broadcast %1205 : f32 to vector<1x8xf32>
    %1219 = arith.mulf %1218, %16 : vector<1x8xf32>
    %1220 = arith.addf %1217, %1219 : vector<1x8xf32>
    %1221 = vector.broadcast %1207 : f32 to vector<1x8xf32>
    %1222 = arith.mulf %1221, %20 : vector<1x8xf32>
    %1223 = arith.addf %1220, %1222 : vector<1x8xf32>
    %cst_296 = arith.constant dense<0.000000e+00> : vector<1x32xf32>
    %1224 = tpu.matmul %1223, %25, %cst_296 {dimension_numbers = #tpu.dot_dimension_numbers<[1], [0], [0], [1], [0, 0, 1, 1], [], []>} : vector<1x8xf32>, vector<8x32xf32>, vector<1x32xf32> -> vector<1x32xf32>
    %1225 = arith.addf %1224, %26 : vector<1x32xf32>
    %1226 = math.tanh %1225 : vector<1x32xf32>
    %cst_297 = arith.constant dense<0.000000e+00> : vector<1x32xf32>
    %1227 = tpu.matmul %1226, %27, %cst_297 {dimension_numbers = #tpu.dot_dimension_numbers<[1], [0], [0], [1], [0, 0, 1, 1], [], []>} : vector<1x32xf32>, vector<32x32xf32>, vector<1x32xf32> -> vector<1x32xf32>
    %1228 = arith.addf %1227, %28 : vector<1x32xf32>
    %1229 = math.tanh %1228 : vector<1x32xf32>
    %cst_298 = arith.constant dense<0.000000e+00> : vector<1x8xf32>
    %1230 = tpu.matmul %1229, %29, %cst_298 {dimension_numbers = #tpu.dot_dimension_numbers<[1], [0], [0], [1], [0, 0, 1, 1], [], []>} : vector<1x32xf32>, vector<32x8xf32>, vector<1x8xf32> -> vector<1x8xf32>
    %1231 = arith.addf %1230, %30 : vector<1x8xf32>
    %1232 = arith.mulf %1231, %20 : vector<1x8xf32>
    %1233 = arith.addf %1201, %1232 : vector<1x8xf32>
    %1234 = arith.index_cast %c12_i32 : i32 to index
    %c0_299 = arith.constant 0 : index
    %1235 = vector.load %arg7[%1234, %c0_299] : memref<16x8xf32, #tpu.memory_space<vmem>>, vector<1x8xf32>
    tpu.vector_store %arg7[%1234, %c0_299], %1233 {strides = array<i32>} : memref<16x8xf32, #tpu.memory_space<vmem>>, vector<1x8xf32>,
    %1236 = math.exp %1231 : vector<1x8xf32>
    %1237 = tpu.reciprocal %1236 {approx = true} : vector<1x8xf32> -> vector<1x8xf32>
    %1238 = arith.subf %1236, %1237 : vector<1x8xf32>
    %cst_300 = arith.constant 5.000000e-01 : f32
    %1239 = vector.broadcast %cst_300 : f32 to vector<1x8xf32>
    %1240 = arith.mulf %1239, %1238 : vector<1x8xf32>
    %1241 = arith.mulf %1201, %4 : vector<1x8xf32>
    %cst_301 = arith.constant dense<0.000000e+00> : vector<1xf32>
    %1242 = vector.multi_reduction <add>, %1241, %cst_301 [1] : vector<1x8xf32> to vector<1xf32>
    %1243 = vector.shape_cast %1242 : vector<1xf32> to vector<1x1xf32>
    %1244 = arith.mulf %1201, %8 : vector<1x8xf32>
    %cst_302 = arith.constant dense<0.000000e+00> : vector<1xf32>
    %1245 = vector.multi_reduction <add>, %1244, %cst_302 [1] : vector<1x8xf32> to vector<1xf32>
    %1246 = vector.shape_cast %1245 : vector<1xf32> to vector<1x1xf32>
    %cst_303 = arith.constant 0.000000e+00 : f32
    %1247 = arith.subf %cst_303, %1205 : f32
    %1248 = vector.broadcast %1247 : f32 to vector<1x8xf32>
    %1249 = arith.mulf %1248, %4 : vector<1x8xf32>
    %1250 = vector.broadcast %1243 : vector<1x1xf32> to vector<1x8xf32>
    %1251 = arith.mulf %1250, %12 : vector<1x8xf32>
    %1252 = arith.addf %1249, %1251 : vector<1x8xf32>
    %1253 = arith.addf %16, %20 : vector<1x8xf32>
    %1254 = vector.broadcast %1246 : vector<1x1xf32> to vector<1x8xf32>
    %1255 = arith.mulf %1254, %1253 : vector<1x8xf32>
    %1256 = arith.addf %1252, %1255 : vector<1x8xf32>
    %cst_304 = arith.constant 5.000000e+00 : f32
    %1257 = vector.broadcast %cst_304 : f32 to vector<1x8xf32>
    %1258 = arith.mulf %1257, %1256 : vector<1x8xf32>
    %1259 = math.tanh %1258 : vector<1x8xf32>
    %cst_305 = arith.constant 1.000000e+00 : f32
    %1260 = vector.broadcast %cst_305 : f32 to vector<1x8xf32>
    %1261 = arith.addf %1259, %1260 : vector<1x8xf32>
    %cst_306 = arith.constant 5.000000e-01 : f32
    %1262 = vector.broadcast %cst_306 : f32 to vector<1x8xf32>
    %1263 = arith.mulf %1261, %1262 : vector<1x8xf32>
    %1264 = arith.mulf %1240, %1263 : vector<1x8xf32>
    %cst_307 = arith.constant 0.000000e+00 : f32
    %1265 = vector.broadcast %cst_307 : f32 to vector<1x8xf32>
    %1266 = arith.maximumf %1264, %1265 : vector<1x8xf32>
    %1267 = arith.mulf %1266, %4 : vector<1x8xf32>
    %cst_308 = arith.constant 0.000000e+00 : f32
    %1268 = vector.broadcast %cst_308 : f32 to vector<1x8xf32>
    %1269 = arith.maximumf %1240, %1268 : vector<1x8xf32>
    %1270 = arith.mulf %1269, %8 : vector<1x8xf32>
    %1271 = arith.addf %1267, %1270 : vector<1x8xf32>
    %1272 = arith.mulf %1263, %1240 : vector<1x8xf32>
    %cst_309 = arith.constant 0.000000e+00 : f32
    %1273 = vector.broadcast %cst_309 : f32 to vector<1x8xf32>
    %1274 = arith.maximumf %1272, %1273 : vector<1x8xf32>
    %1275 = arith.mulf %1274, %12 : vector<1x8xf32>
    %1276 = arith.addf %1271, %1275 : vector<1x8xf32>
    %1277 = arith.mulf %1263, %1236 : vector<1x8xf32>
    %1278 = vector.broadcast %1207 : f32 to vector<1x8xf32>
    %1279 = arith.mulf %1277, %1278 : vector<1x8xf32>
    %1280 = arith.mulf %1279, %16 : vector<1x8xf32>
    %1281 = arith.addf %1276, %1280 : vector<1x8xf32>
    %1282 = arith.mulf %1263, %1236 : vector<1x8xf32>
    %1283 = arith.mulf %1282, %20 : vector<1x8xf32>
    %1284 = arith.addf %1281, %1283 : vector<1x8xf32>
    %1285 = arith.mulf %1284, %21 : vector<1x8xf32>
    %cst_310 = arith.constant dense<0.000000e+00> : vector<1xf32>
    %1286 = vector.multi_reduction <add>, %1285, %cst_310 [1] : vector<1x8xf32> to vector<1xf32>
    %1287 = vector.shape_cast %1286 : vector<1xf32> to vector<1x1xf32>
    %1288 = arith.mulf %1284, %24 : vector<1x8xf32>
    %cst_311 = arith.constant dense<0.000000e+00> : vector<1xf32>
    %1289 = vector.multi_reduction <add>, %1288, %cst_311 [1] : vector<1x8xf32> to vector<1xf32>
    %1290 = vector.shape_cast %1289 : vector<1xf32> to vector<1x1xf32>
    %1291 = vector.broadcast %1287 : vector<1x1xf32> to vector<1x8xf32>
    %1292 = arith.mulf %1291, %4 : vector<1x8xf32>
    %1293 = vector.broadcast %1290 : vector<1x1xf32> to vector<1x8xf32>
    %1294 = arith.mulf %1293, %8 : vector<1x8xf32>
    %1295 = arith.addf %1292, %1294 : vector<1x8xf32>
    %1296 = vector.broadcast %1214 : f32 to vector<1x8xf32>
    %1297 = arith.mulf %1296, %1295 : vector<1x8xf32>
    %1298 = arith.addf %1201, %1297 : vector<1x8xf32>
    %c13_i32 = arith.constant 13 : i32
    %c2_312 = arith.constant 2 : index
    %1299 = arith.index_cast %c13_i32 : i32 to index
    %1300 = memref.load %arg0[%c2_312, %1299] : memref<6x16xf32, #tpu.memory_space<smem>>
    %c3_313 = arith.constant 3 : index
    %1301 = arith.index_cast %c13_i32 : i32 to index
    %1302 = memref.load %arg0[%c3_313, %1301] : memref<6x16xf32, #tpu.memory_space<smem>>
    %c4_314 = arith.constant 4 : index
    %1303 = arith.index_cast %c13_i32 : i32 to index
    %1304 = memref.load %arg0[%c4_314, %1303] : memref<6x16xf32, #tpu.memory_space<smem>>
    %c1_i32_315 = arith.constant 1 : i32
    %1305 = arith.addi %c13_i32, %c1_i32_315 : i32
    %c15_i32_316 = arith.constant 15 : i32
    %1306 = arith.minsi %1305, %c15_i32_316 : i32
    %c5_317 = arith.constant 5 : index
    %1307 = arith.index_cast %1306 : i32 to index
    %1308 = memref.load %arg0[%c5_317, %1307] : memref<6x16xf32, #tpu.memory_space<smem>>
    %c5_318 = arith.constant 5 : index
    %1309 = arith.index_cast %c13_i32 : i32 to index
    %1310 = memref.load %arg0[%c5_318, %1309] : memref<6x16xf32, #tpu.memory_space<smem>>
    %1311 = arith.subf %1308, %1310 : f32
    %1312 = vector.broadcast %1300 : f32 to vector<1x8xf32>
    %1313 = arith.mulf %1312, %12 : vector<1x8xf32>
    %1314 = arith.addf %1298, %1313 : vector<1x8xf32>
    %1315 = vector.broadcast %1302 : f32 to vector<1x8xf32>
    %1316 = arith.mulf %1315, %16 : vector<1x8xf32>
    %1317 = arith.addf %1314, %1316 : vector<1x8xf32>
    %1318 = vector.broadcast %1304 : f32 to vector<1x8xf32>
    %1319 = arith.mulf %1318, %20 : vector<1x8xf32>
    %1320 = arith.addf %1317, %1319 : vector<1x8xf32>
    %cst_319 = arith.constant dense<0.000000e+00> : vector<1x32xf32>
    %1321 = tpu.matmul %1320, %25, %cst_319 {dimension_numbers = #tpu.dot_dimension_numbers<[1], [0], [0], [1], [0, 0, 1, 1], [], []>} : vector<1x8xf32>, vector<8x32xf32>, vector<1x32xf32> -> vector<1x32xf32>
    %1322 = arith.addf %1321, %26 : vector<1x32xf32>
    %1323 = math.tanh %1322 : vector<1x32xf32>
    %cst_320 = arith.constant dense<0.000000e+00> : vector<1x32xf32>
    %1324 = tpu.matmul %1323, %27, %cst_320 {dimension_numbers = #tpu.dot_dimension_numbers<[1], [0], [0], [1], [0, 0, 1, 1], [], []>} : vector<1x32xf32>, vector<32x32xf32>, vector<1x32xf32> -> vector<1x32xf32>
    %1325 = arith.addf %1324, %28 : vector<1x32xf32>
    %1326 = math.tanh %1325 : vector<1x32xf32>
    %cst_321 = arith.constant dense<0.000000e+00> : vector<1x8xf32>
    %1327 = tpu.matmul %1326, %29, %cst_321 {dimension_numbers = #tpu.dot_dimension_numbers<[1], [0], [0], [1], [0, 0, 1, 1], [], []>} : vector<1x32xf32>, vector<32x8xf32>, vector<1x8xf32> -> vector<1x8xf32>
    %1328 = arith.addf %1327, %30 : vector<1x8xf32>
    %1329 = arith.mulf %1328, %20 : vector<1x8xf32>
    %1330 = arith.addf %1298, %1329 : vector<1x8xf32>
    %1331 = arith.index_cast %c13_i32 : i32 to index
    %c0_322 = arith.constant 0 : index
    %1332 = vector.load %arg7[%1331, %c0_322] : memref<16x8xf32, #tpu.memory_space<vmem>>, vector<1x8xf32>
    tpu.vector_store %arg7[%1331, %c0_322], %1330 {strides = array<i32>} : memref<16x8xf32, #tpu.memory_space<vmem>>, vector<1x8xf32>,
    %1333 = math.exp %1328 : vector<1x8xf32>
    %1334 = tpu.reciprocal %1333 {approx = true} : vector<1x8xf32> -> vector<1x8xf32>
    %1335 = arith.subf %1333, %1334 : vector<1x8xf32>
    %cst_323 = arith.constant 5.000000e-01 : f32
    %1336 = vector.broadcast %cst_323 : f32 to vector<1x8xf32>
    %1337 = arith.mulf %1336, %1335 : vector<1x8xf32>
    %1338 = arith.mulf %1298, %4 : vector<1x8xf32>
    %cst_324 = arith.constant dense<0.000000e+00> : vector<1xf32>
    %1339 = vector.multi_reduction <add>, %1338, %cst_324 [1] : vector<1x8xf32> to vector<1xf32>
    %1340 = vector.shape_cast %1339 : vector<1xf32> to vector<1x1xf32>
    %1341 = arith.mulf %1298, %8 : vector<1x8xf32>
    %cst_325 = arith.constant dense<0.000000e+00> : vector<1xf32>
    %1342 = vector.multi_reduction <add>, %1341, %cst_325 [1] : vector<1x8xf32> to vector<1xf32>
    %1343 = vector.shape_cast %1342 : vector<1xf32> to vector<1x1xf32>
    %cst_326 = arith.constant 0.000000e+00 : f32
    %1344 = arith.subf %cst_326, %1302 : f32
    %1345 = vector.broadcast %1344 : f32 to vector<1x8xf32>
    %1346 = arith.mulf %1345, %4 : vector<1x8xf32>
    %1347 = vector.broadcast %1340 : vector<1x1xf32> to vector<1x8xf32>
    %1348 = arith.mulf %1347, %12 : vector<1x8xf32>
    %1349 = arith.addf %1346, %1348 : vector<1x8xf32>
    %1350 = arith.addf %16, %20 : vector<1x8xf32>
    %1351 = vector.broadcast %1343 : vector<1x1xf32> to vector<1x8xf32>
    %1352 = arith.mulf %1351, %1350 : vector<1x8xf32>
    %1353 = arith.addf %1349, %1352 : vector<1x8xf32>
    %cst_327 = arith.constant 5.000000e+00 : f32
    %1354 = vector.broadcast %cst_327 : f32 to vector<1x8xf32>
    %1355 = arith.mulf %1354, %1353 : vector<1x8xf32>
    %1356 = math.tanh %1355 : vector<1x8xf32>
    %cst_328 = arith.constant 1.000000e+00 : f32
    %1357 = vector.broadcast %cst_328 : f32 to vector<1x8xf32>
    %1358 = arith.addf %1356, %1357 : vector<1x8xf32>
    %cst_329 = arith.constant 5.000000e-01 : f32
    %1359 = vector.broadcast %cst_329 : f32 to vector<1x8xf32>
    %1360 = arith.mulf %1358, %1359 : vector<1x8xf32>
    %1361 = arith.mulf %1337, %1360 : vector<1x8xf32>
    %cst_330 = arith.constant 0.000000e+00 : f32
    %1362 = vector.broadcast %cst_330 : f32 to vector<1x8xf32>
    %1363 = arith.maximumf %1361, %1362 : vector<1x8xf32>
    %1364 = arith.mulf %1363, %4 : vector<1x8xf32>
    %cst_331 = arith.constant 0.000000e+00 : f32
    %1365 = vector.broadcast %cst_331 : f32 to vector<1x8xf32>
    %1366 = arith.maximumf %1337, %1365 : vector<1x8xf32>
    %1367 = arith.mulf %1366, %8 : vector<1x8xf32>
    %1368 = arith.addf %1364, %1367 : vector<1x8xf32>
    %1369 = arith.mulf %1360, %1337 : vector<1x8xf32>
    %cst_332 = arith.constant 0.000000e+00 : f32
    %1370 = vector.broadcast %cst_332 : f32 to vector<1x8xf32>
    %1371 = arith.maximumf %1369, %1370 : vector<1x8xf32>
    %1372 = arith.mulf %1371, %12 : vector<1x8xf32>
    %1373 = arith.addf %1368, %1372 : vector<1x8xf32>
    %1374 = arith.mulf %1360, %1333 : vector<1x8xf32>
    %1375 = vector.broadcast %1304 : f32 to vector<1x8xf32>
    %1376 = arith.mulf %1374, %1375 : vector<1x8xf32>
    %1377 = arith.mulf %1376, %16 : vector<1x8xf32>
    %1378 = arith.addf %1373, %1377 : vector<1x8xf32>
    %1379 = arith.mulf %1360, %1333 : vector<1x8xf32>
    %1380 = arith.mulf %1379, %20 : vector<1x8xf32>
    %1381 = arith.addf %1378, %1380 : vector<1x8xf32>
    %1382 = arith.mulf %1381, %21 : vector<1x8xf32>
    %cst_333 = arith.constant dense<0.000000e+00> : vector<1xf32>
    %1383 = vector.multi_reduction <add>, %1382, %cst_333 [1] : vector<1x8xf32> to vector<1xf32>
    %1384 = vector.shape_cast %1383 : vector<1xf32> to vector<1x1xf32>
    %1385 = arith.mulf %1381, %24 : vector<1x8xf32>
    %cst_334 = arith.constant dense<0.000000e+00> : vector<1xf32>
    %1386 = vector.multi_reduction <add>, %1385, %cst_334 [1] : vector<1x8xf32> to vector<1xf32>
    %1387 = vector.shape_cast %1386 : vector<1xf32> to vector<1x1xf32>
    %1388 = vector.broadcast %1384 : vector<1x1xf32> to vector<1x8xf32>
    %1389 = arith.mulf %1388, %4 : vector<1x8xf32>
    %1390 = vector.broadcast %1387 : vector<1x1xf32> to vector<1x8xf32>
    %1391 = arith.mulf %1390, %8 : vector<1x8xf32>
    %1392 = arith.addf %1389, %1391 : vector<1x8xf32>
    %1393 = vector.broadcast %1311 : f32 to vector<1x8xf32>
    %1394 = arith.mulf %1393, %1392 : vector<1x8xf32>
    %1395 = arith.addf %1298, %1394 : vector<1x8xf32>
    %c14_i32 = arith.constant 14 : i32
    %c2_335 = arith.constant 2 : index
    %1396 = arith.index_cast %c14_i32 : i32 to index
    %1397 = memref.load %arg0[%c2_335, %1396] : memref<6x16xf32, #tpu.memory_space<smem>>
    %c3_336 = arith.constant 3 : index
    %1398 = arith.index_cast %c14_i32 : i32 to index
    %1399 = memref.load %arg0[%c3_336, %1398] : memref<6x16xf32, #tpu.memory_space<smem>>
    %c4_337 = arith.constant 4 : index
    %1400 = arith.index_cast %c14_i32 : i32 to index
    %1401 = memref.load %arg0[%c4_337, %1400] : memref<6x16xf32, #tpu.memory_space<smem>>
    %c1_i32_338 = arith.constant 1 : i32
    %1402 = arith.addi %c14_i32, %c1_i32_338 : i32
    %c15_i32_339 = arith.constant 15 : i32
    %1403 = arith.minsi %1402, %c15_i32_339 : i32
    %c5_340 = arith.constant 5 : index
    %1404 = arith.index_cast %1403 : i32 to index
    %1405 = memref.load %arg0[%c5_340, %1404] : memref<6x16xf32, #tpu.memory_space<smem>>
    %c5_341 = arith.constant 5 : index
    %1406 = arith.index_cast %c14_i32 : i32 to index
    %1407 = memref.load %arg0[%c5_341, %1406] : memref<6x16xf32, #tpu.memory_space<smem>>
    %1408 = arith.subf %1405, %1407 : f32
    %1409 = vector.broadcast %1397 : f32 to vector<1x8xf32>
    %1410 = arith.mulf %1409, %12 : vector<1x8xf32>
    %1411 = arith.addf %1395, %1410 : vector<1x8xf32>
    %1412 = vector.broadcast %1399 : f32 to vector<1x8xf32>
    %1413 = arith.mulf %1412, %16 : vector<1x8xf32>
    %1414 = arith.addf %1411, %1413 : vector<1x8xf32>
    %1415 = vector.broadcast %1401 : f32 to vector<1x8xf32>
    %1416 = arith.mulf %1415, %20 : vector<1x8xf32>
    %1417 = arith.addf %1414, %1416 : vector<1x8xf32>
    %cst_342 = arith.constant dense<0.000000e+00> : vector<1x32xf32>
    %1418 = tpu.matmul %1417, %25, %cst_342 {dimension_numbers = #tpu.dot_dimension_numbers<[1], [0], [0], [1], [0, 0, 1, 1], [], []>} : vector<1x8xf32>, vector<8x32xf32>, vector<1x32xf32> -> vector<1x32xf32>
    %1419 = arith.addf %1418, %26 : vector<1x32xf32>
    %1420 = math.tanh %1419 : vector<1x32xf32>
    %cst_343 = arith.constant dense<0.000000e+00> : vector<1x32xf32>
    %1421 = tpu.matmul %1420, %27, %cst_343 {dimension_numbers = #tpu.dot_dimension_numbers<[1], [0], [0], [1], [0, 0, 1, 1], [], []>} : vector<1x32xf32>, vector<32x32xf32>, vector<1x32xf32> -> vector<1x32xf32>
    %1422 = arith.addf %1421, %28 : vector<1x32xf32>
    %1423 = math.tanh %1422 : vector<1x32xf32>
    %cst_344 = arith.constant dense<0.000000e+00> : vector<1x8xf32>
    %1424 = tpu.matmul %1423, %29, %cst_344 {dimension_numbers = #tpu.dot_dimension_numbers<[1], [0], [0], [1], [0, 0, 1, 1], [], []>} : vector<1x32xf32>, vector<32x8xf32>, vector<1x8xf32> -> vector<1x8xf32>
    %1425 = arith.addf %1424, %30 : vector<1x8xf32>
    %1426 = arith.mulf %1425, %20 : vector<1x8xf32>
    %1427 = arith.addf %1395, %1426 : vector<1x8xf32>
    %1428 = arith.index_cast %c14_i32 : i32 to index
    %c0_345 = arith.constant 0 : index
    %1429 = vector.load %arg7[%1428, %c0_345] : memref<16x8xf32, #tpu.memory_space<vmem>>, vector<1x8xf32>
    tpu.vector_store %arg7[%1428, %c0_345], %1427 {strides = array<i32>} : memref<16x8xf32, #tpu.memory_space<vmem>>, vector<1x8xf32>,
    %1430 = math.exp %1425 : vector<1x8xf32>
    %1431 = tpu.reciprocal %1430 {approx = true} : vector<1x8xf32> -> vector<1x8xf32>
    %1432 = arith.subf %1430, %1431 : vector<1x8xf32>
    %cst_346 = arith.constant 5.000000e-01 : f32
    %1433 = vector.broadcast %cst_346 : f32 to vector<1x8xf32>
    %1434 = arith.mulf %1433, %1432 : vector<1x8xf32>
    %1435 = arith.mulf %1395, %4 : vector<1x8xf32>
    %cst_347 = arith.constant dense<0.000000e+00> : vector<1xf32>
    %1436 = vector.multi_reduction <add>, %1435, %cst_347 [1] : vector<1x8xf32> to vector<1xf32>
    %1437 = vector.shape_cast %1436 : vector<1xf32> to vector<1x1xf32>
    %1438 = arith.mulf %1395, %8 : vector<1x8xf32>
    %cst_348 = arith.constant dense<0.000000e+00> : vector<1xf32>
    %1439 = vector.multi_reduction <add>, %1438, %cst_348 [1] : vector<1x8xf32> to vector<1xf32>
    %1440 = vector.shape_cast %1439 : vector<1xf32> to vector<1x1xf32>
    %cst_349 = arith.constant 0.000000e+00 : f32
    %1441 = arith.subf %cst_349, %1399 : f32
    %1442 = vector.broadcast %1441 : f32 to vector<1x8xf32>
    %1443 = arith.mulf %1442, %4 : vector<1x8xf32>
    %1444 = vector.broadcast %1437 : vector<1x1xf32> to vector<1x8xf32>
    %1445 = arith.mulf %1444, %12 : vector<1x8xf32>
    %1446 = arith.addf %1443, %1445 : vector<1x8xf32>
    %1447 = arith.addf %16, %20 : vector<1x8xf32>
    %1448 = vector.broadcast %1440 : vector<1x1xf32> to vector<1x8xf32>
    %1449 = arith.mulf %1448, %1447 : vector<1x8xf32>
    %1450 = arith.addf %1446, %1449 : vector<1x8xf32>
    %cst_350 = arith.constant 5.000000e+00 : f32
    %1451 = vector.broadcast %cst_350 : f32 to vector<1x8xf32>
    %1452 = arith.mulf %1451, %1450 : vector<1x8xf32>
    %1453 = math.tanh %1452 : vector<1x8xf32>
    %cst_351 = arith.constant 1.000000e+00 : f32
    %1454 = vector.broadcast %cst_351 : f32 to vector<1x8xf32>
    %1455 = arith.addf %1453, %1454 : vector<1x8xf32>
    %cst_352 = arith.constant 5.000000e-01 : f32
    %1456 = vector.broadcast %cst_352 : f32 to vector<1x8xf32>
    %1457 = arith.mulf %1455, %1456 : vector<1x8xf32>
    %1458 = arith.mulf %1434, %1457 : vector<1x8xf32>
    %cst_353 = arith.constant 0.000000e+00 : f32
    %1459 = vector.broadcast %cst_353 : f32 to vector<1x8xf32>
    %1460 = arith.maximumf %1458, %1459 : vector<1x8xf32>
    %1461 = arith.mulf %1460, %4 : vector<1x8xf32>
    %cst_354 = arith.constant 0.000000e+00 : f32
    %1462 = vector.broadcast %cst_354 : f32 to vector<1x8xf32>
    %1463 = arith.maximumf %1434, %1462 : vector<1x8xf32>
    %1464 = arith.mulf %1463, %8 : vector<1x8xf32>
    %1465 = arith.addf %1461, %1464 : vector<1x8xf32>
    %1466 = arith.mulf %1457, %1434 : vector<1x8xf32>
    %cst_355 = arith.constant 0.000000e+00 : f32
    %1467 = vector.broadcast %cst_355 : f32 to vector<1x8xf32>
    %1468 = arith.maximumf %1466, %1467 : vector<1x8xf32>
    %1469 = arith.mulf %1468, %12 : vector<1x8xf32>
    %1470 = arith.addf %1465, %1469 : vector<1x8xf32>
    %1471 = arith.mulf %1457, %1430 : vector<1x8xf32>
    %1472 = vector.broadcast %1401 : f32 to vector<1x8xf32>
    %1473 = arith.mulf %1471, %1472 : vector<1x8xf32>
    %1474 = arith.mulf %1473, %16 : vector<1x8xf32>
    %1475 = arith.addf %1470, %1474 : vector<1x8xf32>
    %1476 = arith.mulf %1457, %1430 : vector<1x8xf32>
    %1477 = arith.mulf %1476, %20 : vector<1x8xf32>
    %1478 = arith.addf %1475, %1477 : vector<1x8xf32>
    %1479 = arith.mulf %1478, %21 : vector<1x8xf32>
    %cst_356 = arith.constant dense<0.000000e+00> : vector<1xf32>
    %1480 = vector.multi_reduction <add>, %1479, %cst_356 [1] : vector<1x8xf32> to vector<1xf32>
    %1481 = vector.shape_cast %1480 : vector<1xf32> to vector<1x1xf32>
    %1482 = arith.mulf %1478, %24 : vector<1x8xf32>
    %cst_357 = arith.constant dense<0.000000e+00> : vector<1xf32>
    %1483 = vector.multi_reduction <add>, %1482, %cst_357 [1] : vector<1x8xf32> to vector<1xf32>
    %1484 = vector.shape_cast %1483 : vector<1xf32> to vector<1x1xf32>
    %1485 = vector.broadcast %1481 : vector<1x1xf32> to vector<1x8xf32>
    %1486 = arith.mulf %1485, %4 : vector<1x8xf32>
    %1487 = vector.broadcast %1484 : vector<1x1xf32> to vector<1x8xf32>
    %1488 = arith.mulf %1487, %8 : vector<1x8xf32>
    %1489 = arith.addf %1486, %1488 : vector<1x8xf32>
    %1490 = vector.broadcast %1408 : f32 to vector<1x8xf32>
    %1491 = arith.mulf %1490, %1489 : vector<1x8xf32>
    %1492 = arith.addf %1395, %1491 : vector<1x8xf32>
    %c15_i32_358 = arith.constant 15 : i32
    %c2_359 = arith.constant 2 : index
    %1493 = arith.index_cast %c15_i32_358 : i32 to index
    %1494 = memref.load %arg0[%c2_359, %1493] : memref<6x16xf32, #tpu.memory_space<smem>>
    %c3_360 = arith.constant 3 : index
    %1495 = arith.index_cast %c15_i32_358 : i32 to index
    %1496 = memref.load %arg0[%c3_360, %1495] : memref<6x16xf32, #tpu.memory_space<smem>>
    %c4_361 = arith.constant 4 : index
    %1497 = arith.index_cast %c15_i32_358 : i32 to index
    %1498 = memref.load %arg0[%c4_361, %1497] : memref<6x16xf32, #tpu.memory_space<smem>>
    %c1_i32_362 = arith.constant 1 : i32
    %1499 = arith.addi %c15_i32_358, %c1_i32_362 : i32
    %c15_i32_363 = arith.constant 15 : i32
    %1500 = arith.minsi %1499, %c15_i32_363 : i32
    %c5_364 = arith.constant 5 : index
    %1501 = arith.index_cast %1500 : i32 to index
    %1502 = memref.load %arg0[%c5_364, %1501] : memref<6x16xf32, #tpu.memory_space<smem>>
    %c5_365 = arith.constant 5 : index
    %1503 = arith.index_cast %c15_i32_358 : i32 to index
    %1504 = memref.load %arg0[%c5_365, %1503] : memref<6x16xf32, #tpu.memory_space<smem>>
    %1505 = arith.subf %1502, %1504 : f32
    %1506 = vector.broadcast %1494 : f32 to vector<1x8xf32>
    %1507 = arith.mulf %1506, %12 : vector<1x8xf32>
    %1508 = arith.addf %1492, %1507 : vector<1x8xf32>
    %1509 = vector.broadcast %1496 : f32 to vector<1x8xf32>
    %1510 = arith.mulf %1509, %16 : vector<1x8xf32>
    %1511 = arith.addf %1508, %1510 : vector<1x8xf32>
    %1512 = vector.broadcast %1498 : f32 to vector<1x8xf32>
    %1513 = arith.mulf %1512, %20 : vector<1x8xf32>
    %1514 = arith.addf %1511, %1513 : vector<1x8xf32>
    %cst_366 = arith.constant dense<0.000000e+00> : vector<1x32xf32>
    %1515 = tpu.matmul %1514, %25, %cst_366 {dimension_numbers = #tpu.dot_dimension_numbers<[1], [0], [0], [1], [0, 0, 1, 1], [], []>} : vector<1x8xf32>, vector<8x32xf32>, vector<1x32xf32> -> vector<1x32xf32>
    %1516 = arith.addf %1515, %26 : vector<1x32xf32>
    %1517 = math.tanh %1516 : vector<1x32xf32>
    %cst_367 = arith.constant dense<0.000000e+00> : vector<1x32xf32>
    %1518 = tpu.matmul %1517, %27, %cst_367 {dimension_numbers = #tpu.dot_dimension_numbers<[1], [0], [0], [1], [0, 0, 1, 1], [], []>} : vector<1x32xf32>, vector<32x32xf32>, vector<1x32xf32> -> vector<1x32xf32>
    %1519 = arith.addf %1518, %28 : vector<1x32xf32>
    %1520 = math.tanh %1519 : vector<1x32xf32>
    %cst_368 = arith.constant dense<0.000000e+00> : vector<1x8xf32>
    %1521 = tpu.matmul %1520, %29, %cst_368 {dimension_numbers = #tpu.dot_dimension_numbers<[1], [0], [0], [1], [0, 0, 1, 1], [], []>} : vector<1x32xf32>, vector<32x8xf32>, vector<1x8xf32> -> vector<1x8xf32>
    %1522 = arith.addf %1521, %30 : vector<1x8xf32>
    %1523 = arith.mulf %1522, %20 : vector<1x8xf32>
    %1524 = arith.addf %1492, %1523 : vector<1x8xf32>
    %1525 = arith.index_cast %c15_i32_358 : i32 to index
    %c0_369 = arith.constant 0 : index
    %1526 = vector.load %arg7[%1525, %c0_369] : memref<16x8xf32, #tpu.memory_space<vmem>>, vector<1x8xf32>
    tpu.vector_store %arg7[%1525, %c0_369], %1524 {strides = array<i32>} : memref<16x8xf32, #tpu.memory_space<vmem>>, vector<1x8xf32>,
    %1527 = math.exp %1522 : vector<1x8xf32>
    %1528 = tpu.reciprocal %1527 {approx = true} : vector<1x8xf32> -> vector<1x8xf32>
    %1529 = arith.subf %1527, %1528 : vector<1x8xf32>
    %cst_370 = arith.constant 5.000000e-01 : f32
    %1530 = vector.broadcast %cst_370 : f32 to vector<1x8xf32>
    %1531 = arith.mulf %1530, %1529 : vector<1x8xf32>
    %1532 = arith.mulf %1492, %4 : vector<1x8xf32>
    %cst_371 = arith.constant dense<0.000000e+00> : vector<1xf32>
    %1533 = vector.multi_reduction <add>, %1532, %cst_371 [1] : vector<1x8xf32> to vector<1xf32>
    %1534 = vector.shape_cast %1533 : vector<1xf32> to vector<1x1xf32>
    %1535 = arith.mulf %1492, %8 : vector<1x8xf32>
    %cst_372 = arith.constant dense<0.000000e+00> : vector<1xf32>
    %1536 = vector.multi_reduction <add>, %1535, %cst_372 [1] : vector<1x8xf32> to vector<1xf32>
    %1537 = vector.shape_cast %1536 : vector<1xf32> to vector<1x1xf32>
    %cst_373 = arith.constant 0.000000e+00 : f32
    %1538 = arith.subf %cst_373, %1496 : f32
    %1539 = vector.broadcast %1538 : f32 to vector<1x8xf32>
    %1540 = arith.mulf %1539, %4 : vector<1x8xf32>
    %1541 = vector.broadcast %1534 : vector<1x1xf32> to vector<1x8xf32>
    %1542 = arith.mulf %1541, %12 : vector<1x8xf32>
    %1543 = arith.addf %1540, %1542 : vector<1x8xf32>
    %1544 = arith.addf %16, %20 : vector<1x8xf32>
    %1545 = vector.broadcast %1537 : vector<1x1xf32> to vector<1x8xf32>
    %1546 = arith.mulf %1545, %1544 : vector<1x8xf32>
    %1547 = arith.addf %1543, %1546 : vector<1x8xf32>
    %cst_374 = arith.constant 5.000000e+00 : f32
    %1548 = vector.broadcast %cst_374 : f32 to vector<1x8xf32>
    %1549 = arith.mulf %1548, %1547 : vector<1x8xf32>
    %1550 = math.tanh %1549 : vector<1x8xf32>
    %cst_375 = arith.constant 1.000000e+00 : f32
    %1551 = vector.broadcast %cst_375 : f32 to vector<1x8xf32>
    %1552 = arith.addf %1550, %1551 : vector<1x8xf32>
    %cst_376 = arith.constant 5.000000e-01 : f32
    %1553 = vector.broadcast %cst_376 : f32 to vector<1x8xf32>
    %1554 = arith.mulf %1552, %1553 : vector<1x8xf32>
    %1555 = arith.mulf %1531, %1554 : vector<1x8xf32>
    %cst_377 = arith.constant 0.000000e+00 : f32
    %1556 = vector.broadcast %cst_377 : f32 to vector<1x8xf32>
    %1557 = arith.maximumf %1555, %1556 : vector<1x8xf32>
    %1558 = arith.mulf %1557, %4 : vector<1x8xf32>
    %cst_378 = arith.constant 0.000000e+00 : f32
    %1559 = vector.broadcast %cst_378 : f32 to vector<1x8xf32>
    %1560 = arith.maximumf %1531, %1559 : vector<1x8xf32>
    %1561 = arith.mulf %1560, %8 : vector<1x8xf32>
    %1562 = arith.addf %1558, %1561 : vector<1x8xf32>
    %1563 = arith.mulf %1554, %1531 : vector<1x8xf32>
    %cst_379 = arith.constant 0.000000e+00 : f32
    %1564 = vector.broadcast %cst_379 : f32 to vector<1x8xf32>
    %1565 = arith.maximumf %1563, %1564 : vector<1x8xf32>
    %1566 = arith.mulf %1565, %12 : vector<1x8xf32>
    %1567 = arith.addf %1562, %1566 : vector<1x8xf32>
    %1568 = arith.mulf %1554, %1527 : vector<1x8xf32>
    %1569 = vector.broadcast %1498 : f32 to vector<1x8xf32>
    %1570 = arith.mulf %1568, %1569 : vector<1x8xf32>
    %1571 = arith.mulf %1570, %16 : vector<1x8xf32>
    %1572 = arith.addf %1567, %1571 : vector<1x8xf32>
    %1573 = arith.mulf %1554, %1527 : vector<1x8xf32>
    %1574 = arith.mulf %1573, %20 : vector<1x8xf32>
    %1575 = arith.addf %1572, %1574 : vector<1x8xf32>
    %1576 = arith.mulf %1575, %21 : vector<1x8xf32>
    %cst_380 = arith.constant dense<0.000000e+00> : vector<1xf32>
    %1577 = vector.multi_reduction <add>, %1576, %cst_380 [1] : vector<1x8xf32> to vector<1xf32>
    %1578 = vector.shape_cast %1577 : vector<1xf32> to vector<1x1xf32>
    %1579 = arith.mulf %1575, %24 : vector<1x8xf32>
    %cst_381 = arith.constant dense<0.000000e+00> : vector<1xf32>
    %1580 = vector.multi_reduction <add>, %1579, %cst_381 [1] : vector<1x8xf32> to vector<1xf32>
    %1581 = vector.shape_cast %1580 : vector<1xf32> to vector<1x1xf32>
    %1582 = vector.broadcast %1578 : vector<1x1xf32> to vector<1x8xf32>
    %1583 = arith.mulf %1582, %4 : vector<1x8xf32>
    %1584 = vector.broadcast %1581 : vector<1x1xf32> to vector<1x8xf32>
    %1585 = arith.mulf %1584, %8 : vector<1x8xf32>
    %1586 = arith.addf %1583, %1585 : vector<1x8xf32>
    %1587 = vector.broadcast %1505 : f32 to vector<1x8xf32>
    %1588 = arith.mulf %1587, %1586 : vector<1x8xf32>
    %1589 = arith.addf %1492, %1588 : vector<1x8xf32>
    %c16_i32 = arith.constant 16 : i32
    return
  }
}

</mosaic_0001>

<bundles_post_ra>
// kernel: exphydro_m100_forward.1
= control target key start
LH: loop header
LB: loop body
LE: loop exit
PB: predicated region body
PF: predicated region fallthrough
CT: control target
= control target key end

     0   :  { %12 = vsyncpa [#allocation4], 0  ;;  %s3855_s0 = inlined_call_operand.vmem [shape: f32[6,16], index: 0, kind: input, shape index: {}]   ;;  %s3856_s1 = inlined_call_operand.hbm [shape: f32[8,32], index: 1, kind: input, shape index: {}]   ;;  %s3857_s2 = inlined_call_operand.vmem [shape: f32[1,32], index: 2, kind: input, shape index: {}]   ;;  %s3858_s3 = inlined_call_operand.vmem [shape: f32[32,32], index: 3, kind: input, shape index: {}]   ;;  %s3859_s4 = inlined_call_operand.vmem [shape: f32[1,32], index: 4, kind: input, shape index: {}]   ;;  %s3860_s5 = inlined_call_operand.vmem [shape: f32[32,8], index: 5, kind: input, shape index: {}]   ;;  %s3861_s6 = inlined_call_operand.vmem [shape: f32[1,8], index: 6, kind: input, shape index: {}]   ;;  %s3862_s7 = inlined_call_operand.vmem [shape: f32[16,8], index: 7, kind: output, shape index: {}]  }
   0x1   :  { %s19_s26 = sshll.u32 %s3855_s0, 4  ;;  %s20_s26 = int_to_ptr.vmem [resolvable:$true] %s19_s26 }
   0x2   :  { %13 = vsyncpa [#allocation3], 0  ;;  %s28_s29 = sshll.u32 %s3856_s1, 4  ;;  %s2657_s30 = smov [#allocation2]   ;;  %s29_s29 = int_to_ptr.hbm [resolvable:$true] %s28_s29 }
   0x3   :  { %22 = dma.vmem_to_smem %s20_s26, 128, %s2657_s30, [#allocation4]  }
   0x4   :  { %s2658_s8 = smov [#allocation5]  }
   0x5   :  { %s30_s9 = sshll.u32 %s2658_s8, 4  ;;  %s31_s9 = int_to_ptr.vmem [resolvable:$true] %s30_s9 }
   0x6   :  { %33 = dma.hbm_to_vmem [thread:$0]  %s29_s29, 128, %s31_s9, [#allocation3]  }
   0x7   :  { %2653 = dma.done.wait [#allocation4], 128  }
   0x8   :  { %2654 = vsyncadd [#allocation4], 4294967168 }
   0x9   :  { %2655 = dma.done.wait [#allocation3], 128  }
   0xa   :  { %2656 = vsyncadd [#allocation3], 4294967168 }
   0xb   :  { %52 = sfence }
   0xc   :  { %v2706_v0 = vld [vmem:[#allocation5] sm:$0xff]  ;;  %v53_v1 = vlaneseq  ;;  %s86_s0 = sld [smem:[#allocation2]]  ;;  %v2659_v3 = vmov 0.0   ;;  %vm108_vm5 = vcmask 64512   ;;  %v2740_v23 = vld [vmem:[%s3858_s3 + $0x18] sm:$0xff]  ;;  %v2746_v24 = vld [vmem:[%s3858_s3 + $0x10] sm:$0xff] }
   0xd   :  { %127 = vmatpush.msra.mxu0 %v2706_v0  ;;  %s2309_s10 = sld [smem:[#allocation2 + $0x80]]  ;;  %271 = vmatpush.msra.mxu3 %v2706_v0  ;;  %v2752_v25 = vld [vmem:[%s3858_s3 + $0x8] sm:$0xff]  ;;  %v2759_v26 = vld [vmem:[%s3858_s3] sm:$0xff]  ;;  %vm133_vm6 = vcmask 261120   ;;  %v2780_v31 = vld [vmem:[%s3860_s5 + $0x18] sm:$0xff]  ;;  %vm183_vm7 = vcmask 57344  }
   0xe   :  { %v54_v2 = vand.u32 127, %v53_v1  ;;  %s2310_s1 = sld [smem:[#allocation2 + $0x100]]  ;;  %149 = vmatpush.msra.mxu1 %v2740_v23  ;;  %v2769_v27 = vld [vmem:[%s3857_s2] sm:$0x1]  ;;  %173 = vmatpush.msra.mxu2 %v2780_v31  ;;  %v2786_v32 = vld [vmem:[%s3860_s5 + $0x10] sm:$0xff]  ;;  %v2792_v33 = vld [vmem:[%s3860_s5 + $0x8] sm:$0xff] }
   0xf   :  { %s2710_s11 = sld [smem:[#allocation2 + $0x180]]  ;;  %292 = vmatpush.msrb.mxu0 %v2740_v23  ;;  %316 = vmatpush.msrb.mxu3 %v2780_v31  ;;  %v2800_v34 = vld [vmem:[%s3860_s5] sm:$0xff] }
  0x10   :  { %vm55_vm0 = vcmp.eq.s32.totalorder %v54_v2, 0  ;;  %vm58_vm1 = vcmp.eq.s32.totalorder %v54_v2, 1  ;;  %vm61_vm2 = vcmp.eq.s32.totalorder %v54_v2, 2  ;;  %vm64_vm3 = vcmp.eq.s32.totalorder %v54_v2, 3  ;;  %s2712_s12 = sld [smem:[#allocation2 + $0x200]]  ;;  %150 = vmatpush.msra.mxu1 %v2746_v24  ;;  %174 = vmatpush.msra.mxu2 %v2786_v32 }
  0x11   :  { %v2714_v4 = vsel %vm55_vm0, 1.0, %v2659_v3  ;;  %v2716_v5 = vsel %vm58_vm1, 1.0, %v2659_v3  ;;  %v2718_v6 = vsel %vm61_vm2, 1.0, %v2659_v3  ;;  %vm67_vm4 = vcmp.eq.s32.totalorder %v54_v2, 4  ;;  %293 = vmatpush.msrb.mxu0 %v2746_v24  ;;  %317 = vmatpush.msrb.mxu3 %v2786_v32  ;;  %v2822_v39 = vld [vmem:[%s3859_s4] sm:$0x1] }
  0x12   :  { %v87_v7 = vstv %s86_s0  ;;  %v2720_v8 = vsel %vm64_vm3, 1.0, %v2659_v3  ;;  %v2724_v13 = vsel %vm67_vm4, 1.0, %v2659_v3  ;;  %151 = vmatpush.msra.mxu1 %v2752_v25  ;;  %175 = vmatpush.msra.mxu2 %v2792_v33  ;;  %v2841_v52 = vld [vmem:[%s3861_s6] sm:$0x1]  ;;  %s2314_s14 = sld [smem:[#allocation2 + $0x280]] }
  0x13   :  { %v88_v9 = vmul.f32 %v2714_v4, %v87_v7  ;;  %v90_v10 = vstv %s2309_s10  ;;  %294 = vmatpush.msrb.mxu0 %v2752_v25  ;;  %318 = vmatpush.msrb.mxu3 %v2792_v33  ;;  %v2835_v47 = vadd.f32 %v2724_v13, %v2720_v8  ;;  %s2318_s15 = sld [smem:[#allocation2 + $0x101]] }
  0x14   :  { %v91_v11 = vmul.f32 %v2716_v5, %v90_v10  ;;  %v99_v12 = vstv %s2310_s1  ;;  %152 = vmatpush.msra.mxu1 %v2759_v26  ;;  %176 = vmatpush.msra.mxu2 %v2800_v34  ;;  %s2873_s16 = sld [smem:[#allocation2 + $0x181]] }
  0x15   :  { %v100_v14 = vmul.f32 %v2718_v6, %v99_v12  ;;  %v102_v15 = vstv %s2710_s11  ;;  %295 = vmatpush.msrb.mxu0 %v2759_v26  ;;  %319 = vmatpush.msrb.mxu3 %v2800_v34  ;;  %s198_s0 = ssub.f32 0.0, %s2710_s11 }
  0x16   :  { %v2728_v16 = vadd.f32 %v91_v11, %v88_v9  ;;  %v103_v17 = vmul.f32 %v2720_v8, %v102_v15  ;;  %v105_v18 = vstv %s2712_s12  ;;  %412 = vmatpush.msrb.mxu1 %v2706_v0  ;;  %433 = vmatpush.msrb.mxu2 %v2740_v23  ;;  %s2871_s12 = sld [smem:[#allocation2 + $0x281]] }
  0x17   :  { %v106_v20 = vmul.f32 %v2724_v13, %v105_v18  ;;  %v199_v44 = vstv %s198_s0  ;;  %s2876_s18 = sld [smem:[#allocation2 + $0x201]] }
  0x18   :  { %v101_v19 = vadd.f32 %v100_v14, %v2728_v16  ;;  %v190_v35 = vmul.f32 %v2714_v4, %v2728_v16  ;;  %434 = vmatpush.msrb.mxu2 %v2746_v24  ;;  %v194_v37 = vmul.f32 %v2716_v5, %v2728_v16  ;;  %v200_v45 = vmul.f32 %v2714_v4, %v199_v44  ;;  %s2926_s22 = sld [smem:[#allocation2 + $0x282]] }
  0x19   :  { %s2326_s23 = sld [smem:[#allocation2 + $0x102]] }
  0x1a   :  { %v104_v21 = vadd.f32 %v103_v17, %v101_v19  ;;  %v191_v36 = vsel %vm108_vm5, %v190_v35, 0.0  ;;  %435 = vmatpush.msrb.mxu2 %v2752_v25  ;;  %v195_v38 = vsel %vm108_vm5, %v194_v37, 0.0  ;;  %s340_s19 = ssub.f32 0.0, %s2873_s16 }
  0x1b   :  { %192 = vadd.xlane.f32.xlu0 %v191_v36  ;;  %s2928_s24 = sld [smem:[#allocation2 + $0x182]] }
  0x1c   :  { %v107_v22 = vadd.f32 %v106_v20, %v104_v21  ;;  %436 = vmatpush.msrb.mxu2 %v2759_v26  ;;  %v71_v21 = vadd.f32 %v2718_v6, %v2716_v5  ;;  %s98_s17 = ssub.f32 %s2871_s12, %s2314_s14 }
  0x1d   :  { %s2932_s26 = sld [smem:[#allocation2 + $0x202]] }
  0x1e   :  { %2315 = vmatmul.msk.f32.vlgmr.msra.gmra.mxu0 %vm108_vm5, %v107_v22  ;;  %v2860_v22 = vsub.f32 %v2714_v4, %v2718_v6  ;;  %v72_v35 = vsub.f32 %v71_v21, %v2720_v8  ;;  %s243_s25 = ssub.f32 %s2926_s22, %s2871_s12 }
  0x1f   :  { %457 = vmatpush.msra.mxu0 %v2780_v31  ;;  %s2989_s30 = sld [smem:[#allocation2 + $0x283]] }
  0x20   :  { %v2867_v37 = vsub.f32 %v72_v35, %v2724_v13  ;;  %s2334_s8 = sld [smem:[#allocation2 + $0x103]] }
  0x21   :  { %458 = vmatpush.msra.mxu0 %v2786_v32  ;;  %s481_s27 = ssub.f32 0.0, %s2928_s24 }
  0x22   :  { %s2991_s9 = sld [smem:[#allocation2 + $0x183]] }
  0x23   :  { %459 = vmatpush.msra.mxu0 %v2792_v33  ;;  %196 = vadd.xlane.f32.xlu0 %v195_v38  ;;  %s2995_s10 = sld [smem:[#allocation2 + $0x203]] }
  0x24   :  { %s3052_s12 = sld [smem:[#allocation2 + $0x284]] }
  0x25   :  { %460 = vmatpush.msra.mxu0 %v2800_v34  ;;  %s384_s0 = ssub.f32 %s2989_s30, %s2926_s22 }
  0x26   :  { %s2342_s14 = sld [smem:[#allocation2 + $0x104]] }
  0x27   :  { %s3115_s21 = sld [smem:[#allocation2 + $0x285]] }
  0x28   :  { %s622_s1 = ssub.f32 0.0, %s2991_s9 }
  0x29   :  { %s2350_s22 = sld [smem:[#allocation2 + $0x105]] }
  0x2a   :  { %s3200_s13 = sld [smem:[#allocation2 + $0x286]] }
  0x2b   :  { %s3300_s11 = sld [smem:[#allocation2 + $0x187]] }
  0x8e   :  { %v193_v43 = vpop.xlane.xlu0 %192 }
  0x8f   :  { %v201_v46 = vmul.f32 %v2718_v6, %v193_v43 }
  0x91   :  { %v202_v49 = vadd.f32 %v201_v46, %v200_v45  ;;  %v235_v45 = vstv %s98_s17  ;;  %v244_v46 = vstv %s2318_s15  ;;  %s3054_s15 = sld [smem:[#allocation2 + $0x184]] }
  0x92   :  { %s3058_s17 = sld [smem:[#allocation2 + $0x204]] }
  0x96   :  { %v197_v48 = vpop.xlane.xlu0 %196 }
  0x97   :  { %v204_v50 = vmul.f32 %v2835_v47, %v197_v48 }
  0x99   :  { %v205_v51 = vadd.f32 %v204_v50, %v202_v49  ;;  %v247_v49 = vstv %s2873_s16  ;;  %s525_s16 = ssub.f32 %s3052_s12, %s2989_s30 }
  0x9b   :  { %v129_v28 = vpop.f32.mrf.mxu0  ;;  %v206_v55 = vmul.f32 5.0, %v205_v51  ;;  %v245_v51 = vmul.f32 %v2718_v6, %v244_v46 }
  0x9c   :  { %v130_v29 = vadd.f32 %v129_v28, %v2769_v27 }
  0x9e   :  { %2439 = vtanh.f32 %v130_v29 }
  0xa4   :  { %v2440_v30 = vpop.eup %2439 }
  0xa5   :  { %2316 = vmatmul.msk.f32.vlgmr.msra.gmra.mxu1 %vm133_vm6, %v2440_v30 }
  0xa6   :  { %574 = vmatpush.msra.mxu1 %v2740_v23 }
  0xa8   :  { %575 = vmatpush.msra.mxu1 %v2746_v24 }
  0xaa   :  { %576 = vmatpush.msra.mxu1 %v2752_v25 }
  0xac   :  { %577 = vmatpush.msra.mxu1 %v2759_v26 }
 0x122   :  { %v154_v40 = vpop.f32.mrf.mxu1 }
 0x123   :  { %v155_v41 = vadd.f32 %v154_v40, %v2822_v39 }
 0x125   :  { %2441 = vtanh.f32 %v155_v41 }
 0x12b   :  { %v2442_v42 = vpop.eup %2441 }
 0x12c   :  { %2317 = vmatmul.msk.f32.vlgmr.msra.gmra.mxu2 %vm133_vm6, %v2442_v42 }
 0x12d   :  { %598 = vmatpush.msra.mxu2 %v2780_v31 }
 0x12f   :  { %599 = vmatpush.msra.mxu2 %v2786_v32 }
 0x131   :  { %600 = vmatpush.msra.mxu2 %v2792_v33 }
 0x133   :  { %601 = vmatpush.msra.mxu2 %v2800_v34 }
 0x1af   :  { %v178_v53 = vpop.f32.mrf.mxu2 }
 0x1b0   :  { %v179_v54 = vadd.f32 %v178_v53, %v2841_v52  ;;  %v250_v53 = vstv %s2876_s18  ;;  %s763_s18 = ssub.f32 0.0, %s3054_s15 }
 0x1b2   :  { %v181_v56 = vmul.f32 %v2724_v13, %v179_v54  ;;  %v185_v57 = vmul.f32 1.442695, %v179_v54 }
 0x1b4   :  { %v182_v58 = vadd.f32 %v181_v56, %v2728_v16  ;;  %2443 = vpow2.f32 %v185_v57 }
 0x1b5   :  { %2445 = vtanh.f32 %v206_v55  ;;  %v248_v55 = vmul.f32 %v2720_v8, %v247_v49 }
 0x1b6   :  { %184 = vst.msk [vmem:[%s3862_s7] sm:$0x1] %vm183_vm7, %v182_v58  ;;  %v251_v58 = vmul.f32 %v2724_v13, %v250_v53 }
 0x1ba   :  { %v2444_v59 = vpop.eup %2443 }
 0x1bb   :  { %v2446_v60 = vpop.eup %2445  ;;  %2447 = vrcp.f32 %v2444_v59 }
 0x1bc   :  { %v208_v61 = vadd.f32 1.0, %v2446_v60 }
 0x1be   :  { %v209_v63 = vmul.f32 0.5, %v208_v61 }
 0x1c0   :  { %v218_v9 = vmul.f32 %v2444_v59, %v209_v63 }
 0x1c1   :  { %v2448_v62 = vpop.eup %2447 }
 0x1c2   :  { %v188_v1 = vsub.f32 %v2444_v59, %v2448_v62  ;;  %v219_v14 = vmul.f32 %v218_v9, %v105_v18  ;;  %v222_v29 = vmul.f32 %v2724_v13, %v218_v9 }
 0x1c4   :  { %v189_v2 = vmul.f32 0.5, %v188_v1  ;;  %v220_v20 = vmul.f32 %v2720_v8, %v219_v14 }
 0x1c6   :  { %v210_v3 = vmul.f32 %v209_v63, %v189_v2  ;;  %v213_v7 = vmax.f32 %v189_v2, 0.0 }
 0x1c8   :  { %v211_v10 = vmax.f32 %v210_v3, 0.0  ;;  %v214_v12 = vmul.f32 %v2716_v5, %v213_v7 }
 0x1ca   :  { %v212_v11 = vmul.f32 %v2714_v4, %v211_v10  ;;  %v216_v17 = vmul.f32 %v2718_v6, %v211_v10 }
 0x1cc   :  { %v215_v15 = vadd.f32 %v214_v12, %v212_v11  ;;  %v341_v11 = vstv %s340_s19  ;;  %s3363_s19 = sld [smem:[#allocation2 + $0x188]] }
 0x1cd   :  { %v342_v14 = vmul.f32 %v2714_v4, %v341_v11  ;;  %v385_v11 = vstv %s2326_s23  ;;  %s3117_s23 = sld [smem:[#allocation2 + $0x185]] }
 0x1ce   :  { %v217_v19 = vadd.f32 %v216_v17, %v215_v15 }
 0x1d0   :  { %v221_v28 = vadd.f32 %v220_v20, %v217_v19 }
 0x1d2   :  { %v223_v30 = vadd.f32 %v222_v29, %v221_v28 }
 0x1d4   :  { %v224_v18 = vmul.f32 %v223_v30, %v2860_v22  ;;  %v228_v38 = vmul.f32 %v223_v30, %v2867_v37 }
 0x1d6   :  { %v225_v36 = vsel %vm183_vm7, %v224_v18, 0.0  ;;  %v229_v40 = vsel %vm183_vm7, %v228_v38, 0.0 }
 0x1d7   :  { %226 = vadd.xlane.f32.xlu1 %v225_v36 }
 0x1df   :  { %230 = vadd.xlane.f32.xlu1 %v229_v40 }
 0x24a   :  { %v227_v41 = vpop.xlane.xlu1 %226 }
 0x24b   :  { %v232_v43 = vmul.f32 %v2714_v4, %v227_v41 }
 0x252   :  { %v231_v42 = vpop.xlane.xlu1 %230 }
 0x253   :  { %v233_v44 = vmul.f32 %v2716_v5, %v231_v42 }
 0x255   :  { %v234_v48 = vadd.f32 %v233_v44, %v232_v43 }
 0x257   :  { %v236_v50 = vmul.f32 %v235_v45, %v234_v48 }
 0x259   :  { %v2884_v54 = vadd.f32 %v236_v50, %v2728_v16 }
 0x25b   :  { %v332_v56 = vmul.f32 %v2714_v4, %v2884_v54  ;;  %v246_v57 = vadd.f32 %v245_v51, %v2884_v54  ;;  %v336_v16 = vmul.f32 %v2716_v5, %v2884_v54 }
 0x25d   :  { %v333_v59 = vsel %vm183_vm7, %v332_v56, 0.0  ;;  %v249_v60 = vadd.f32 %v248_v55, %v246_v57  ;;  %v337_v62 = vsel %vm183_vm7, %v336_v16, 0.0 }
 0x25e   :  { %334 = vadd.xlane.f32.xlu2 %v333_v59 }
 0x25f   :  { %v252_v61 = vadd.f32 %v251_v58, %v249_v60 }
 0x261   :  { %2323 = vmatmul.msk.f32.vlgmr.msra.gmra.mxu3 %vm108_vm5, %v252_v61 }
 0x262   :  { %553 = vmatpush.msra.mxu3 %v2706_v0 }
 0x266   :  { %338 = vadd.xlane.f32.xlu2 %v337_v62 }
 0x2d1   :  { %v335_v10 = vpop.xlane.xlu2 %334 }
 0x2d2   :  { %v343_v15 = vmul.f32 %v2718_v6, %v335_v10  ;;  %v376_v10 = vstv %s243_s25  ;;  %s3121_s25 = sld [smem:[#allocation2 + $0x205]] }
 0x2d4   :  { %v344_v19 = vadd.f32 %v343_v15, %v342_v14  ;;  %v388_v14 = vstv %s2928_s24  ;;  %s666_s24 = ssub.f32 %s3115_s21, %s3052_s12 }
 0x2d5   :  { %s2358_s12 = sld [smem:[#allocation2 + $0x106]] }
 0x2d9   :  { %v339_v12 = vpop.xlane.xlu2 %338 }
 0x2da   :  { %v345_v17 = vmul.f32 %v339_v12, %v2835_v47 }
 0x2dc   :  { %v346_v20 = vadd.f32 %v345_v17, %v344_v19  ;;  %v386_v17 = vmul.f32 %v2718_v6, %v385_v11  ;;  %v391_v19 = vstv %s2932_s26  ;;  %s2382_s26 = sld [smem:[#allocation2 + $0x109]] }
 0x2de   :  { %v347_v35 = vmul.f32 5.0, %v346_v20 }
 0x2e4   :  { %v273_v63 = vpop.f32.mrf.mxu3 }
 0x2e5   :  { %v274_v1 = vadd.f32 %v273_v63, %v2769_v27 }
 0x2e7   :  { %2449 = vtanh.f32 %v274_v1 }
 0x2ed   :  { %v2450_v2 = vpop.eup %2449 }
 0x2ee   :  { %2324 = vmatmul.msk.f32.vlgmr.msrb.gmra.mxu0 %vm133_vm6, %v2450_v2 }
 0x2ef   :  { %694 = vmatpush.msrb.mxu0 %v2706_v0 }
 0x36b   :  { %v297_v3 = vpop.f32.mrf.mxu0 }
 0x36c   :  { %v298_v7 = vadd.f32 %v297_v3, %v2822_v39 }
 0x36e   :  { %2451 = vtanh.f32 %v298_v7 }
 0x374   :  { %v2452_v9 = vpop.eup %2451 }
 0x375   :  { %2325 = vmatmul.msk.f32.vlgmr.msrb.gmra.mxu3 %vm133_vm6, %v2452_v9 }
 0x376   :  { %715 = vmatpush.msrb.mxu3 %v2740_v23 }
 0x378   :  { %716 = vmatpush.msrb.mxu3 %v2746_v24 }
 0x37a   :  { %717 = vmatpush.msrb.mxu3 %v2752_v25 }
 0x37c   :  { %718 = vmatpush.msrb.mxu3 %v2759_v26 }
 0x3f8   :  { %v321_v21 = vpop.f32.mrf.mxu3 }
 0x3f9   :  { %v322_v28 = vadd.f32 %v321_v21, %v2841_v52  ;;  %v389_v21 = vmul.f32 %v2720_v8, %v388_v14 }
 0x3fb   :  { %v324_v29 = vmul.f32 %v2724_v13, %v322_v28  ;;  %v327_v30 = vmul.f32 1.442695, %v322_v28 }
 0x3fd   :  { %v325_v18 = vadd.f32 %v324_v29, %v2884_v54  ;;  %2453 = vpow2.f32 %v327_v30 }
 0x3fe   :  { %2455 = vtanh.f32 %v347_v35  ;;  %v392_v35 = vmul.f32 %v2724_v13, %v391_v19 }
 0x3ff   :  { %326 = vst.msk [vmem:[%s3862_s7 + $0x1] sm:$0x1] %vm183_vm7, %v325_v18 }
 0x403   :  { %v2454_v36 = vpop.eup %2453 }
 0x404   :  { %2457 = vrcp.f32 %v2454_v36  ;;  %v2456_v38 = vpop.eup %2455 }
 0x405   :  { %v349_v40 = vadd.f32 1.0, %v2456_v38 }
 0x407   :  { %v350_v43 = vmul.f32 0.5, %v349_v40 }
 0x409   :  { %v359_v48 = vmul.f32 %v2454_v36, %v350_v43 }
 0x40a   :  { %v2458_v41 = vpop.eup %2457 }
 0x40b   :  { %v330_v42 = vsub.f32 %v2454_v36, %v2458_v41  ;;  %v360_v55 = vmul.f32 %v359_v48, %v250_v53  ;;  %v363_v61 = vmul.f32 %v2724_v13, %v359_v48 }
 0x40d   :  { %v331_v44 = vmul.f32 0.5, %v330_v42  ;;  %v361_v59 = vmul.f32 %v2720_v8, %v360_v55 }
 0x40f   :  { %v351_v45 = vmul.f32 %v350_v43, %v331_v44  ;;  %v354_v46 = vmax.f32 %v331_v44, 0.0 }
 0x411   :  { %v352_v49 = vmax.f32 %v351_v45, 0.0  ;;  %v355_v51 = vmul.f32 %v2716_v5, %v354_v46  ;;  %v482_v46 = vstv %s481_s27  ;;  %s3426_s27 = sld [smem:[#allocation2 + $0x189]] }
 0x413   :  { %v353_v50 = vmul.f32 %v2714_v4, %v352_v49  ;;  %v357_v57 = vmul.f32 %v2718_v6, %v352_v49  ;;  %v483_v49 = vmul.f32 %v2714_v4, %v482_v46  ;;  %v517_v46 = vstv %s384_s0  ;;  %s3487_s0 = sld [smem:[#allocation2 + $0x28a]] }
 0x415   :  { %v356_v56 = vadd.f32 %v355_v51, %v353_v50 }
 0x417   :  { %v358_v58 = vadd.f32 %v357_v57, %v356_v56  ;;  %s1468_s30 = ssub.f32 0.0, %s3426_s27 }
 0x419   :  { %v362_v60 = vadd.f32 %v361_v59, %v358_v58 }
 0x41b   :  { %v364_v16 = vadd.f32 %v363_v61, %v362_v60 }
 0x41d   :  { %v369_v62 = vmul.f32 %v364_v16, %v2867_v37  ;;  %v365_v63 = vmul.f32 %v364_v16, %v2860_v22 }
 0x41f   :  { %v370_v1 = vsel %vm183_vm7, %v369_v62, 0.0  ;;  %v366_v2 = vsel %vm183_vm7, %v365_v63, 0.0 }
 0x420   :  { %371 = vadd.xlane.f32.xlu1 %v370_v1  ;;  %367 = vadd.xlane.f32.xlu0 %v366_v2 }
 0x493   :  { %v372_v53 = vpop.xlane.xlu1 %371  ;;  %v368_v3 = vpop.xlane.xlu0 %367 }
 0x494   :  { %v374_v7 = vmul.f32 %v2716_v5, %v372_v53  ;;  %v373_v9 = vmul.f32 %v2714_v4, %v368_v3 }
 0x496   :  { %v375_v12 = vadd.f32 %v374_v7, %v373_v9 }
 0x498   :  { %v377_v15 = vmul.f32 %v376_v10, %v375_v12 }
 0x49a   :  { %v2940_v20 = vadd.f32 %v377_v15, %v2884_v54 }
 0x49c   :  { %v477_v28 = vmul.f32 %v2716_v5, %v2940_v20  ;;  %v473_v29 = vmul.f32 %v2714_v4, %v2940_v20  ;;  %v387_v30 = vadd.f32 %v386_v17, %v2940_v20 }
 0x49e   :  { %v478_v18 = vsel %vm183_vm7, %v477_v28, 0.0  ;;  %v474_v36 = vsel %vm183_vm7, %v473_v29, 0.0  ;;  %v390_v38 = vadd.f32 %v389_v21, %v387_v30 }
 0x49f   :  { %479 = vadd.xlane.f32.xlu0 %v478_v18  ;;  %475 = vadd.xlane.f32.xlu2 %v474_v36 }
 0x4a0   :  { %v393_v54 = vadd.f32 %v392_v35, %v390_v38 }
 0x4a2   :  { %2331 = vmatmul.msk.f32.vlgmr.msrb.gmra.mxu1 %vm108_vm5, %v393_v54 }
 0x4a3   :  { %739 = vmatpush.msrb.mxu1 %v2780_v31 }
 0x4a5   :  { %740 = vmatpush.msrb.mxu1 %v2786_v32 }
 0x4a7   :  { %741 = vmatpush.msrb.mxu1 %v2792_v33 }
 0x4a9   :  { %742 = vmatpush.msrb.mxu1 %v2800_v34 }
 0x512   :  { %v476_v48 = vpop.xlane.xlu2 %475  ;;  %v480_v51 = vpop.xlane.xlu0 %479 }
 0x513   :  { %v484_v50 = vmul.f32 %v2718_v6, %v476_v48  ;;  %v486_v56 = vmul.f32 %v480_v51, %v2835_v47  ;;  %v526_v48 = vstv %s2334_s8  ;;  %s3635_s8 = sld [smem:[#allocation2 + $0x28c]] }
 0x515   :  { %v485_v55 = vadd.f32 %v484_v50, %v483_v49  ;;  %v529_v50 = vstv %s2991_s9  ;;  %s2406_s9 = sld [smem:[#allocation2 + $0x10c]] }
 0x517   :  { %v487_v57 = vadd.f32 %v486_v56, %v485_v55  ;;  %v527_v55 = vmul.f32 %v2718_v6, %v526_v48  ;;  %v532_v56 = vstv %s2995_s10  ;;  %s904_s10 = ssub.f32 0.0, %s3117_s23 }
 0x519   :  { %v488_v16 = vmul.f32 5.0, %v487_v57 }
 0x51f   :  { %v414_v40 = vpop.f32.mrf.mxu1 }
 0x520   :  { %v415_v41 = vadd.f32 %v414_v40, %v2769_v27 }
 0x522   :  { %2459 = vtanh.f32 %v415_v41 }
 0x528   :  { %v2460_v42 = vpop.eup %2459 }
 0x529   :  { %2332 = vmatmul.msk.f32.vlgmr.msrb.gmra.mxu2 %vm133_vm6, %v2460_v42 }
 0x52a   :  { %835 = vmatpush.msrb.mxu2 %v2706_v0 }
 0x5ac   :  { %v438_v43 = vpop.f32.mrf.mxu2 }
 0x5ad   :  { %v439_v44 = vadd.f32 %v438_v43, %v2822_v39 }
 0x5af   :  { %2461 = vtanh.f32 %v439_v44 }
 0x5b5   :  { %v2462_v45 = vpop.eup %2461 }
 0x5b6   :  { %2333 = vmatmul.msk.f32.vlgmr.msra.gmra.mxu0 %vm133_vm6, %v2462_v45 }
 0x5b7   :  { %856 = vmatpush.msra.mxu0 %v2740_v23 }
 0x5b9   :  { %857 = vmatpush.msra.mxu0 %v2746_v24 }
 0x5bb   :  { %858 = vmatpush.msra.mxu0 %v2752_v25 }
 0x5bd   :  { %859 = vmatpush.msra.mxu0 %v2759_v26 }
 0x633   :  { %v462_v58 = vpop.f32.mrf.mxu0 }
 0x634   :  { %v463_v59 = vadd.f32 %v462_v58, %v2841_v52  ;;  %v530_v58 = vmul.f32 %v2720_v8, %v529_v50 }
 0x636   :  { %v465_v60 = vmul.f32 %v2724_v13, %v463_v59  ;;  %v468_v61 = vmul.f32 1.442695, %v463_v59 }
 0x638   :  { %v466_v62 = vadd.f32 %v465_v60, %v2940_v20  ;;  %2463 = vpow2.f32 %v468_v61 }
 0x639   :  { %2465 = vtanh.f32 %v488_v16  ;;  %v533_v16 = vmul.f32 %v2724_v13, %v532_v56 }
 0x63a   :  { %467 = vst.msk [vmem:[%s3862_s7 + $0x2] sm:$0x1] %vm183_vm7, %v466_v62 }
 0x63e   :  { %v2464_v63 = vpop.eup %2463 }
 0x63f   :  { %2467 = vrcp.f32 %v2464_v63  ;;  %v2466_v1 = vpop.eup %2465 }
 0x640   :  { %v490_v2 = vadd.f32 1.0, %v2466_v1 }
 0x642   :  { %v491_v7 = vmul.f32 0.5, %v490_v2 }
 0x644   :  { %v500_v12 = vmul.f32 %v2464_v63, %v491_v7 }
 0x645   :  { %v2468_v53 = vpop.eup %2467 }
 0x646   :  { %v471_v3 = vsub.f32 %v2464_v63, %v2468_v53  ;;  %v501_v21 = vmul.f32 %v500_v12, %v391_v19  ;;  %v504_v36 = vmul.f32 %v2724_v13, %v500_v12 }
 0x648   :  { %v472_v9 = vmul.f32 0.5, %v471_v3  ;;  %v502_v35 = vmul.f32 %v2720_v8, %v501_v21 }
 0x64a   :  { %v492_v10 = vmul.f32 %v491_v7, %v472_v9  ;;  %v495_v11 = vmax.f32 %v472_v9, 0.0 }
 0x64c   :  { %v493_v14 = vmax.f32 %v492_v10, 0.0  ;;  %v496_v17 = vmul.f32 %v2716_v5, %v495_v11  ;;  %v623_v11 = vstv %s622_s1  ;;  %s2366_s1 = sld [smem:[#allocation2 + $0x107]] }
 0x64e   :  { %v494_v15 = vmul.f32 %v2714_v4, %v493_v14  ;;  %v498_v29 = vmul.f32 %v2718_v6, %v493_v14  ;;  %v624_v14 = vmul.f32 %v2714_v4, %v623_v11  ;;  %v658_v11 = vstv %s525_s16  ;;  %s3206_s16 = sld [smem:[#allocation2 + $0x206]] }
 0x650   :  { %v497_v28 = vadd.f32 %v496_v17, %v494_v15 }
 0x652   :  { %v499_v30 = vadd.f32 %v498_v29, %v497_v28 }
 0x654   :  { %v503_v18 = vadd.f32 %v502_v35, %v499_v30 }
 0x656   :  { %v505_v38 = vadd.f32 %v504_v36, %v503_v18 }
 0x658   :  { %v510_v54 = vmul.f32 %v505_v38, %v2867_v37  ;;  %v506_v40 = vmul.f32 %v505_v38, %v2860_v22 }
 0x65a   :  { %v511_v41 = vsel %vm183_vm7, %v510_v54, 0.0  ;;  %v507_v42 = vsel %vm183_vm7, %v506_v40, 0.0 }
 0x65b   :  { %512 = vadd.xlane.f32.xlu2 %v511_v41  ;;  %508 = vadd.xlane.f32.xlu1 %v507_v42 }
 0x6ce   :  { %v513_v19 = vpop.xlane.xlu2 %512  ;;  %v509_v43 = vpop.xlane.xlu1 %508 }
 0x6cf   :  { %v515_v44 = vmul.f32 %v2716_v5, %v513_v19  ;;  %v514_v45 = vmul.f32 %v2714_v4, %v509_v43 }
 0x6d1   :  { %v516_v49 = vadd.f32 %v515_v44, %v514_v45 }
 0x6d3   :  { %v518_v51 = vmul.f32 %v517_v46, %v516_v49 }
 0x6d5   :  { %v3003_v57 = vadd.f32 %v518_v51, %v2940_v20 }
 0x6d7   :  { %v618_v59 = vmul.f32 %v2716_v5, %v3003_v57  ;;  %v614_v60 = vmul.f32 %v2714_v4, %v3003_v57  ;;  %v528_v61 = vadd.f32 %v527_v55, %v3003_v57 }
 0x6d9   :  { %v619_v62 = vsel %vm183_vm7, %v618_v59, 0.0  ;;  %v615_v63 = vsel %vm183_vm7, %v614_v60, 0.0  ;;  %v531_v1 = vadd.f32 %v530_v58, %v528_v61 }
 0x6da   :  { %620 = vadd.xlane.f32.xlu1 %v619_v62  ;;  %616 = vadd.xlane.f32.xlu0 %v615_v63 }
 0x6db   :  { %v534_v20 = vadd.f32 %v533_v16, %v531_v1 }
 0x6dd   :  { %2339 = vmatmul.msk.f32.vlgmr.msra.gmra.mxu3 %vm108_vm5, %v534_v20 }
 0x6de   :  { %880 = vmatpush.msra.mxu3 %v2780_v31 }
 0x6e0   :  { %881 = vmatpush.msra.mxu3 %v2786_v32 }
 0x6e2   :  { %882 = vmatpush.msra.mxu3 %v2792_v33 }
 0x6e4   :  { %883 = vmatpush.msra.mxu3 %v2800_v34 }
 0x74d   :  { %v617_v12 = vpop.xlane.xlu0 %616  ;;  %v621_v17 = vpop.xlane.xlu1 %620 }
 0x74e   :  { %v625_v15 = vmul.f32 %v2718_v6, %v617_v12  ;;  %v627_v28 = vmul.f32 %v621_v17, %v2835_v47  ;;  %v667_v12 = vstv %s2342_s14  ;;  %s3202_s14 = sld [smem:[#allocation2 + $0x186]] }
 0x750   :  { %v626_v21 = vadd.f32 %v625_v15, %v624_v14  ;;  %v670_v15 = vstv %s3054_s15  ;;  %s807_s15 = ssub.f32 %s3200_s13, %s3115_s21 }
 0x751   :  { %s3367_s21 = sld [smem:[#allocation2 + $0x208]] }
 0x752   :  { %v628_v29 = vadd.f32 %v627_v28, %v626_v21  ;;  %v668_v21 = vmul.f32 %v2718_v6, %v667_v12  ;;  %v673_v28 = vstv %s3058_s17  ;;  %s3361_s17 = sld [smem:[#allocation2 + $0x288]] }
 0x754   :  { %v629_v38 = vmul.f32 5.0, %v628_v29  ;;  %s1045_s29 = ssub.f32 0.0, %s3202_s14 }
 0x760   :  { %v555_v2 = vpop.f32.mrf.mxu3 }
 0x761   :  { %v556_v53 = vadd.f32 %v555_v2, %v2769_v27 }
 0x763   :  { %2469 = vtanh.f32 %v556_v53 }
 0x769   :  { %v2470_v3 = vpop.eup %2469 }
 0x76a   :  { %2340 = vmatmul.msk.f32.vlgmr.msra.gmra.mxu1 %vm133_vm6, %v2470_v3 }
 0x76b   :  { %976 = vmatpush.msra.mxu1 %v2706_v0 }
 0x7e7   :  { %v579_v7 = vpop.f32.mrf.mxu1 }
 0x7e8   :  { %v580_v9 = vadd.f32 %v579_v7, %v2822_v39 }
 0x7ea   :  { %2471 = vtanh.f32 %v580_v9 }
 0x7f0   :  { %v2472_v10 = vpop.eup %2471 }
 0x7f1   :  { %2341 = vmatmul.msk.f32.vlgmr.msra.gmra.mxu2 %vm133_vm6, %v2472_v10 }
 0x7f2   :  { %997 = vmatpush.msra.mxu2 %v2740_v23 }
 0x7f4   :  { %998 = vmatpush.msra.mxu2 %v2746_v24 }
 0x7f6   :  { %999 = vmatpush.msra.mxu2 %v2752_v25 }
 0x7f8   :  { %1000 = vmatpush.msra.mxu2 %v2759_v26 }
 0x874   :  { %v603_v30 = vpop.f32.mrf.mxu2 }
 0x875   :  { %v604_v35 = vadd.f32 %v603_v30, %v2841_v52  ;;  %v671_v30 = vmul.f32 %v2720_v8, %v670_v15 }
 0x877   :  { %v606_v18 = vmul.f32 %v2724_v13, %v604_v35  ;;  %v609_v36 = vmul.f32 1.442695, %v604_v35 }
 0x879   :  { %v607_v54 = vadd.f32 %v606_v18, %v3003_v57  ;;  %2473 = vpow2.f32 %v609_v36 }
 0x87a   :  { %2475 = vtanh.f32 %v629_v38  ;;  %v674_v38 = vmul.f32 %v2724_v13, %v673_v28 }
 0x87b   :  { %608 = vst.msk [vmem:[%s3862_s7 + $0x3] sm:$0x1] %vm183_vm7, %v607_v54 }
 0x87f   :  { %v2474_v40 = vpop.eup %2473 }
 0x880   :  { %2477 = vrcp.f32 %v2474_v40  ;;  %v2476_v41 = vpop.eup %2475 }
 0x881   :  { %v631_v42 = vadd.f32 1.0, %v2476_v41 }
 0x883   :  { %v632_v44 = vmul.f32 0.5, %v631_v42 }
 0x885   :  { %v641_v49 = vmul.f32 %v2474_v40, %v632_v44 }
 0x886   :  { %v2478_v19 = vpop.eup %2477 }
 0x887   :  { %v612_v43 = vsub.f32 %v2474_v40, %v2478_v19  ;;  %v642_v58 = vmul.f32 %v641_v49, %v532_v56  ;;  %v645_v63 = vmul.f32 %v2724_v13, %v641_v49 }
 0x889   :  { %v613_v45 = vmul.f32 0.5, %v612_v43  ;;  %v643_v16 = vmul.f32 %v2720_v8, %v642_v58 }
 0x88b   :  { %v633_v46 = vmul.f32 %v632_v44, %v613_v45  ;;  %v636_v48 = vmax.f32 %v613_v45, 0.0 }
 0x88d   :  { %v634_v50 = vmax.f32 %v633_v46, 0.0  ;;  %v637_v55 = vmul.f32 %v2716_v5, %v636_v48  ;;  %v764_v48 = vstv %s763_s18  ;;  %s2374_s18 = sld [smem:[#allocation2 + $0x108]] }
 0x88f   :  { %v635_v51 = vmul.f32 %v2714_v4, %v634_v50  ;;  %v639_v60 = vmul.f32 %v2718_v6, %v634_v50 }
 0x891   :  { %v638_v59 = vadd.f32 %v637_v55, %v635_v51 }
 0x893   :  { %v640_v61 = vadd.f32 %v639_v60, %v638_v59 }
 0x895   :  { %v644_v62 = vadd.f32 %v643_v16, %v640_v61 }
 0x897   :  { %v646_v1 = vadd.f32 %v645_v63, %v644_v62 }
 0x899   :  { %v651_v20 = vmul.f32 %v646_v1, %v2867_v37  ;;  %v647_v2 = vmul.f32 %v646_v1, %v2860_v22 }
 0x89b   :  { %v652_v53 = vsel %vm183_vm7, %v651_v20, 0.0  ;;  %v648_v3 = vsel %vm183_vm7, %v647_v2, 0.0 }
 0x89c   :  { %653 = vadd.xlane.f32.xlu0 %v652_v53  ;;  %649 = vadd.xlane.f32.xlu2 %v648_v3 }
 0x90f   :  { %v654_v56 = vpop.xlane.xlu0 %653  ;;  %v650_v7 = vpop.xlane.xlu2 %649 }
 0x910   :  { %v656_v9 = vmul.f32 %v2716_v5, %v654_v56  ;;  %v655_v10 = vmul.f32 %v2714_v4, %v650_v7 }
 0x912   :  { %v657_v14 = vadd.f32 %v656_v9, %v655_v10 }
 0x914   :  { %v659_v17 = vmul.f32 %v658_v11, %v657_v14 }
 0x916   :  { %v3066_v29 = vadd.f32 %v659_v17, %v3003_v57 }
 0x918   :  { %v759_v35 = vmul.f32 %v2716_v5, %v3066_v29  ;;  %v755_v18 = vmul.f32 %v2714_v4, %v3066_v29  ;;  %v669_v36 = vadd.f32 %v668_v21, %v3066_v29 }
 0x91a   :  { %v760_v54 = vsel %vm183_vm7, %v759_v35, 0.0  ;;  %v756_v40 = vsel %vm183_vm7, %v755_v18, 0.0  ;;  %v672_v41 = vadd.f32 %v671_v30, %v669_v36 }
 0x91b   :  { %761 = vadd.xlane.f32.xlu2 %v760_v54  ;;  %757 = vadd.xlane.f32.xlu1 %v756_v40 }
 0x91c   :  { %v675_v57 = vadd.f32 %v674_v38, %v672_v41 }
 0x91e   :  { %2347 = vmatmul.msk.f32.vlgmr.msrb.gmra.mxu0 %vm108_vm5, %v675_v57 }
 0x91f   :  { %1021 = vmatpush.msrb.mxu0 %v2780_v31 }
 0x921   :  { %1022 = vmatpush.msrb.mxu0 %v2786_v32 }
 0x923   :  { %1023 = vmatpush.msrb.mxu0 %v2792_v33 }
 0x925   :  { %1024 = vmatpush.msrb.mxu0 %v2800_v34 }
 0x98e   :  { %v758_v49 = vpop.xlane.xlu1 %757  ;;  %v762_v51 = vpop.xlane.xlu2 %761 }
 0x98f   :  { %v766_v50 = vmul.f32 %v2718_v6, %v758_v49  ;;  %v768_v58 = vmul.f32 %v762_v51, %v2835_v47  ;;  %v814_v49 = vstv %s3121_s25  ;;  %s3424_s25 = sld [smem:[#allocation2 + $0x289]] }
 0x995   :  { %s1230_s28 = ssub.f32 %s3424_s25, %s3361_s17 }
 0x99b   :  { %v696_v42 = vpop.f32.mrf.mxu0 }
 0x99c   :  { %v697_v19 = vadd.f32 %v696_v42, %v2769_v27 }
 0x99e   :  { %2479 = vtanh.f32 %v697_v19  ;;  %v799_v19 = vstv %s666_s24 }
 0x9a4   :  { %v2480_v43 = vpop.eup %2479 }
 0x9a5   :  { %2348 = vmatmul.msk.f32.vlgmr.msrb.gmra.mxu3 %vm133_vm6, %v2480_v43  ;;  %v808_v43 = vstv %s2350_s22  ;;  %s1327_s22 = ssub.f32 0.0, %s3363_s19 }
 0x9a6   :  { %1117 = vmatpush.msrb.mxu3 %v2706_v0  ;;  %v765_v0 = vmul.f32 %v2714_v4, %v764_v48  ;;  %v809_v48 = vmul.f32 %v2718_v6, %v808_v43 }
 0x9a8   :  { %v767_v55 = vadd.f32 %v766_v50, %v765_v0 }
 0x9aa   :  { %v769_v59 = vadd.f32 %v768_v58, %v767_v55 }
 0x9ac   :  { %v770_v61 = vmul.f32 5.0, %v769_v59  ;;  %v815_v59 = vmul.f32 %v2724_v13, %v814_v49 }
 0xa28   :  { %v720_v44 = vpop.f32.mrf.mxu3 }
 0xa29   :  { %v721_v45 = vadd.f32 %v720_v44, %v2822_v39 }
 0xa2b   :  { %2481 = vtanh.f32 %v721_v45  ;;  %v811_v45 = vstv %s3117_s23 }
 0xa2c   :  { %v812_v50 = vmul.f32 %v2720_v8, %v811_v45 }
 0xa31   :  { %v2482_v46 = vpop.eup %2481 }
 0xa32   :  { %2349 = vmatmul.msk.f32.vlgmr.msrb.gmra.mxu1 %vm133_vm6, %v2482_v46 }
 0xa33   :  { %1138 = vmatpush.msrb.mxu1 %v2740_v23 }
 0xa35   :  { %1139 = vmatpush.msrb.mxu1 %v2746_v24 }
 0xa37   :  { %1140 = vmatpush.msrb.mxu1 %v2752_v25 }
 0xa39   :  { %1141 = vmatpush.msrb.mxu1 %v2759_v26 }
 0xaaf   :  { %v744_v60 = vpop.f32.mrf.mxu1 }
 0xab0   :  { %v745_v23 = vadd.f32 %v744_v60, %v2841_v52 }
 0xab2   :  { %v747_v24 = vmul.f32 %v2724_v13, %v745_v23  ;;  %v750_v25 = vmul.f32 1.442695, %v745_v23 }
 0xab4   :  { %v748_v26 = vadd.f32 %v747_v24, %v3066_v29  ;;  %2483 = vpow2.f32 %v750_v25 }
 0xab5   :  { %2485 = vtanh.f32 %v770_v61 }
 0xab6   :  { %749 = vst.msk [vmem:[%s3862_s7 + $0x4] sm:$0x1] %vm183_vm7, %v748_v26 }
 0xaba   :  { %v2484_v16 = vpop.eup %2483 }
 0xabb   :  { %2487 = vrcp.f32 %v2484_v16  ;;  %v2486_v62 = vpop.eup %2485 }
 0xabc   :  { %v772_v63 = vadd.f32 1.0, %v2486_v62 }
 0xabe   :  { %v773_v2 = vmul.f32 0.5, %v772_v63  ;;  %v905_v63 = vstv %s904_s10  ;;  %s3298_s10 = sld [smem:[#allocation2 + $0x287]] }
 0xac0   :  { %v782_v7 = vmul.f32 %v2484_v16, %v773_v2 }
 0xac1   :  { %v2488_v1 = vpop.eup %2487 }
 0xac2   :  { %v753_v20 = vsub.f32 %v2484_v16, %v2488_v1  ;;  %v783_v12 = vmul.f32 %v782_v7, %v673_v28  ;;  %v786_v35 = vmul.f32 %v2724_v13, %v782_v7  ;;  %v3149_v16 = vld [vmem:[#allocation5] sm:$0xff] }
 0xac4   :  { %v754_v53 = vmul.f32 0.5, %v753_v20  ;;  %v784_v21 = vmul.f32 %v2720_v8, %v783_v12  ;;  %v906_v20 = vmul.f32 %v2714_v4, %v905_v63  ;;  %s1089_s20 = ssub.f32 %s3361_s17, %s3298_s10 }
 0xac5   :  { %s2398_s17 = sld [smem:[#allocation2 + $0x10b]] }
 0xac6   :  { %v774_v3 = vmul.f32 %v773_v2, %v754_v53  ;;  %v777_v56 = vmax.f32 %v754_v53, 0.0 }
 0xac8   :  { %v775_v9 = vmax.f32 %v774_v3, 0.0  ;;  %v778_v11 = vmul.f32 %v2716_v5, %v777_v56 }
 0xaca   :  { %v776_v10 = vmul.f32 %v2714_v4, %v775_v9  ;;  %v780_v15 = vmul.f32 %v2718_v6, %v775_v9 }
 0xacc   :  { %v779_v14 = vadd.f32 %v778_v11, %v776_v10 }
 0xace   :  { %v781_v17 = vadd.f32 %v780_v15, %v779_v14 }
 0xad0   :  { %v785_v30 = vadd.f32 %v784_v21, %v781_v17 }
 0xad2   :  { %v787_v18 = vadd.f32 %v786_v35, %v785_v30 }
 0xad4   :  { %v792_v36 = vmul.f32 %v787_v18, %v2867_v37  ;;  %v788_v38 = vmul.f32 %v787_v18, %v2860_v22 }
 0xad6   :  { %v793_v54 = vsel %vm183_vm7, %v792_v36, 0.0  ;;  %v789_v40 = vsel %vm183_vm7, %v788_v38, 0.0 }
 0xad7   :  { %794 = vadd.xlane.f32.xlu1 %v793_v54  ;;  %790 = vadd.xlane.f32.xlu0 %v789_v40 }
 0xb4a   :  { %v795_v28 = vpop.xlane.xlu1 %794  ;;  %v791_v41 = vpop.xlane.xlu0 %790 }
 0xb4b   :  { %v797_v57 = vmul.f32 %v2716_v5, %v795_v28  ;;  %v796_v42 = vmul.f32 %v2714_v4, %v791_v41 }
 0xb4d   :  { %v798_v44 = vadd.f32 %v797_v57, %v796_v42 }
 0xb4f   :  { %v800_v46 = vmul.f32 %v799_v19, %v798_v44 }
 0xb51   :  { %v3129_v0 = vadd.f32 %v800_v46, %v3066_v29 }
 0xb53   :  { %v900_v51 = vmul.f32 %v2716_v5, %v3129_v0  ;;  %v896_v55 = vmul.f32 %v2714_v4, %v3129_v0  ;;  %v810_v58 = vadd.f32 %v809_v48, %v3129_v0 }
 0xb55   :  { %v901_v60 = vsel %vm183_vm7, %v900_v51, 0.0  ;;  %v897_v23 = vsel %vm183_vm7, %v896_v55, 0.0  ;;  %v813_v24 = vadd.f32 %v812_v50, %v810_v58 }
 0xb56   :  { %902 = vadd.xlane.f32.xlu0 %v901_v60  ;;  %898 = vadd.xlane.f32.xlu2 %v897_v23 }
 0xb57   :  { %v816_v29 = vadd.f32 %v815_v59, %v813_v24 }
 0xb59   :  { %2355 = vmatmul.msk.f32.vlgmr.msrb.gmra.mxu2 %vm108_vm5, %v816_v29  ;;  %v940_v29 = vstv %s807_s15  ;;  %s2430_s15 = sld [smem:[#allocation2 + $0x10f]] }
 0xb5a   :  { %1162 = vmatpush.msrb.mxu2 %v2780_v31 }
 0xb5c   :  { %1163 = vmatpush.msrb.mxu2 %v2786_v32 }
 0xb5e   :  { %1164 = vmatpush.msrb.mxu2 %v2792_v33  ;;  %v3163_v33 = vld [vmem:[%s3858_s3 + $0x10] sm:$0xff] }
 0xb60   :  { %1165 = vmatpush.msrb.mxu2 %v2800_v34  ;;  %v3169_v34 = vld [vmem:[%s3858_s3 + $0x8] sm:$0xff] }
 0xbc9   :  { %v899_v1 = vpop.xlane.xlu2 %898  ;;  %v903_v53 = vpop.xlane.xlu0 %902 }
 0xbca   :  { %v907_v2 = vmul.f32 %v2718_v6, %v899_v1  ;;  %v909_v56 = vmul.f32 %v903_v53, %v2835_v47 }
 0xbcc   :  { %v908_v3 = vadd.f32 %v907_v2, %v906_v20 }
 0xbce   :  { %v910_v7 = vadd.f32 %v909_v56, %v908_v3 }
 0xbd0   :  { %v911_v14 = vmul.f32 5.0, %v910_v7 }
 0xbdc   :  { %v837_v25 = vpop.f32.mrf.mxu2 }
 0xbdd   :  { %v838_v61 = vadd.f32 %v837_v25, %v2769_v27  ;;  %v3157_v27 = vld [vmem:[%s3858_s3 + $0x18] sm:$0xff]  ;;  %v949_v25 = vstv %s2358_s12  ;;  %s948_s12 = ssub.f32 %s3298_s10, %s3200_s13 }
 0xbde   :  { %s1186_s13 = ssub.f32 0.0, %s3300_s11 }
 0xbdf   :  { %2489 = vtanh.f32 %v838_v61  ;;  %s2390_s10 = sld [smem:[#allocation2 + $0x10a]] }
 0xbe5   :  { %v2490_v26 = vpop.eup %2489 }
 0xbe6   :  { %2356 = vmatmul.msk.f32.vlgmr.msra.gmra.mxu0 %vm133_vm6, %v2490_v26  ;;  %v952_v26 = vstv %s3202_s14  ;;  %s3304_s14 = sld [smem:[#allocation2 + $0x207]] }
 0xbe7   :  { %1258 = vmatpush.msra.mxu0 %v3149_v16  ;;  %v953_v1 = vmul.f32 %v2720_v8, %v952_v26 }
 0xc63   :  { %v861_v62 = vpop.f32.mrf.mxu0 }
 0xc64   :  { %v862_v31 = vadd.f32 %v861_v62, %v2822_v39  ;;  %v3175_v39 = vld [vmem:[%s3858_s3] sm:$0xff] }
 0xc66   :  { %2491 = vtanh.f32 %v862_v31  ;;  %v950_v31 = vmul.f32 %v2718_v6, %v949_v25 }
 0xc6c   :  { %v2492_v32 = vpop.eup %2491 }
 0xc6d   :  { %2357 = vmatmul.msk.f32.vlgmr.msra.gmra.mxu3 %vm133_vm6, %v2492_v32  ;;  %v955_v32 = vstv %s3206_s16  ;;  %s3550_s16 = sld [smem:[#allocation2 + $0x28b]] }
 0xc6e   :  { %1279 = vmatpush.msra.mxu3 %v3157_v27  ;;  %v956_v3 = vmul.f32 %v2724_v13, %v955_v32 }
 0xc70   :  { %1280 = vmatpush.msra.mxu3 %v3163_v33 }
 0xc72   :  { %1281 = vmatpush.msra.mxu3 %v3169_v34 }
 0xc74   :  { %1282 = vmatpush.msra.mxu3 %v3175_v39 }
 0xcf0   :  { %v885_v9 = vpop.f32.mrf.mxu3 }
 0xcf1   :  { %v886_v10 = vadd.f32 %v885_v9, %v2841_v52 }
 0xcf3   :  { %v888_v11 = vmul.f32 %v2724_v13, %v886_v10  ;;  %v891_v12 = vmul.f32 1.442695, %v886_v10  ;;  %v3231_v10 = vld [vmem:[%s3860_s5 + $0x18] sm:$0xff] }
 0xcf5   :  { %v889_v15 = vadd.f32 %v888_v11, %v3129_v0  ;;  %2493 = vpow2.f32 %v891_v12  ;;  %v3237_v11 = vld [vmem:[%s3860_s5 + $0x10] sm:$0xff]  ;;  %v3243_v12 = vld [vmem:[%s3860_s5 + $0x8] sm:$0xff] }
 0xcf6   :  { %2495 = vtanh.f32 %v911_v14  ;;  %v3249_v14 = vld [vmem:[%s3860_s5] sm:$0xff] }
 0xcf7   :  { %890 = vst.msk [vmem:[%s3862_s7 + $0x5] sm:$0x1] %vm183_vm7, %v889_v15 }
 0xcfb   :  { %v2494_v17 = vpop.eup %2493 }
 0xcfc   :  { %2497 = vrcp.f32 %v2494_v17  ;;  %v2496_v21 = vpop.eup %2495 }
 0xcfd   :  { %v913_v30 = vadd.f32 1.0, %v2496_v21 }
 0xcff   :  { %v914_v18 = vmul.f32 0.5, %v913_v30 }
 0xd01   :  { %v923_v40 = vmul.f32 %v2494_v17, %v914_v18 }
 0xd02   :  { %v2498_v35 = vpop.eup %2497 }
 0xd03   :  { %v894_v52 = vsub.f32 %v2494_v17, %v2498_v35  ;;  %v924_v42 = vmul.f32 %v923_v40, %v814_v49  ;;  %v927_v48 = vmul.f32 %v2724_v13, %v923_v40  ;;  %v3255_v17 = vld [vmem:[%s3857_s2] sm:$0x1] }
 0xd05   :  { %v895_v36 = vmul.f32 0.5, %v894_v52  ;;  %v925_v45 = vmul.f32 %v2720_v8, %v924_v42  ;;  %v3263_v52 = vld [vmem:[%s3859_s4] sm:$0x1] }
 0xd07   :  { %v915_v38 = vmul.f32 %v914_v18, %v895_v36  ;;  %v918_v54 = vmax.f32 %v895_v36, 0.0 }
 0xd09   :  { %v916_v28 = vmax.f32 %v915_v38, 0.0  ;;  %v919_v57 = vmul.f32 %v2716_v5, %v918_v54  ;;  %v1046_v38 = vstv %s1045_s29  ;;  %s3430_s29 = sld [smem:[#allocation2 + $0x209]] }
 0xd0a   :  { %v1047_v40 = vmul.f32 %v2714_v4, %v1046_v38  ;;  %v1081_v38 = vstv %s948_s12  ;;  %s3493_s12 = sld [smem:[#allocation2 + $0x20a]] }
 0xd0b   :  { %v917_v41 = vmul.f32 %v2714_v4, %v916_v28  ;;  %v921_v43 = vmul.f32 %v2718_v6, %v916_v28 }
 0xd0d   :  { %v920_v19 = vadd.f32 %v919_v57, %v917_v41 }
 0xd0f   :  { %v922_v44 = vadd.f32 %v921_v43, %v920_v19 }
 0xd11   :  { %v926_v46 = vadd.f32 %v925_v45, %v922_v44  ;;  %v3278_v44 = vld [vmem:[%s3861_s6] sm:$0x1] }
 0xd13   :  { %v928_v50 = vadd.f32 %v927_v48, %v926_v46 }
 0xd15   :  { %v933_v51 = vmul.f32 %v928_v50, %v2867_v37  ;;  %v929_v55 = vmul.f32 %v928_v50, %v2860_v22 }
 0xd17   :  { %v934_v58 = vsel %vm183_vm7, %v933_v51, 0.0  ;;  %v930_v59 = vsel %vm183_vm7, %v929_v55, 0.0 }
 0xd18   :  { %935 = vadd.xlane.f32.xlu2 %v934_v58  ;;  %931 = vadd.xlane.f32.xlu1 %v930_v59 }
 0xd8b   :  { %v936_v49 = vpop.xlane.xlu2 %935  ;;  %v932_v60 = vpop.xlane.xlu1 %931 }
 0xd8c   :  { %v938_v23 = vmul.f32 %v2716_v5, %v936_v49  ;;  %v937_v24 = vmul.f32 %v2714_v4, %v932_v60 }
 0xd8e   :  { %v939_v61 = vadd.f32 %v938_v23, %v937_v24 }
 0xd90   :  { %v941_v62 = vmul.f32 %v940_v29, %v939_v61 }
 0xd92   :  { %v3214_v63 = vadd.f32 %v941_v62, %v3129_v0 }
 0xd94   :  { %v1041_v20 = vmul.f32 %v2716_v5, %v3214_v63  ;;  %v1037_v2 = vmul.f32 %v2714_v4, %v3214_v63  ;;  %v951_v53 = vadd.f32 %v950_v31, %v3214_v63 }
 0xd96   :  { %v1042_v56 = vsel %vm183_vm7, %v1041_v20, 0.0  ;;  %v1038_v7 = vsel %vm183_vm7, %v1037_v2, 0.0  ;;  %v954_v9 = vadd.f32 %v953_v1, %v951_v53 }
 0xd97   :  { %1043 = vadd.xlane.f32.xlu1 %v1042_v56  ;;  %1039 = vadd.xlane.f32.xlu0 %v1038_v7 }
 0xd98   :  { %v957_v0 = vadd.f32 %v956_v3, %v954_v9 }
 0xd9a   :  { %2363 = vmatmul.msk.f32.vlgmr.msra.gmra.mxu1 %vm108_vm5, %v957_v0 }
 0xd9b   :  { %1303 = vmatpush.msra.mxu1 %v3231_v10 }
 0xd9d   :  { %1304 = vmatpush.msra.mxu1 %v3237_v11 }
 0xd9f   :  { %1305 = vmatpush.msra.mxu1 %v3243_v12 }
 0xda1   :  { %1306 = vmatpush.msra.mxu1 %v3249_v14 }
 0xe0a   :  { %v1040_v54 = vpop.xlane.xlu0 %1039  ;;  %v1044_v41 = vpop.xlane.xlu1 %1043 }
 0xe0b   :  { %v1048_v28 = vmul.f32 %v2718_v6, %v1040_v54  ;;  %v1050_v42 = vmul.f32 %v1044_v41, %v2835_v47  ;;  %v1090_v54 = vstv %s2366_s1  ;;  %s3489_s1 = sld [smem:[#allocation2 + $0x18a]] }
 0xe0d   :  { %v1049_v57 = vadd.f32 %v1048_v28, %v1047_v40  ;;  %v1093_v28 = vstv %s3300_s11  ;;  %s1371_s11 = ssub.f32 %s3487_s0, %s3424_s25 }
 0xe0e   :  { %s2414_s25 = sld [smem:[#allocation2 + $0x10d]] }
 0xe0f   :  { %v1051_v19 = vadd.f32 %v1050_v42, %v1049_v57  ;;  %v1091_v57 = vmul.f32 %v2718_v6, %v1090_v54  ;;  %v1096_v42 = vstv %s3304_s14 }
 0xe11   :  { %v1052_v50 = vmul.f32 5.0, %v1051_v19  ;;  %s1609_s14 = ssub.f32 0.0, %s3489_s1 }
 0xe17   :  { %v978_v15 = vpop.f32.mrf.mxu1 }
 0xe18   :  { %v979_v21 = vadd.f32 %v3255_v17, %v978_v15 }
 0xe1a   :  { %2499 = vtanh.f32 %v979_v21 }
 0xe20   :  { %v2500_v30 = vpop.eup %2499 }
 0xe21   :  { %2364 = vmatmul.msk.f32.vlgmr.msra.gmra.mxu2 %vm133_vm6, %v2500_v30 }
 0xe22   :  { %1399 = vmatpush.msra.mxu2 %v3149_v16 }
 0xea4   :  { %v1002_v35 = vpop.f32.mrf.mxu2 }
 0xea5   :  { %v1003_v18 = vadd.f32 %v3263_v52, %v1002_v35 }
 0xea7   :  { %2501 = vtanh.f32 %v1003_v18 }
 0xead   :  { %v2502_v36 = vpop.eup %2501 }
 0xeae   :  { %2365 = vmatmul.msk.f32.vlgmr.msrb.gmra.mxu0 %vm133_vm6, %v2502_v36 }
 0xeaf   :  { %1420 = vmatpush.msrb.mxu0 %v3157_v27 }
 0xeb1   :  { %1421 = vmatpush.msrb.mxu0 %v3163_v33 }
 0xeb3   :  { %1422 = vmatpush.msrb.mxu0 %v3169_v34 }
 0xeb5   :  { %1423 = vmatpush.msrb.mxu0 %v3175_v39 }
 0xf2b   :  { %v1026_v43 = vpop.f32.mrf.mxu0 }
 0xf2c   :  { %v1027_v45 = vadd.f32 %v3278_v44, %v1026_v43  ;;  %v1094_v43 = vmul.f32 %v2720_v8, %v1093_v28 }
 0xf2e   :  { %v1029_v46 = vmul.f32 %v2724_v13, %v1027_v45  ;;  %v1032_v48 = vmul.f32 1.442695, %v1027_v45 }
 0xf30   :  { %v1030_v51 = vadd.f32 %v1029_v46, %v3214_v63  ;;  %2503 = vpow2.f32 %v1032_v48 }
 0xf31   :  { %2505 = vtanh.f32 %v1052_v50  ;;  %v1097_v50 = vmul.f32 %v2724_v13, %v1096_v42 }
 0xf32   :  { %1031 = vst.msk [vmem:[%s3862_s7 + $0x6] sm:$0x1] %vm183_vm7, %v1030_v51 }
 0xf36   :  { %v2504_v55 = vpop.eup %2503 }
 0xf37   :  { %2507 = vrcp.f32 %v2504_v55  ;;  %v2506_v58 = vpop.eup %2505 }
 0xf38   :  { %v1054_v59 = vadd.f32 1.0, %v2506_v58 }
 0xf3a   :  { %v1055_v23 = vmul.f32 0.5, %v1054_v59 }
 0xf3c   :  { %v1064_v61 = vmul.f32 %v2504_v55, %v1055_v23 }
 0xf3d   :  { %v2508_v49 = vpop.eup %2507 }
 0xf3e   :  { %v1035_v60 = vsub.f32 %v2504_v55, %v2508_v49  ;;  %v1065_v1 = vmul.f32 %v1064_v61, %v955_v32  ;;  %v1068_v7 = vmul.f32 %v2724_v13, %v1064_v61 }
 0xf40   :  { %v1036_v24 = vmul.f32 0.5, %v1035_v60  ;;  %v1066_v3 = vmul.f32 %v2720_v8, %v1065_v1 }
 0xf42   :  { %v1056_v29 = vmul.f32 %v1055_v23, %v1036_v24  ;;  %v1059_v25 = vmax.f32 %v1036_v24, 0.0 }
 0xf44   :  { %v1057_v26 = vmax.f32 %v1056_v29, 0.0  ;;  %v1060_v31 = vmul.f32 %v2716_v5, %v1059_v25  ;;  %v1187_v25 = vstv %s1186_s13  ;;  %s2425_s13 = sld [smem:[#allocation2 + $0x28f]] }
 0xf46   :  { %v1058_v62 = vmul.f32 %v2714_v4, %v1057_v26  ;;  %v1062_v2 = vmul.f32 %v2718_v6, %v1057_v26  ;;  %v1188_v26 = vmul.f32 %v2714_v4, %v1187_v25  ;;  %v1222_v25 = vstv %s1089_s20  ;;  %s3556_s20 = sld [smem:[#allocation2 + $0x20b]] }
 0xf48   :  { %v1061_v20 = vadd.f32 %v1060_v31, %v1058_v62 }
 0xf4a   :  { %v1063_v53 = vadd.f32 %v1062_v2, %v1061_v20 }
 0xf4c   :  { %v1067_v56 = vadd.f32 %v1066_v3, %v1063_v53 }
 0xf4e   :  { %v1069_v9 = vadd.f32 %v1068_v7, %v1067_v56 }
 0xf50   :  { %v1074_v0 = vmul.f32 %v1069_v9, %v2867_v37  ;;  %v1070_v15 = vmul.f32 %v1069_v9, %v2860_v22 }
 0xf52   :  { %v1075_v21 = vsel %vm183_vm7, %v1074_v0, 0.0  ;;  %v1071_v30 = vsel %vm183_vm7, %v1070_v15, 0.0 }
 0xf53   :  { %1076 = vadd.xlane.f32.xlu0 %v1075_v21  ;;  %1072 = vadd.xlane.f32.xlu2 %v1071_v30 }
 0xfc6   :  { %v1077_v32 = vpop.xlane.xlu0 %1076  ;;  %v1073_v35 = vpop.xlane.xlu2 %1072 }
 0xfc7   :  { %v1079_v18 = vmul.f32 %v2716_v5, %v1077_v32  ;;  %v1078_v36 = vmul.f32 %v2714_v4, %v1073_v35 }
 0xfc9   :  { %v1080_v40 = vadd.f32 %v1079_v18, %v1078_v36 }
 0xfcb   :  { %v1082_v41 = vmul.f32 %v1081_v38, %v1080_v40 }
 0xfcd   :  { %v3312_v19 = vadd.f32 %v1082_v41, %v3214_v63 }
 0xfcf   :  { %v1182_v45 = vmul.f32 %v2716_v5, %v3312_v19  ;;  %v1178_v46 = vmul.f32 %v2714_v4, %v3312_v19  ;;  %v1092_v48 = vadd.f32 %v1091_v57, %v3312_v19 }
 0xfd1   :  { %v1183_v51 = vsel %vm183_vm7, %v1182_v45, 0.0  ;;  %v1179_v55 = vsel %vm183_vm7, %v1178_v46, 0.0  ;;  %v1095_v58 = vadd.f32 %v1094_v43, %v1092_v48 }
 0xfd2   :  { %1184 = vadd.xlane.f32.xlu2 %v1183_v51  ;;  %1180 = vadd.xlane.f32.xlu1 %v1179_v55 }
 0xfd3   :  { %v1098_v63 = vadd.f32 %v1097_v50, %v1095_v58 }
 0xfd5   :  { %2371 = vmatmul.msk.f32.vlgmr.msrb.gmra.mxu3 %vm108_vm5, %v1098_v63 }
 0xfd6   :  { %1444 = vmatpush.msrb.mxu3 %v3231_v10 }
 0xfd8   :  { %1445 = vmatpush.msrb.mxu3 %v3237_v11 }
 0xfda   :  { %1446 = vmatpush.msrb.mxu3 %v3243_v12 }
 0xfdc   :  { %1447 = vmatpush.msrb.mxu3 %v3249_v14 }
0x1045   :  { %v1181_v61 = vpop.xlane.xlu1 %1180  ;;  %v1185_v31 = vpop.xlane.xlu2 %1184 }
0x1046   :  { %v1189_v62 = vmul.f32 %v2718_v6, %v1181_v61  ;;  %v1191_v20 = vmul.f32 %v1185_v31, %v2835_v47  ;;  %v1231_v61 = vstv %s2374_s18  ;;  %s3552_s18 = sld [smem:[#allocation2 + $0x18b]] }
0x1048   :  { %v1190_v1 = vadd.f32 %v1189_v62, %v1188_v26  ;;  %v1234_v62 = vstv %s3363_s19  ;;  %s1512_s19 = ssub.f32 %s3550_s16, %s3487_s0 }
0x1049   :  { %s3637_s0 = sld [smem:[#allocation2 + $0x18c]] }
0x104a   :  { %v1192_v2 = vadd.f32 %v1191_v20, %v1190_v1  ;;  %v1232_v1 = vmul.f32 %v2718_v6, %v1231_v61  ;;  %v1237_v20 = vstv %s3367_s21 }
0x104c   :  { %v1193_v9 = vmul.f32 5.0, %v1192_v2 }
0x1058   :  { %v1119_v59 = vpop.f32.mrf.mxu3 }
0x1059   :  { %v1120_v49 = vadd.f32 %v3255_v17, %v1119_v59 }
0x105b   :  { %2509 = vtanh.f32 %v1120_v49 }
0x1061   :  { %v2510_v60 = vpop.eup %2509 }
0x1062   :  { %2372 = vmatmul.msk.f32.vlgmr.msrb.gmra.mxu1 %vm133_vm6, %v2510_v60 }
0x1063   :  { %1540 = vmatpush.msrb.mxu1 %v3149_v16 }
0x10df   :  { %v1143_v23 = vpop.f32.mrf.mxu1 }
0x10e0   :  { %v1144_v24 = vadd.f32 %v3263_v52, %v1143_v23 }
0x10e2   :  { %2511 = vtanh.f32 %v1144_v24 }
0x10e8   :  { %v2512_v29 = vpop.eup %2511 }
0x10e9   :  { %2373 = vmatmul.msk.f32.vlgmr.msrb.gmra.mxu2 %vm133_vm6, %v2512_v29 }
0x10ea   :  { %1561 = vmatpush.msrb.mxu2 %v3157_v27 }
0x10ec   :  { %1562 = vmatpush.msrb.mxu2 %v3163_v33 }
0x10ee   :  { %1563 = vmatpush.msrb.mxu2 %v3169_v34 }
0x10f0   :  { %1564 = vmatpush.msrb.mxu2 %v3175_v39 }
0x116c   :  { %v1167_v53 = vpop.f32.mrf.mxu2 }
0x116d   :  { %v1168_v3 = vadd.f32 %v3278_v44, %v1167_v53  ;;  %v1235_v53 = vmul.f32 %v2720_v8, %v1234_v62 }
0x116f   :  { %v1170_v56 = vmul.f32 %v2724_v13, %v1168_v3  ;;  %v1173_v7 = vmul.f32 1.442695, %v1168_v3 }
0x1171   :  { %v1171_v0 = vadd.f32 %v1170_v56, %v3312_v19  ;;  %2513 = vpow2.f32 %v1173_v7 }
0x1172   :  { %2515 = vtanh.f32 %v1193_v9  ;;  %v1238_v9 = vmul.f32 %v2724_v13, %v1237_v20 }
0x1173   :  { %1172 = vst.msk [vmem:[%s3862_s7 + $0x7] sm:$0x1] %vm183_vm7, %v1171_v0 }
0x1177   :  { %v2514_v15 = vpop.eup %2513 }
0x1178   :  { %2517 = vrcp.f32 %v2514_v15  ;;  %v2516_v21 = vpop.eup %2515 }
0x1179   :  { %v1195_v30 = vadd.f32 1.0, %v2516_v21 }
0x117b   :  { %v1196_v18 = vmul.f32 0.5, %v1195_v30 }
0x117d   :  { %v1205_v40 = vmul.f32 %v2514_v15, %v1196_v18 }
0x117e   :  { %v2518_v32 = vpop.eup %2517 }
0x117f   :  { %v1176_v35 = vsub.f32 %v2514_v15, %v2518_v32  ;;  %v1206_v43 = vmul.f32 %v1205_v40, %v1096_v42  ;;  %v1209_v55 = vmul.f32 %v2724_v13, %v1205_v40 }
0x1181   :  { %v1177_v36 = vmul.f32 0.5, %v1176_v35  ;;  %v1207_v50 = vmul.f32 %v2720_v8, %v1206_v43 }
0x1183   :  { %v1197_v38 = vmul.f32 %v1196_v18, %v1177_v36  ;;  %v1200_v54 = vmax.f32 %v1177_v36, 0.0 }
0x1185   :  { %v1198_v28 = vmax.f32 %v1197_v38, 0.0  ;;  %v1201_v57 = vmul.f32 %v2716_v5, %v1200_v54  ;;  %v1328_v54 = vstv %s1327_s22 }
0x1187   :  { %v1199_v41 = vmul.f32 %v2714_v4, %v1198_v28  ;;  %v1203_v46 = vmul.f32 %v2718_v6, %v1198_v28  ;;  %v1329_v28 = vmul.f32 %v2714_v4, %v1328_v54  ;;  %v1363_v54 = vstv %s1230_s28  ;;  %s3739_s28 = sld [smem:[#allocation2 + $0x20d]] }
0x1189   :  { %v1202_v45 = vadd.f32 %v1201_v57, %v1199_v41 }
0x118b   :  { %v1204_v48 = vadd.f32 %v1203_v46, %v1202_v45 }
0x118d   :  { %v1208_v51 = vadd.f32 %v1207_v50, %v1204_v48 }
0x118f   :  { %v1210_v58 = vadd.f32 %v1209_v55, %v1208_v51 }
0x1191   :  { %v1215_v63 = vmul.f32 %v1210_v58, %v2867_v37  ;;  %v1211_v59 = vmul.f32 %v1210_v58, %v2860_v22 }
0x1193   :  { %v1216_v49 = vsel %vm183_vm7, %v1215_v63, 0.0  ;;  %v1212_v60 = vsel %vm183_vm7, %v1211_v59, 0.0 }
0x1194   :  { %1217 = vadd.xlane.f32.xlu1 %v1216_v49  ;;  %1213 = vadd.xlane.f32.xlu0 %v1212_v60 }
0x1207   :  { %v1218_v42 = vpop.xlane.xlu1 %1217  ;;  %v1214_v23 = vpop.xlane.xlu0 %1213 }
0x1208   :  { %v1220_v24 = vmul.f32 %v2716_v5, %v1218_v42  ;;  %v1219_v29 = vmul.f32 %v2714_v4, %v1214_v23 }
0x120a   :  { %v1221_v26 = vadd.f32 %v1220_v24, %v1219_v29 }
0x120c   :  { %v1223_v31 = vmul.f32 %v1222_v25, %v1221_v26 }
0x120e   :  { %v3375_v2 = vadd.f32 %v1223_v31, %v3312_v19 }
0x1210   :  { %v1323_v3 = vmul.f32 %v2716_v5, %v3375_v2  ;;  %v1319_v56 = vmul.f32 %v2714_v4, %v3375_v2  ;;  %v1233_v7 = vadd.f32 %v1232_v1, %v3375_v2 }
0x1212   :  { %v1324_v0 = vsel %vm183_vm7, %v1323_v3, 0.0  ;;  %v1320_v15 = vsel %vm183_vm7, %v1319_v56, 0.0  ;;  %v1236_v21 = vadd.f32 %v1235_v53, %v1233_v7 }
0x1213   :  { %1325 = vadd.xlane.f32.xlu0 %v1324_v0  ;;  %1321 = vadd.xlane.f32.xlu2 %v1320_v15 }
0x1214   :  { %v1239_v19 = vadd.f32 %v1238_v9, %v1236_v21 }
0x1216   :  { %2379 = vmatmul.msk.f32.vlgmr.msra.gmra.mxu0 %vm108_vm5, %v1239_v19 }
0x1217   :  { %1585 = vmatpush.msra.mxu0 %v3231_v10 }
0x1219   :  { %1586 = vmatpush.msra.mxu0 %v3237_v11 }
0x121b   :  { %1587 = vmatpush.msra.mxu0 %v3243_v12 }
0x121d   :  { %1588 = vmatpush.msra.mxu0 %v3249_v14 }
0x1286   :  { %v1322_v40 = vpop.xlane.xlu2 %1321  ;;  %v1326_v57 = vpop.xlane.xlu0 %1325 }
0x1287   :  { %v1330_v41 = vmul.f32 %v2718_v6, %v1322_v40  ;;  %v1332_v45 = vmul.f32 %v1326_v57, %v2835_v47  ;;  %v1372_v40 = vstv %s2382_s26  ;;  %s3735_s26 = sld [smem:[#allocation2 + $0x18d]] }
0x1289   :  { %v1331_v43 = vadd.f32 %v1330_v41, %v1329_v28  ;;  %v1375_v41 = vstv %s3426_s27 }
0x128b   :  { %v1333_v46 = vadd.f32 %v1332_v45, %v1331_v43  ;;  %v1373_v43 = vmul.f32 %v2718_v6, %v1372_v40  ;;  %v1378_v45 = vstv %s3430_s29  ;;  %s1750_s29 = ssub.f32 0.0, %s3552_s18 }
0x128d   :  { %v1334_v58 = vmul.f32 5.0, %v1333_v46 }
0x1293   :  { %v1260_v30 = vpop.f32.mrf.mxu0 }
0x1294   :  { %v1261_v32 = vadd.f32 %v3255_v17, %v1260_v30 }
0x1296   :  { %2519 = vtanh.f32 %v1261_v32 }
0x129c   :  { %v2520_v35 = vpop.eup %2519 }
0x129d   :  { %2380 = vmatmul.msk.f32.vlgmr.msra.gmra.mxu3 %vm133_vm6, %v2520_v35 }
0x129e   :  { %1681 = vmatpush.msra.mxu3 %v3149_v16 }
0x1320   :  { %v1284_v18 = vpop.f32.mrf.mxu3 }
0x1321   :  { %v1285_v36 = vadd.f32 %v3263_v52, %v1284_v18 }
0x1323   :  { %2521 = vtanh.f32 %v1285_v36 }
0x1329   :  { %v2522_v38 = vpop.eup %2521 }
0x132a   :  { %2381 = vmatmul.msk.f32.vlgmr.msra.gmra.mxu1 %vm133_vm6, %v2522_v38 }
0x132b   :  { %1702 = vmatpush.msra.mxu1 %v3157_v27 }
0x132d   :  { %1703 = vmatpush.msra.mxu1 %v3163_v33 }
0x132f   :  { %1704 = vmatpush.msra.mxu1 %v3169_v34 }
0x1331   :  { %1705 = vmatpush.msra.mxu1 %v3175_v39 }
0x13a7   :  { %v1308_v48 = vpop.f32.mrf.mxu1 }
0x13a8   :  { %v1309_v50 = vadd.f32 %v3278_v44, %v1308_v48  ;;  %v1376_v48 = vmul.f32 %v2720_v8, %v1375_v41 }
0x13aa   :  { %v1311_v51 = vmul.f32 %v2724_v13, %v1309_v50  ;;  %v1314_v55 = vmul.f32 1.442695, %v1309_v50 }
0x13ac   :  { %v1312_v63 = vadd.f32 %v1311_v51, %v3375_v2  ;;  %2523 = vpow2.f32 %v1314_v55 }
0x13ad   :  { %2525 = vtanh.f32 %v1334_v58  ;;  %v1379_v58 = vmul.f32 %v2724_v13, %v1378_v45 }
0x13ae   :  { %1313 = vst.msk [vmem:[%s3862_s7 + $0x8] sm:$0x1] %vm183_vm7, %v1312_v63 }
0x13b2   :  { %v2524_v59 = vpop.eup %2523 }
0x13b3   :  { %2527 = vrcp.f32 %v2524_v59  ;;  %v2526_v49 = vpop.eup %2525 }
0x13b4   :  { %v1336_v60 = vadd.f32 1.0, %v2526_v49 }
0x13b6   :  { %v1337_v24 = vmul.f32 0.5, %v1336_v60 }
0x13b8   :  { %v1346_v26 = vmul.f32 %v2524_v59, %v1337_v24 }
0x13b9   :  { %v2528_v42 = vpop.eup %2527 }
0x13ba   :  { %v1317_v23 = vsub.f32 %v2524_v59, %v2528_v42  ;;  %v1347_v53 = vmul.f32 %v1346_v26, %v1237_v20  ;;  %v1350_v15 = vmul.f32 %v2724_v13, %v1346_v26 }
0x13bc   :  { %v1318_v29 = vmul.f32 0.5, %v1317_v23  ;;  %v1348_v9 = vmul.f32 %v2720_v8, %v1347_v53 }
0x13be   :  { %v1338_v25 = vmul.f32 %v1337_v24, %v1318_v29  ;;  %v1341_v61 = vmax.f32 %v1318_v29, 0.0 }
0x13c0   :  { %v1339_v62 = vmax.f32 %v1338_v25, 0.0  ;;  %v1342_v1 = vmul.f32 %v2716_v5, %v1341_v61  ;;  %v1469_v61 = vstv %s1468_s30 }
0x13c2   :  { %v1340_v31 = vmul.f32 %v2714_v4, %v1339_v62  ;;  %v1344_v56 = vmul.f32 %v2718_v6, %v1339_v62  ;;  %v1470_v62 = vmul.f32 %v2714_v4, %v1469_v61  ;;  %v1504_v61 = vstv %s1371_s11 }
0x13c4   :  { %v1343_v3 = vadd.f32 %v1342_v1, %v1340_v31 }
0x13c6   :  { %v1345_v7 = vadd.f32 %v1344_v56, %v1343_v3 }
0x13c8   :  { %v1349_v0 = vadd.f32 %v1348_v9, %v1345_v7 }
0x13ca   :  { %v1351_v21 = vadd.f32 %v1350_v15, %v1349_v0 }
0x13cc   :  { %v1356_v19 = vmul.f32 %v1351_v21, %v2867_v37  ;;  %v1352_v30 = vmul.f32 %v1351_v21, %v2860_v22 }
0x13ce   :  { %v1357_v32 = vsel %vm183_vm7, %v1356_v19, 0.0  ;;  %v1353_v35 = vsel %vm183_vm7, %v1352_v30, 0.0 }
0x13cf   :  { %1358 = vadd.xlane.f32.xlu2 %v1357_v32  ;;  %1354 = vadd.xlane.f32.xlu1 %v1353_v35 }
0x1442   :  { %v1359_v20 = vpop.xlane.xlu2 %1358  ;;  %v1355_v18 = vpop.xlane.xlu1 %1354 }
0x1443   :  { %v1361_v36 = vmul.f32 %v2716_v5, %v1359_v20  ;;  %v1360_v38 = vmul.f32 %v2714_v4, %v1355_v18 }
0x1445   :  { %v1362_v28 = vadd.f32 %v1361_v36, %v1360_v38 }
0x1447   :  { %v1364_v57 = vmul.f32 %v1363_v54, %v1362_v28 }
0x1449   :  { %v3438_v46 = vadd.f32 %v1364_v57, %v3375_v2 }
0x144b   :  { %v1464_v50 = vmul.f32 %v2716_v5, %v3438_v46  ;;  %v1460_v51 = vmul.f32 %v2714_v4, %v3438_v46  ;;  %v1374_v55 = vadd.f32 %v1373_v43, %v3438_v46 }
0x144d   :  { %v1465_v63 = vsel %vm183_vm7, %v1464_v50, 0.0  ;;  %v1461_v59 = vsel %vm183_vm7, %v1460_v51, 0.0  ;;  %v1377_v49 = vadd.f32 %v1376_v48, %v1374_v55 }
0x144e   :  { %1466 = vadd.xlane.f32.xlu1 %v1465_v63  ;;  %1462 = vadd.xlane.f32.xlu0 %v1461_v59 }
0x144f   :  { %v1380_v2 = vadd.f32 %v1379_v58, %v1377_v49 }
0x1451   :  { %2387 = vmatmul.msk.f32.vlgmr.msra.gmra.mxu2 %vm108_vm5, %v1380_v2 }
0x1452   :  { %1726 = vmatpush.msra.mxu2 %v3231_v10 }
0x1454   :  { %1727 = vmatpush.msra.mxu2 %v3237_v11 }
0x1456   :  { %1728 = vmatpush.msra.mxu2 %v3243_v12 }
0x1458   :  { %1729 = vmatpush.msra.mxu2 %v3249_v14 }
0x14c1   :  { %v1463_v26 = vpop.xlane.xlu0 %1462  ;;  %v1467_v1 = vpop.xlane.xlu1 %1466 }
0x14c2   :  { %v1471_v31 = vmul.f32 %v2718_v6, %v1463_v26  ;;  %v1473_v3 = vmul.f32 %v1467_v1, %v2835_v47  ;;  %v1513_v26 = vstv %s2390_s10  ;;  %s1653_s10 = ssub.f32 %s3635_s8, %s3550_s16 }
0x14c3   :  { %s2431_s16 = sld [smem:[#allocation2 + $0x18f]] }
0x14c4   :  { %v1472_v53 = vadd.f32 %v1471_v31, %v1470_v62  ;;  %v1516_v31 = vstv %s3489_s1  ;;  %s3641_s1 = sld [smem:[#allocation2 + $0x20c]] }
0x14c6   :  { %v1474_v56 = vadd.f32 %v1473_v3, %v1472_v53  ;;  %v1514_v53 = vmul.f32 %v2718_v6, %v1513_v26  ;;  %v1519_v3 = vstv %s3493_s12 }
0x14c8   :  { %v1475_v21 = vmul.f32 5.0, %v1474_v56 }
0x14d4   :  { %v1401_v60 = vpop.f32.mrf.mxu2 }
0x14d5   :  { %v1402_v42 = vadd.f32 %v3255_v17, %v1401_v60 }
0x14d7   :  { %2529 = vtanh.f32 %v1402_v42 }
0x14dd   :  { %v2530_v23 = vpop.eup %2529 }
0x14de   :  { %2388 = vmatmul.msk.f32.vlgmr.msrb.gmra.mxu0 %vm133_vm6, %v2530_v23 }
0x14df   :  { %1822 = vmatpush.msrb.mxu0 %v3149_v16 }
0x155b   :  { %v1425_v24 = vpop.f32.mrf.mxu0 }
0x155c   :  { %v1426_v29 = vadd.f32 %v3263_v52, %v1425_v24 }
0x155e   :  { %2531 = vtanh.f32 %v1426_v29 }
0x1564   :  { %v2532_v25 = vpop.eup %2531 }
0x1565   :  { %2389 = vmatmul.msk.f32.vlgmr.msrb.gmra.mxu3 %vm133_vm6, %v2532_v25 }
0x1566   :  { %1843 = vmatpush.msrb.mxu3 %v3157_v27 }
0x1568   :  { %1844 = vmatpush.msrb.mxu3 %v3163_v33 }
0x156a   :  { %1845 = vmatpush.msrb.mxu3 %v3169_v34 }
0x156c   :  { %1846 = vmatpush.msrb.mxu3 %v3175_v39 }
0x15e8   :  { %v1449_v7 = vpop.f32.mrf.mxu3 }
0x15e9   :  { %v1450_v9 = vadd.f32 %v3278_v44, %v1449_v7  ;;  %v1517_v7 = vmul.f32 %v2720_v8, %v1516_v31 }
0x15eb   :  { %v1452_v0 = vmul.f32 %v2724_v13, %v1450_v9  ;;  %v1455_v15 = vmul.f32 1.442695, %v1450_v9 }
0x15ed   :  { %v1453_v19 = vadd.f32 %v1452_v0, %v3438_v46  ;;  %2533 = vpow2.f32 %v1455_v15 }
0x15ee   :  { %2535 = vtanh.f32 %v1475_v21  ;;  %v1520_v21 = vmul.f32 %v2724_v13, %v1519_v3 }
0x15ef   :  { %1454 = vst.msk [vmem:[%s3862_s7 + $0x9] sm:$0x1] %vm183_vm7, %v1453_v19 }
0x15f3   :  { %v2534_v30 = vpop.eup %2533 }
0x15f4   :  { %2537 = vrcp.f32 %v2534_v30  ;;  %v2536_v32 = vpop.eup %2535 }
0x15f5   :  { %v1477_v35 = vadd.f32 1.0, %v2536_v32 }
0x15f7   :  { %v1478_v36 = vmul.f32 0.5, %v1477_v35 }
0x15f9   :  { %v1487_v28 = vmul.f32 %v2534_v30, %v1478_v36 }
0x15fa   :  { %v2538_v20 = vpop.eup %2537 }
0x15fb   :  { %v1458_v18 = vsub.f32 %v2534_v30, %v2538_v20  ;;  %v1488_v48 = vmul.f32 %v1487_v28, %v1378_v45  ;;  %v1491_v59 = vmul.f32 %v2724_v13, %v1487_v28 }
0x15fd   :  { %v1459_v38 = vmul.f32 0.5, %v1458_v18  ;;  %v1489_v58 = vmul.f32 %v2720_v8, %v1488_v48 }
0x15ff   :  { %v1479_v54 = vmul.f32 %v1478_v36, %v1459_v38  ;;  %v1482_v40 = vmax.f32 %v1459_v38, 0.0 }
0x1601   :  { %v1480_v41 = vmax.f32 %v1479_v54, 0.0  ;;  %v1483_v43 = vmul.f32 %v2716_v5, %v1482_v40  ;;  %v1610_v40 = vstv %s1609_s14 }
0x1603   :  { %v1481_v57 = vmul.f32 %v2714_v4, %v1480_v41  ;;  %v1485_v51 = vmul.f32 %v2718_v6, %v1480_v41 }
0x1605   :  { %v1484_v50 = vadd.f32 %v1483_v43, %v1481_v57 }
0x1607   :  { %v1486_v55 = vadd.f32 %v1485_v51, %v1484_v50 }
0x1609   :  { %v1490_v63 = vadd.f32 %v1489_v58, %v1486_v55 }
0x160b   :  { %v1492_v49 = vadd.f32 %v1491_v59, %v1490_v63 }
0x160d   :  { %v1497_v2 = vmul.f32 %v1492_v49, %v2867_v37  ;;  %v1493_v60 = vmul.f32 %v1492_v49, %v2860_v22 }
0x160f   :  { %v1498_v42 = vsel %vm183_vm7, %v1497_v2, 0.0  ;;  %v1494_v23 = vsel %vm183_vm7, %v1493_v60, 0.0 }
0x1610   :  { %1499 = vadd.xlane.f32.xlu0 %v1498_v42  ;;  %1495 = vadd.xlane.f32.xlu2 %v1494_v23 }
0x1683   :  { %v1500_v45 = vpop.xlane.xlu0 %1499  ;;  %v1496_v24 = vpop.xlane.xlu2 %1495 }
0x1684   :  { %v1502_v29 = vmul.f32 %v2716_v5, %v1500_v45  ;;  %v1501_v25 = vmul.f32 %v2714_v4, %v1496_v24 }
0x1686   :  { %v1503_v62 = vadd.f32 %v1502_v29, %v1501_v25 }
0x1688   :  { %v1505_v1 = vmul.f32 %v1504_v61, %v1503_v62 }
0x168a   :  { %v3501_v56 = vadd.f32 %v1505_v1, %v3438_v46 }
0x168c   :  { %v1605_v9 = vmul.f32 %v2716_v5, %v3501_v56  ;;  %v1601_v0 = vmul.f32 %v2714_v4, %v3501_v56  ;;  %v1515_v15 = vadd.f32 %v1514_v53, %v3501_v56 }
0x168e   :  { %v1606_v19 = vsel %vm183_vm7, %v1605_v9, 0.0  ;;  %v1602_v30 = vsel %vm183_vm7, %v1601_v0, 0.0  ;;  %v1518_v32 = vadd.f32 %v1517_v7, %v1515_v15 }
0x168f   :  { %1607 = vadd.xlane.f32.xlu2 %v1606_v19  ;;  %1603 = vadd.xlane.f32.xlu1 %v1602_v30 }
0x1690   :  { %v1521_v46 = vadd.f32 %v1520_v21, %v1518_v32 }
0x1692   :  { %2395 = vmatmul.msk.f32.vlgmr.msrb.gmra.mxu1 %vm108_vm5, %v1521_v46 }
0x1693   :  { %1867 = vmatpush.msrb.mxu1 %v3231_v10 }
0x1695   :  { %1868 = vmatpush.msrb.mxu1 %v3237_v11 }
0x1697   :  { %1869 = vmatpush.msrb.mxu1 %v3243_v12 }
0x1699   :  { %1870 = vmatpush.msrb.mxu1 %v3249_v14 }
0x1702   :  { %v1604_v28 = vpop.xlane.xlu1 %1603  ;;  %v1608_v57 = vpop.xlane.xlu2 %1607 }
0x1703   :  { %v1612_v41 = vmul.f32 %v2718_v6, %v1604_v28  ;;  %v1614_v48 = vmul.f32 %v1608_v57, %v2835_v47  ;;  %v1660_v28 = vstv %s3556_s20 }
0x170f   :  { %v1542_v35 = vpop.f32.mrf.mxu1 }
0x1710   :  { %v1543_v20 = vadd.f32 %v3255_v17, %v1542_v35 }
0x1712   :  { %2539 = vtanh.f32 %v1543_v20  ;;  %v1645_v20 = vstv %s1512_s19 }
0x1718   :  { %v2540_v18 = vpop.eup %2539 }
0x1719   :  { %2396 = vmatmul.msk.f32.vlgmr.msrb.gmra.mxu2 %vm133_vm6, %v2540_v18  ;;  %v1654_v18 = vstv %s2398_s17 }
0x171a   :  { %1963 = vmatpush.msrb.mxu2 %v3149_v16  ;;  %v1611_v16 = vmul.f32 %v2714_v4, %v1610_v40  ;;  %v1655_v40 = vmul.f32 %v2718_v6, %v1654_v18 }
0x171c   :  { %v1613_v43 = vadd.f32 %v1612_v41, %v1611_v16 }
0x171e   :  { %v1615_v50 = vadd.f32 %v1614_v48, %v1613_v43 }
0x1720   :  { %v1616_v55 = vmul.f32 5.0, %v1615_v50  ;;  %v1661_v50 = vmul.f32 %v2724_v13, %v1660_v28 }
0x179c   :  { %v1566_v36 = vpop.f32.mrf.mxu2 }
0x179d   :  { %v1567_v38 = vadd.f32 %v3263_v52, %v1566_v36 }
0x179f   :  { %2541 = vtanh.f32 %v1567_v38  ;;  %v1657_v38 = vstv %s3552_s18  ;;  %s2432_s18 = sld [smem:[#allocation2 + $0x20f]] }
0x17a0   :  { %v1658_v41 = vmul.f32 %v2720_v8, %v1657_v38 }
0x17a5   :  { %v2542_v54 = vpop.eup %2541 }
0x17a6   :  { %2397 = vmatmul.msk.f32.vlgmr.msra.gmra.mxu0 %vm133_vm6, %v2542_v54 }
0x17a7   :  { %1984 = vmatpush.msra.mxu0 %v3157_v27 }
0x17a9   :  { %1985 = vmatpush.msra.mxu0 %v3163_v33 }
0x17ab   :  { %1986 = vmatpush.msra.mxu0 %v3169_v34 }
0x17ad   :  { %1987 = vmatpush.msra.mxu0 %v3175_v39 }
0x1823   :  { %v1590_v51 = vpop.f32.mrf.mxu0 }
0x1824   :  { %v1591_v27 = vadd.f32 %v3278_v44, %v1590_v51 }
0x1826   :  { %v1593_v33 = vmul.f32 %v2724_v13, %v1591_v27  ;;  %v1596_v34 = vmul.f32 1.442695, %v1591_v27 }
0x1828   :  { %v1594_v39 = vadd.f32 %v1593_v33, %v3501_v56  ;;  %2543 = vpow2.f32 %v1596_v34 }
0x1829   :  { %2545 = vtanh.f32 %v1616_v55 }
0x182a   :  { %1595 = vst.msk [vmem:[%s3862_s7 + $0xa] sm:$0x1] %vm183_vm7, %v1594_v39 }
0x182e   :  { %v2544_v58 = vpop.eup %2543 }
0x182f   :  { %2547 = vrcp.f32 %v2544_v58  ;;  %v2546_v63 = vpop.eup %2545 }
0x1830   :  { %v1618_v59 = vadd.f32 1.0, %v2546_v63 }
0x1832   :  { %v1619_v60 = vmul.f32 0.5, %v1618_v59  ;;  %v1751_v59 = vstv %s1750_s29  ;;  %s2032_s29 = ssub.f32 0.0, %s3735_s26 }
0x1834   :  { %v1628_v24 = vmul.f32 %v2544_v58, %v1619_v60 }
0x1835   :  { %v2548_v49 = vpop.eup %2547 }
0x1836   :  { %v1599_v2 = vsub.f32 %v2544_v58, %v2548_v49  ;;  %v1629_v26 = vmul.f32 %v1628_v24, %v1519_v3  ;;  %v1632_v9 = vmul.f32 %v2724_v13, %v1628_v24  ;;  %v3584_v58 = vld [vmem:[#allocation5] sm:$0xff] }
0x1838   :  { %v1600_v42 = vmul.f32 0.5, %v1599_v2  ;;  %v1630_v53 = vmul.f32 %v2720_v8, %v1629_v26  ;;  %v1752_v2 = vmul.f32 %v2714_v4, %v1751_v59 }
0x183a   :  { %v1620_v23 = vmul.f32 %v1619_v60, %v1600_v42  ;;  %v1623_v45 = vmax.f32 %v1600_v42, 0.0 }
0x183c   :  { %v1621_v29 = vmax.f32 %v1620_v23, 0.0  ;;  %v1624_v61 = vmul.f32 %v2716_v5, %v1623_v45 }
0x183e   :  { %v1622_v25 = vmul.f32 %v2714_v4, %v1621_v29  ;;  %v1626_v31 = vmul.f32 %v2718_v6, %v1621_v29 }
0x1840   :  { %v1625_v62 = vadd.f32 %v1624_v61, %v1622_v25 }
0x1842   :  { %v1627_v1 = vadd.f32 %v1626_v31, %v1625_v62 }
0x1844   :  { %v1631_v7 = vadd.f32 %v1630_v53, %v1627_v1 }
0x1846   :  { %v1633_v0 = vadd.f32 %v1632_v9, %v1631_v7 }
0x1848   :  { %v1638_v15 = vmul.f32 %v1633_v0, %v2867_v37  ;;  %v1634_v21 = vmul.f32 %v1633_v0, %v2860_v22 }
0x184a   :  { %v1639_v19 = vsel %vm183_vm7, %v1638_v15, 0.0  ;;  %v1635_v30 = vsel %vm183_vm7, %v1634_v21, 0.0 }
0x184b   :  { %1640 = vadd.xlane.f32.xlu1 %v1639_v19  ;;  %1636 = vadd.xlane.f32.xlu0 %v1635_v30 }
0x18be   :  { %v1641_v3 = vpop.xlane.xlu1 %1640  ;;  %v1637_v32 = vpop.xlane.xlu0 %1636 }
0x18bf   :  { %v1643_v46 = vmul.f32 %v2716_v5, %v1641_v3  ;;  %v1642_v35 = vmul.f32 %v2714_v4, %v1637_v32 }
0x18c1   :  { %v1644_v36 = vadd.f32 %v1643_v46, %v1642_v35 }
0x18c3   :  { %v1646_v54 = vmul.f32 %v1645_v20, %v1644_v36 }
0x18c5   :  { %v3564_v16 = vadd.f32 %v1646_v54, %v3501_v56 }
0x18c7   :  { %v1746_v57 = vmul.f32 %v2716_v5, %v3564_v16  ;;  %v1742_v43 = vmul.f32 %v2714_v4, %v3564_v16  ;;  %v1656_v48 = vadd.f32 %v1655_v40, %v3564_v16 }
0x18c9   :  { %v1747_v51 = vsel %vm183_vm7, %v1746_v57, 0.0  ;;  %v1743_v27 = vsel %vm183_vm7, %v1742_v43, 0.0  ;;  %v1659_v33 = vadd.f32 %v1658_v41, %v1656_v48 }
0x18ca   :  { %1748 = vadd.xlane.f32.xlu0 %v1747_v51  ;;  %1744 = vadd.xlane.f32.xlu2 %v1743_v27 }
0x18cb   :  { %v1662_v56 = vadd.f32 %v1661_v50, %v1659_v33 }
0x18cd   :  { %2403 = vmatmul.msk.f32.vlgmr.msra.gmra.mxu3 %vm108_vm5, %v1662_v56  ;;  %v1786_v56 = vstv %s1653_s10 }
0x18ce   :  { %2008 = vmatpush.msra.mxu3 %v3231_v10 }
0x18d0   :  { %2009 = vmatpush.msra.mxu3 %v3237_v11 }
0x18d2   :  { %2010 = vmatpush.msra.mxu3 %v3243_v12  ;;  %v3592_v12 = vld [vmem:[%s3858_s3 + $0x18] sm:$0xff] }
0x18d4   :  { %2011 = vmatpush.msra.mxu3 %v3249_v14  ;;  %v3598_v14 = vld [vmem:[%s3858_s3 + $0x10] sm:$0xff] }
0x193d   :  { %v1745_v49 = vpop.xlane.xlu2 %1744  ;;  %v1749_v42 = vpop.xlane.xlu0 %1748 }
0x193e   :  { %v1753_v60 = vmul.f32 %v2718_v6, %v1745_v49  ;;  %v1755_v45 = vmul.f32 %v1749_v42, %v2835_v47 }
0x1940   :  { %v1754_v23 = vadd.f32 %v1753_v60, %v1752_v2 }
0x1942   :  { %v1756_v24 = vadd.f32 %v1755_v45, %v1754_v23 }
0x1944   :  { %v1757_v62 = vmul.f32 5.0, %v1756_v24 }
0x1950   :  { %v1683_v34 = vpop.f32.mrf.mxu3 }
0x1951   :  { %v1684_v55 = vadd.f32 %v3255_v17, %v1683_v34  ;;  %v3604_v17 = vld [vmem:[%s3858_s3 + $0x8] sm:$0xff]  ;;  %v1795_v34 = vstv %s2406_s9  ;;  %s2422_s9 = sld [smem:[#allocation2 + $0x10e]] }
0x1953   :  { %2549 = vtanh.f32 %v1684_v55 }
0x1959   :  { %v2550_v39 = vpop.eup %2549 }
0x195a   :  { %2404 = vmatmul.msk.f32.vlgmr.msra.gmra.mxu1 %vm133_vm6, %v2550_v39  ;;  %v1798_v39 = vstv %s3637_s0 }
0x195b   :  { %2104 = vmatpush.msra.mxu1 %v3584_v58  ;;  %v1799_v49 = vmul.f32 %v2720_v8, %v1798_v39 }
0x19d7   :  { %v1707_v63 = vpop.f32.mrf.mxu1 }
0x19d8   :  { %v1708_v10 = vadd.f32 %v3263_v52, %v1707_v63  ;;  %v3610_v52 = vld [vmem:[%s3858_s3] sm:$0xff] }
0x19da   :  { %2551 = vtanh.f32 %v1708_v10  ;;  %v1796_v10 = vmul.f32 %v2718_v6, %v1795_v34 }
0x19e0   :  { %v2552_v11 = vpop.eup %2551 }
0x19e1   :  { %2405 = vmatmul.msk.f32.vlgmr.msra.gmra.mxu2 %vm133_vm6, %v2552_v11  ;;  %v1801_v11 = vstv %s3641_s1  ;;  %s3793_s1 = sld [smem:[#allocation2 + $0x20e]] }
0x19e2   :  { %2125 = vmatpush.msra.mxu2 %v3592_v12  ;;  %v1802_v23 = vmul.f32 %v2724_v13, %v1801_v11 }
0x19e4   :  { %2126 = vmatpush.msra.mxu2 %v3598_v14 }
0x19e6   :  { %2127 = vmatpush.msra.mxu2 %v3604_v17 }
0x19e8   :  { %2128 = vmatpush.msra.mxu2 %v3610_v52 }
0x1a64   :  { %v1731_v29 = vpop.f32.mrf.mxu2 }
0x1a65   :  { %v1732_v25 = vadd.f32 %v3278_v44, %v1731_v29 }
0x1a67   :  { %v1734_v61 = vmul.f32 %v2724_v13, %v1732_v25  ;;  %v1737_v26 = vmul.f32 1.442695, %v1732_v25  ;;  %v3666_v25 = vld [vmem:[%s3860_s5 + $0x18] sm:$0xff] }
0x1a69   :  { %v1735_v31 = vadd.f32 %v1734_v61, %v3564_v16  ;;  %2553 = vpow2.f32 %v1737_v26  ;;  %v3672_v61 = vld [vmem:[%s3860_s5 + $0x10] sm:$0xff]  ;;  %v3678_v26 = vld [vmem:[%s3860_s5 + $0x8] sm:$0xff] }
0x1a6a   :  { %2555 = vtanh.f32 %v1757_v62  ;;  %v3684_v62 = vld [vmem:[%s3860_s5] sm:$0xff] }
0x1a6b   :  { %1736 = vst.msk [vmem:[%s3862_s7 + $0xb] sm:$0x1] %vm183_vm7, %v1735_v31 }
0x1a6f   :  { %v2554_v1 = vpop.eup %2553 }
0x1a70   :  { %2557 = vrcp.f32 %v2554_v1  ;;  %v2556_v53 = vpop.eup %2555 }
0x1a71   :  { %v1759_v7 = vadd.f32 1.0, %v2556_v53 }
0x1a73   :  { %v1760_v0 = vmul.f32 0.5, %v1759_v7 }
0x1a75   :  { %v1769_v30 = vmul.f32 %v2554_v1, %v1760_v0 }
0x1a76   :  { %v2558_v9 = vpop.eup %2557 }
0x1a77   :  { %v1740_v44 = vsub.f32 %v2554_v1, %v2558_v9  ;;  %v1770_v35 = vmul.f32 %v1769_v30, %v1660_v28  ;;  %v1773_v40 = vmul.f32 %v2724_v13, %v1769_v30  ;;  %v3690_v1 = vld [vmem:[%s3857_s2] sm:$0x1]  ;;  %s1891_s2 = ssub.f32 0.0, %s3637_s0 }
0x1a78   :  { %s3789_s0 = sld [smem:[#allocation2 + $0x18e]] }
0x1a79   :  { %v1741_v15 = vmul.f32 0.5, %v1740_v44  ;;  %v1771_v38 = vmul.f32 %v2720_v8, %v1770_v35  ;;  %v3698_v44 = vld [vmem:[%s3859_s4] sm:$0x1] }
0x1a7b   :  { %v1761_v21 = vmul.f32 %v1760_v0, %v1741_v15  ;;  %v1764_v19 = vmax.f32 %v1741_v15, 0.0 }
0x1a7d   :  { %v1762_v3 = vmax.f32 %v1761_v21, 0.0  ;;  %v1765_v46 = vmul.f32 %v2716_v5, %v1764_v19 }
0x1a7e   :  { %s2173_s11 = ssub.f32 0.0, %s3789_s0 }
0x1a7f   :  { %v1763_v32 = vmul.f32 %v2714_v4, %v1762_v3  ;;  %v1767_v18 = vmul.f32 %v2718_v6, %v1762_v3 }
0x1a81   :  { %v1766_v20 = vadd.f32 %v1765_v46, %v1763_v32 }
0x1a83   :  { %v1768_v36 = vadd.f32 %v1767_v18, %v1766_v20 }
0x1a85   :  { %v1772_v54 = vadd.f32 %v1771_v38, %v1768_v36 }
0x1a87   :  { %v1774_v41 = vadd.f32 %v1773_v40, %v1772_v54 }
0x1a89   :  { %v1779_v57 = vmul.f32 %v1774_v41, %v2867_v37  ;;  %v1775_v43 = vmul.f32 %v1774_v41, %v2860_v22 }
0x1a8b   :  { %v1780_v48 = vsel %vm183_vm7, %v1779_v57, 0.0  ;;  %v1776_v50 = vsel %vm183_vm7, %v1775_v43, 0.0 }
0x1a8c   :  { %1781 = vadd.xlane.f32.xlu2 %v1780_v48  ;;  %1777 = vadd.xlane.f32.xlu1 %v1776_v50 }
0x1aff   :  { %v1782_v28 = vpop.xlane.xlu2 %1781  ;;  %v1778_v51 = vpop.xlane.xlu1 %1777 }
0x1b00   :  { %v1784_v27 = vmul.f32 %v2716_v5, %v1782_v28  ;;  %v1783_v33 = vmul.f32 %v2714_v4, %v1778_v51 }
0x1b02   :  { %v1785_v55 = vadd.f32 %v1784_v27, %v1783_v33 }
0x1b04   :  { %v1787_v63 = vmul.f32 %v1786_v56, %v1785_v55 }
0x1b06   :  { %v3649_v59 = vadd.f32 %v1787_v63, %v3564_v16 }
0x1b08   :  { %v1887_v2 = vmul.f32 %v2716_v5, %v3649_v59  ;;  %v1883_v60 = vmul.f32 %v2714_v4, %v3649_v59  ;;  %v1797_v42 = vadd.f32 %v1796_v10, %v3649_v59 }
0x1b0a   :  { %v1888_v45 = vsel %vm183_vm7, %v1887_v2, 0.0  ;;  %v1884_v24 = vsel %vm183_vm7, %v1883_v60, 0.0  ;;  %v1800_v29 = vadd.f32 %v1799_v49, %v1797_v42 }
0x1b0b   :  { %1889 = vadd.xlane.f32.xlu1 %v1888_v45  ;;  %1885 = vadd.xlane.f32.xlu0 %v1884_v24 }
0x1b0c   :  { %v1803_v16 = vadd.f32 %v1802_v23, %v1800_v29 }
0x1b0e   :  { %2411 = vmatmul.msk.f32.vlgmr.msrb.gmra.mxu0 %vm108_vm5, %v1803_v16 }
0x1b0f   :  { %2149 = vmatpush.msrb.mxu0 %v3666_v25 }
0x1b11   :  { %2150 = vmatpush.msrb.mxu0 %v3672_v61 }
0x1b13   :  { %2151 = vmatpush.msrb.mxu0 %v3678_v26 }
0x1b15   :  { %2152 = vmatpush.msrb.mxu0 %v3684_v62 }
0x1b7e   :  { %v1886_v21 = vpop.xlane.xlu0 %1885  ;;  %v1890_v3 = vpop.xlane.xlu1 %1889 }
0x1b7f   :  { %v1894_v30 = vmul.f32 %v2718_v6, %v1886_v21  ;;  %v1896_v46 = vmul.f32 %v1890_v3, %v2835_v47  ;;  %v1942_v21 = vstv %s3739_s28 }
0x1b8b   :  { %v1824_v31 = vpop.f32.mrf.mxu0 }
0x1b8c   :  { %v1825_v53 = vadd.f32 %v3690_v1, %v1824_v31 }
0x1b8e   :  { %2559 = vtanh.f32 %v1825_v53 }
0x1b94   :  { %v2560_v7 = vpop.eup %2559 }
0x1b95   :  { %2412 = vmatmul.msk.f32.vlgmr.msrb.gmra.mxu3 %vm133_vm6, %v2560_v7  ;;  %v1936_v7 = vstv %s2414_s25 }
0x1b96   :  { %2242 = vmatpush.msrb.mxu3 %v3584_v58  ;;  %v1892_v58 = vstv %s1891_s2 }
0x1b97   :  { %v1893_v19 = vmul.f32 %v2714_v4, %v1892_v58  ;;  %v1937_v58 = vmul.f32 %v2718_v6, %v1936_v7 }
0x1b99   :  { %v1895_v32 = vadd.f32 %v1894_v30, %v1893_v19 }
0x1b9b   :  { %v1897_v35 = vadd.f32 %v1896_v46, %v1895_v32 }
0x1b9d   :  { %v1898_v18 = vmul.f32 5.0, %v1897_v35  ;;  %v1943_v35 = vmul.f32 %v2724_v13, %v1942_v21 }
0x1c18   :  { %v1848_v9 = vpop.f32.mrf.mxu3 }
0x1c19   :  { %v1849_v0 = vadd.f32 %v3698_v44, %v1848_v9 }
0x1c1b   :  { %2561 = vtanh.f32 %v1849_v0  ;;  %v1939_v0 = vstv %s3735_s26 }
0x1c1c   :  { %v1940_v30 = vmul.f32 %v2720_v8, %v1939_v0 }
0x1c21   :  { %v2562_v15 = vpop.eup %2561 }
0x1c22   :  { %2413 = vmatmul.msk.f32.vlgmr.msrb.gmra.mxu1 %vm133_vm6, %v2562_v15 }
0x1c23   :  { %2263 = vmatpush.msrb.mxu1 %v3592_v12  ;;  %v3713_v12 = vld [vmem:[%s3861_s6] sm:$0x1]  ;;  %s3733_s6 = sld [smem:[#allocation2 + $0x28d]] }
0x1c25   :  { %2264 = vmatpush.msrb.mxu1 %v3598_v14 }
0x1c27   :  { %2265 = vmatpush.msrb.mxu1 %v3604_v17 }
0x1c29   :  { %2266 = vmatpush.msrb.mxu1 %v3610_v52  ;;  %s1794_s27 = ssub.f32 %s3733_s6, %s3635_s8 }
0x1c2a   :  { %s3787_s8 = sld [smem:[#allocation2 + $0x28e]] }
0x1c2b   :  { %v1927_v53 = vstv %s1794_s27 }
0x1c30   :  { %s1935_s10 = ssub.f32 %s3787_s8, %s3733_s6 }
0x1c31   :  { %s2076_s17 = ssub.f32 %s2425_s13, %s3787_s8 }
0x1c9f   :  { %v1872_v20 = vpop.f32.mrf.mxu1 }
0x1ca0   :  { %v1873_v14 = vadd.f32 %v3713_v12, %v1872_v20 }
0x1ca2   :  { %v1875_v17 = vmul.f32 %v2724_v13, %v1873_v14  ;;  %v1878_v52 = vmul.f32 1.442695, %v1873_v14 }
0x1ca4   :  { %v1876_v36 = vadd.f32 %v1875_v17, %v3649_v59  ;;  %2563 = vpow2.f32 %v1878_v52 }
0x1ca5   :  { %2565 = vtanh.f32 %v1898_v18 }
0x1ca6   :  { %1877 = vst.msk [vmem:[%s3862_s7 + $0xc] sm:$0x1] %vm183_vm7, %v1876_v36 }
0x1caa   :  { %v2564_v38 = vpop.eup %2563 }
0x1cab   :  { %2567 = vrcp.f32 %v2564_v38  ;;  %v2566_v54 = vpop.eup %2565 }
0x1cac   :  { %v1900_v40 = vadd.f32 1.0, %v2566_v54 }
0x1cae   :  { %v1901_v43 = vmul.f32 0.5, %v1900_v40 }
0x1cb0   :  { %v1910_v51 = vmul.f32 %v2564_v38, %v1901_v43 }
0x1cb1   :  { %v2568_v41 = vpop.eup %2567 }
0x1cb2   :  { %v1881_v57 = vsub.f32 %v2564_v38, %v2568_v41  ;;  %v1911_v34 = vmul.f32 %v1910_v51, %v1801_v11  ;;  %v1914_v2 = vmul.f32 %v2724_v13, %v1910_v51 }
0x1cb4   :  { %v1882_v48 = vmul.f32 0.5, %v1881_v57  ;;  %v1912_v10 = vmul.f32 %v2720_v8, %v1911_v34 }
0x1cb6   :  { %v1902_v50 = vmul.f32 %v1901_v43, %v1882_v48  ;;  %v1905_v28 = vmax.f32 %v1882_v48, 0.0 }
0x1cb8   :  { %v1903_v27 = vmax.f32 %v1902_v50, 0.0  ;;  %v1906_v56 = vmul.f32 %v2716_v5, %v1905_v28 }
0x1cba   :  { %v1904_v33 = vmul.f32 %v2714_v4, %v1903_v27  ;;  %v1908_v39 = vmul.f32 %v2718_v6, %v1903_v27 }
0x1cbc   :  { %v1907_v55 = vadd.f32 %v1906_v56, %v1904_v33 }
0x1cbe   :  { %v1909_v63 = vadd.f32 %v1908_v39, %v1907_v55 }
0x1cc0   :  { %v1913_v49 = vadd.f32 %v1912_v10, %v1909_v63 }
0x1cc2   :  { %v1915_v60 = vadd.f32 %v1914_v2, %v1913_v49 }
0x1cc4   :  { %v1920_v42 = vmul.f32 %v1915_v60, %v2867_v37  ;;  %v1916_v23 = vmul.f32 %v1915_v60, %v2860_v22 }
0x1cc6   :  { %v1921_v45 = vsel %vm183_vm7, %v1920_v42, 0.0  ;;  %v1917_v24 = vsel %vm183_vm7, %v1916_v23, 0.0 }
0x1cc7   :  { %1922 = vadd.xlane.f32.xlu0 %v1921_v45  ;;  %1918 = vadd.xlane.f32.xlu2 %v1917_v24 }
0x1d3a   :  { %v1923_v11 = vpop.xlane.xlu0 %1922  ;;  %v1919_v29 = vpop.xlane.xlu2 %1918 }
0x1d3b   :  { %v1925_v16 = vmul.f32 %v2716_v5, %v1923_v11  ;;  %v1924_v31 = vmul.f32 %v2714_v4, %v1919_v29 }
0x1d3d   :  { %v1926_v9 = vadd.f32 %v1925_v16, %v1924_v31 }
0x1d3f   :  { %v1928_v15 = vmul.f32 %v1927_v53, %v1926_v9 }
0x1d41   :  { %v3747_v19 = vadd.f32 %v1928_v15, %v3649_v59 }
0x1d43   :  { %v2028_v3 = vmul.f32 %v2716_v5, %v3747_v19  ;;  %v2024_v32 = vmul.f32 %v2714_v4, %v3747_v19  ;;  %v1938_v46 = vadd.f32 %v1937_v58, %v3747_v19 }
0x1d45   :  { %v2029_v20 = vsel %vm183_vm7, %v2028_v3, 0.0  ;;  %v2025_v14 = vsel %vm183_vm7, %v2024_v32, 0.0  ;;  %v1941_v17 = vadd.f32 %v1940_v30, %v1938_v46 }
0x1d46   :  { %2030 = vadd.xlane.f32.xlu2 %v2029_v20  ;;  %2026 = vadd.xlane.f32.xlu1 %v2025_v14  ;;  %v2068_v14 = vstv %s1935_s10 }
0x1d47   :  { %v1944_v59 = vadd.f32 %v1943_v35, %v1941_v17  ;;  %v2077_v17 = vstv %s2422_s9 }
0x1d49   :  { %2419 = vmatmul.msk.f32.vlgmr.msrb.gmra.mxu2 %vm108_vm5, %v1944_v59 }
0x1d4a   :  { %2287 = vmatpush.msrb.mxu2 %v3666_v25  ;;  %v2033_v25 = vstv %s2032_s29 }
0x1d4c   :  { %2288 = vmatpush.msrb.mxu2 %v3672_v61 }
0x1d4e   :  { %2289 = vmatpush.msrb.mxu2 %v3678_v26  ;;  %v2034_v26 = vmul.f32 %v2714_v4, %v2033_v25 }
0x1d50   :  { %2290 = vmatpush.msrb.mxu2 %v3684_v62 }
0x1db9   :  { %v2027_v61 = vpop.xlane.xlu1 %2026  ;;  %v2031_v41 = vpop.xlane.xlu2 %2030 }
0x1dba   :  { %v2035_v62 = vmul.f32 %v2718_v6, %v2027_v61  ;;  %v2037_v43 = vmul.f32 %v2031_v41, %v2835_v47 }
0x1dbc   :  { %v2036_v57 = vadd.f32 %v2035_v62, %v2034_v26 }
0x1dbe   :  { %v2038_v48 = vadd.f32 %v2037_v43, %v2036_v57 }
0x1dc0   :  { %v2039_v33 = vmul.f32 5.0, %v2038_v48 }
0x1dcc   :  { %v1965_v52 = vpop.f32.mrf.mxu2 }
0x1dcd   :  { %v1966_v18 = vadd.f32 %v3690_v1, %v1965_v52  ;;  %v2080_v52 = vstv %s3789_s0 }
0x1dcf   :  { %2569 = vtanh.f32 %v1966_v18 }
0x1dd5   :  { %v2570_v36 = vpop.eup %2569 }
0x1dd6   :  { %2420 = vmatmul.msk.f32.vlgmr.msra.gmra.mxu0 %vm133_vm6, %v2570_v36  ;;  %v2078_v36 = vmul.f32 %v2718_v6, %v2077_v17 }
0x1e53   :  { %v1989_v38 = vpop.f32.mrf.mxu0 }
0x1e54   :  { %v1990_v54 = vadd.f32 %v3698_v44, %v1989_v38  ;;  %v2083_v38 = vstv %s3793_s1 }
0x1e55   :  { %v2084_v62 = vmul.f32 %v2724_v13, %v2083_v38 }
0x1e56   :  { %2571 = vtanh.f32 %v1990_v54 }
0x1e5c   :  { %v2572_v40 = vpop.eup %2571 }
0x1e5d   :  { %2421 = vmatmul.msk.f32.vlgmr.msra.gmra.mxu3 %vm133_vm6, %v2572_v40  ;;  %v2081_v40 = vmul.f32 %v2720_v8, %v2080_v52 }
0x1ee0   :  { %v2013_v50 = vpop.f32.mrf.mxu3 }
0x1ee1   :  { %v2014_v28 = vadd.f32 %v3713_v12, %v2013_v50 }
0x1ee3   :  { %v2016_v51 = vmul.f32 %v2724_v13, %v2014_v28  ;;  %v2019_v27 = vmul.f32 1.442695, %v2014_v28 }
0x1ee5   :  { %v2017_v56 = vadd.f32 %v2016_v51, %v3747_v19  ;;  %2573 = vpow2.f32 %v2019_v27 }
0x1ee6   :  { %2575 = vtanh.f32 %v2039_v33 }
0x1ee7   :  { %2018 = vst.msk [vmem:[%s3862_s7 + $0xd] sm:$0x1] %vm183_vm7, %v2017_v56  ;;  %v2174_v56 = vstv %s2173_s11 }
0x1eeb   :  { %v2574_v34 = vpop.eup %2573 }
0x1eec   :  { %2577 = vrcp.f32 %v2574_v34  ;;  %v2576_v55 = vpop.eup %2575 }
0x1eed   :  { %v2041_v39 = vadd.f32 1.0, %v2576_v55  ;;  %v2175_v55 = vmul.f32 %v2714_v4, %v2174_v56 }
0x1eef   :  { %v2042_v49 = vmul.f32 0.5, %v2041_v39 }
0x1ef1   :  { %v2051_v23 = vmul.f32 %v2574_v34, %v2042_v49 }
0x1ef2   :  { %v2578_v63 = vpop.eup %2577 }
0x1ef3   :  { %v2022_v10 = vsub.f32 %v2574_v34, %v2578_v63  ;;  %v2052_v29 = vmul.f32 %v2051_v23, %v1942_v21  ;;  %v2055_v0 = vmul.f32 %v2724_v13, %v2051_v23 }
0x1ef5   :  { %v2023_v2 = vmul.f32 0.5, %v2022_v10  ;;  %v2053_v7 = vmul.f32 %v2720_v8, %v2052_v29 }
0x1ef7   :  { %v2043_v60 = vmul.f32 %v2042_v49, %v2023_v2  ;;  %v2046_v42 = vmax.f32 %v2023_v2, 0.0 }
0x1ef9   :  { %v2044_v45 = vmax.f32 %v2043_v60, 0.0  ;;  %v2047_v11 = vmul.f32 %v2716_v5, %v2046_v42 }
0x1efb   :  { %v2045_v24 = vmul.f32 %v2714_v4, %v2044_v45  ;;  %v2049_v31 = vmul.f32 %v2718_v6, %v2044_v45 }
0x1efd   :  { %v2048_v16 = vadd.f32 %v2047_v11, %v2045_v24 }
0x1eff   :  { %v2050_v53 = vadd.f32 %v2049_v31, %v2048_v16 }
0x1f01   :  { %v2054_v9 = vadd.f32 %v2053_v7, %v2050_v53 }
0x1f03   :  { %v2056_v15 = vadd.f32 %v2055_v0, %v2054_v9 }
0x1f05   :  { %v2061_v58 = vmul.f32 %v2056_v15, %v2867_v37  ;;  %v2057_v30 = vmul.f32 %v2056_v15, %v2860_v22 }
0x1f07   :  { %v2062_v3 = vsel %vm183_vm7, %v2061_v58, 0.0  ;;  %v2058_v32 = vsel %vm183_vm7, %v2057_v30, 0.0 }
0x1f08   :  { %2063 = vadd.xlane.f32.xlu1 %v2062_v3  ;;  %2059 = vadd.xlane.f32.xlu0 %v2058_v32 }
0x1f7b   :  { %v2064_v21 = vpop.xlane.xlu1 %2063  ;;  %v2060_v46 = vpop.xlane.xlu0 %2059 }
0x1f7c   :  { %v2066_v35 = vmul.f32 %v2716_v5, %v2064_v21  ;;  %v2065_v20 = vmul.f32 %v2714_v4, %v2060_v46 }
0x1f7e   :  { %v2067_v59 = vadd.f32 %v2066_v35, %v2065_v20 }
0x1f80   :  { %v2069_v18 = vmul.f32 %v2068_v14, %v2067_v59 }
0x1f82   :  { %v3801_v54 = vadd.f32 %v2069_v18, %v3747_v19 }
0x1f84   :  { %v2169_v25 = vmul.f32 %v2716_v5, %v3801_v54  ;;  %v2165_v61 = vmul.f32 %v2714_v4, %v3801_v54  ;;  %v2079_v26 = vadd.f32 %v2078_v36, %v3801_v54 }
0x1f86   :  { %v2170_v41 = vsel %vm183_vm7, %v2169_v25, 0.0  ;;  %v2166_v57 = vsel %vm183_vm7, %v2165_v61, 0.0  ;;  %v2082_v43 = vadd.f32 %v2081_v40, %v2079_v26 }
0x1f87   :  { %2171 = vadd.xlane.f32.xlu0 %v2170_v41  ;;  %2167 = vadd.xlane.f32.xlu2 %v2166_v57  ;;  %v2215_v41 = vstv %s2430_s15  ;;  %v2218_v57 = vstv %s2431_s16 }
0x1f88   :  { %v2085_v19 = vadd.f32 %v2084_v62, %v2082_v43  ;;  %v2216_v43 = vmul.f32 %v2718_v6, %v2215_v41 }
0x1f8a   :  { %2427 = vmatmul.msk.f32.vlgmr.msra.gmra.mxu1 %vm108_vm5, %v2085_v19 }
0x1ffa   :  { %v2168_v34 = vpop.xlane.xlu2 %2167  ;;  %v2172_v63 = vpop.xlane.xlu0 %2171 }
0x1ffb   :  { %v2176_v39 = vmul.f32 %v2718_v6, %v2168_v34  ;;  %v2178_v49 = vmul.f32 %v2172_v63, %v2835_v47 }
0x1ffd   :  { %v2177_v10 = vadd.f32 %v2176_v39, %v2175_v55 }
0x1fff   :  { %v2179_v2 = vadd.f32 %v2178_v49, %v2177_v10 }
0x2001   :  { %v2180_v24 = vmul.f32 5.0, %v2179_v2 }
0x2007   :  { %v2106_v48 = vpop.f32.mrf.mxu1 }
0x2008   :  { %v2107_v50 = vadd.f32 %v3690_v1, %v2106_v48  ;;  %v2221_v48 = vstv %s2432_s18 }
0x200a   :  { %2579 = vtanh.f32 %v2107_v50  ;;  %v2219_v50 = vmul.f32 %v2720_v8, %v2218_v57 }
0x2010   :  { %v2580_v28 = vpop.eup %2579 }
0x2011   :  { %2428 = vmatmul.msk.f32.vlgmr.msra.gmra.mxu2 %vm133_vm6, %v2580_v28 }
0x2094   :  { %v2130_v51 = vpop.f32.mrf.mxu2 }
0x2095   :  { %v2131_v27 = vadd.f32 %v3698_v44, %v2130_v51 }
0x2097   :  { %2581 = vtanh.f32 %v2131_v27  ;;  %v2222_v27 = vmul.f32 %v2724_v13, %v2221_v48 }
0x209d   :  { %v2582_v33 = vpop.eup %2581 }
0x209e   :  { %2429 = vmatmul.msk.f32.vlgmr.msrb.gmra.mxu0 %vm133_vm6, %v2582_v33 }
0x211b   :  { %v2154_v60 = vpop.f32.mrf.mxu0 }
0x211c   :  { %v2155_v42 = vadd.f32 %v3713_v12, %v2154_v60 }
0x211e   :  { %v2157_v23 = vmul.f32 %v2724_v13, %v2155_v42  ;;  %v2160_v45 = vmul.f32 1.442695, %v2155_v42 }
0x2120   :  { %v2158_v11 = vadd.f32 %v2157_v23, %v3801_v54  ;;  %2583 = vpow2.f32 %v2160_v45 }
0x2121   :  { %2585 = vtanh.f32 %v2180_v24 }
0x2122   :  { %2159 = vst.msk [vmem:[%s3862_s7 + $0xe] sm:$0x1] %vm183_vm7, %v2158_v11 }
0x2126   :  { %v2584_v29 = vpop.eup %2583 }
0x2127   :  { %2587 = vrcp.f32 %v2584_v29  ;;  %v2586_v47 = vpop.eup %2585 }
0x2128   :  { %v2182_v16 = vadd.f32 1.0, %v2586_v47 }
0x212a   :  { %v2183_v7 = vmul.f32 0.5, %v2182_v16 }
0x212c   :  { %v2192_v58 = vmul.f32 %v2584_v29, %v2183_v7 }
0x212d   :  { %v2588_v31 = vpop.eup %2587 }
0x212e   :  { %v2163_v53 = vsub.f32 %v2584_v29, %v2588_v31  ;;  %v2193_v21 = vmul.f32 %v2192_v58, %v2083_v38  ;;  %v2196_v59 = vmul.f32 %v2724_v13, %v2192_v58 }
0x2130   :  { %v2164_v9 = vmul.f32 0.5, %v2163_v53  ;;  %v2194_v14 = vmul.f32 %v2720_v8, %v2193_v21 }
0x2132   :  { %v2184_v0 = vmul.f32 %v2183_v7, %v2164_v9  ;;  %v2187_v15 = vmax.f32 %v2164_v9, 0.0 }
0x2134   :  { %v2185_v30 = vmax.f32 %v2184_v0, 0.0  ;;  %v2188_v32 = vmul.f32 %v2716_v5, %v2187_v15 }
0x2136   :  { %v2186_v3 = vmul.f32 %v2714_v4, %v2185_v30  ;;  %v2190_v35 = vmul.f32 %v2718_v6, %v2185_v30 }
0x2138   :  { %v2189_v46 = vadd.f32 %v2188_v32, %v2186_v3 }
0x213a   :  { %v2191_v20 = vadd.f32 %v2190_v35, %v2189_v46 }
0x213c   :  { %v2195_v17 = vadd.f32 %v2194_v14, %v2191_v20 }
0x213e   :  { %v2197_v52 = vadd.f32 %v2196_v59, %v2195_v17 }
0x2140   :  { %v2202_v18 = vmul.f32 %v2197_v52, %v2867_v37  ;;  %v2198_v36 = vmul.f32 %v2197_v52, %v2860_v22  ;;  %v2209_v37 = vstv %s2076_s17 }
0x2142   :  { %v2203_v40 = vsel %vm183_vm7, %v2202_v18, 0.0  ;;  %v2199_v25 = vsel %vm183_vm7, %v2198_v36, 0.0 }
0x2143   :  { %2204 = vadd.xlane.f32.xlu2 %v2203_v40  ;;  %2200 = vadd.xlane.f32.xlu1 %v2199_v25 }
0x21b6   :  { %v2205_v38 = vpop.xlane.xlu2 %2204  ;;  %v2201_v61 = vpop.xlane.xlu1 %2200 }
0x21b7   :  { %v2207_v26 = vmul.f32 %v2716_v5, %v2205_v38  ;;  %v2206_v62 = vmul.f32 %v2714_v4, %v2201_v61 }
0x21b9   :  { %v2208_v22 = vadd.f32 %v2207_v26, %v2206_v62 }
0x21bb   :  { %v2210_v19 = vmul.f32 %v2209_v37, %v2208_v22 }
0x21bd   :  { %v2211_v28 = vadd.f32 %v2210_v19, %v3801_v54 }
0x21bf   :  { %v2217_v51 = vadd.f32 %v2216_v43, %v2211_v28 }
0x21c1   :  { %v2220_v33 = vadd.f32 %v2219_v50, %v2217_v51 }
0x21c3   :  { %v2223_v56 = vadd.f32 %v2222_v27, %v2220_v33 }
0x21c5   :  { %2433 = vmatmul.msk.f32.vlgmr.msrb.gmra.mxu3 %vm108_vm5, %v2223_v56 }
0x2248   :  { %v2244_v4 = vpop.f32.mrf.mxu3 }
0x2249   :  { %v2245_v5 = vadd.f32 %v3690_v1, %v2244_v4 }
0x224b   :  { %2589 = vtanh.f32 %v2245_v5 }
0x2251   :  { %v2590_v34 = vpop.eup %2589 }
0x2252   :  { %2434 = vmatmul.msk.f32.vlgmr.msrb.gmra.mxu1 %vm133_vm6, %v2590_v34 }
0x22cf   :  { %v2268_v6 = vpop.f32.mrf.mxu1 }
0x22d0   :  { %v2269_v55 = vadd.f32 %v3698_v44, %v2268_v6 }
0x22d2   :  { %2591 = vtanh.f32 %v2269_v55 }
0x22d8   :  { %v2592_v8 = vpop.eup %2591 }
0x22d9   :  { %2435 = vmatmul.msk.f32.vlgmr.msrb.gmra.mxu2 %vm133_vm6, %v2592_v8 }
0x235c   :  { %v2292_v54 = vpop.f32.mrf.mxu2 }
0x235d   :  { %v2293_v39 = vadd.f32 %v3713_v12, %v2292_v54 }
0x235f   :  { %v2295_v63 = vmul.f32 %v2724_v13, %v2293_v39 }
0x2361   :  { %v2296_v10 = vadd.f32 %v2295_v63, %v2211_v28 }
0x2363   :  { %2297 = vst.msk [vmem:[%s3862_s7 + $0xf] sm:$0x1] %vm183_vm7, %v2296_v10 }
0x2364   :  { %2302 = vsyncpa [#allocation3], 1 }
0x2365   :  { %2303 = vsyncpa [#allocation4], 1 }

</bundles_post_ra>
